<compile_context>
chip_gen: v6e
topology: v6e:2x2x1
jax: 0.10.0
libtpu: 0.0.40
codegen_flags: <defaults>
</compile_context>

<pallas_src>
import functools

import jax
import jax.numpy as jnp
from jax.experimental import pallas as pl
from jax.experimental.pallas import tpu as pltpu


_VMEM_LIMIT = 64 * 1024 * 1024  # explicit scoped-VMEM headroom (safe on v5e/v6e/v7x)


def _cp(*sems):
    return pltpu.CompilerParams(dimension_semantics=sems,
                                vmem_limit_bytes=_VMEM_LIMIT)


def _round_up(x, m):
    return (x + m - 1) // m * m


# ------------------- tiled MXU matmul (+ fused bias / tanh) ------------------

def _matmul_kernel(a_ref, b_ref, bias_ref, o_ref, acc_ref, *, apply_tanh):
    @pl.when(pl.program_id(2) == 0)
    def _():
        acc_ref[...] = jnp.zeros_like(acc_ref)

    acc_ref[...] += jnp.dot(a_ref[...], b_ref[...],
                            preferred_element_type=jnp.float32)

    @pl.when(pl.program_id(2) == pl.num_programs(2) - 1)
    def _():
        y = acc_ref[...] + bias_ref[...]
        if apply_tanh:
            y = jnp.tanh(y)
        o_ref[...] = y.astype(o_ref.dtype)


def pallas_matmul(a, b, bias=None, apply_tanh=False, tm=256, tn=256, tk=256):
    """(M,K)@(K,N): bf16 MXU inputs, f32 VMEM accumulator carried over the K
    grid axis, operands zero-padded so M/N/K are tile- and lane-aligned
    (lane-dense stores even for the 3-channel final conv)."""
    M, K = a.shape
    K2, N = b.shape
    assert K == K2
    tm = min(tm, _round_up(M, 128))
    tn = min(tn, _round_up(N, 128))
    tk = min(tk, _round_up(K, 128))
    Mp, Kp, Np = _round_up(M, tm), _round_up(K, tk), _round_up(N, tn)

    a_p = jnp.pad(a.astype(jnp.bfloat16), ((0, Mp - M), (0, Kp - K)))
    b_p = jnp.pad(b.astype(jnp.bfloat16), ((0, Kp - K), (0, Np - N)))
    if bias is None:
        bias_p = jnp.zeros((1, Np), jnp.float32)
    else:
        bias_p = jnp.pad(bias.astype(jnp.float32), ((0, 0), (0, Np - N)))

    out = pl.pallas_call(
        functools.partial(_matmul_kernel, apply_tanh=apply_tanh),
        out_shape=jax.ShapeDtypeStruct((Mp, Np), jnp.float32),
        grid=(Mp // tm, Np // tn, Kp // tk),
        in_specs=[pl.BlockSpec((tm, tk), lambda i, j, k: (i, k)),
                  pl.BlockSpec((tk, tn), lambda i, j, k: (k, j)),
                  pl.BlockSpec((1, tn), lambda i, j, k: (0, j))],
        out_specs=pl.BlockSpec((tm, tn), lambda i, j, k: (i, j)),
        scratch_shapes=[pltpu.VMEM((tm, tn), jnp.float32)],
        compiler_params=_cp("parallel", "parallel", "arbitrary"),
    )(a_p, b_p, bias_p)
    return out[:M, :N]


# ------------------- tiled two-pass InstanceNorm (+ ReLU) --------------------

def _in_stats_kernel(x_ref, mean_ref, rstd_ref, *, inv_l, eps):
    l = pl.program_id(1)

    @pl.when(l == 0)
    def _():
        mean_ref[...] = jnp.zeros_like(mean_ref)
        rstd_ref[...] = jnp.zeros_like(rstd_ref)

    x = x_ref[...]
    mean_ref[...] += jnp.sum(x, axis=1, keepdims=True)
    rstd_ref[...] += jnp.sum(x * x, axis=1, keepdims=True)

    @pl.when(l == pl.num_programs(1) - 1)
    def _():
        m = mean_ref[...] * inv_l
        var = jnp.maximum(rstd_ref[...] * inv_l - m * m, 0.0)  # biased variance
        mean_ref[...] = m
        rstd_ref[...] = jax.lax.rsqrt(var + eps)


def _in_apply_kernel(x_ref, mean_ref, rstd_ref, o_ref, *, relu):
    y = (x_ref[...] - mean_ref[...]) * rstd_ref[...]
    if relu:
        y = jnp.maximum(y, 0.0)
    o_ref[...] = y


def _pick_l_tile(L, cap=2048):
    if L <= cap:
        return L
    for t in range(cap, 7, -1):
        if L % t == 0 and t % 8 == 0:
            return t
    return L


def pallas_instnorm(x_nlc, *, relu, eps=1e-5):
    """InstanceNorm2d(affine=False) (+optional ReLU) on (N, H*W, C) slabs;
    grid over (batch, spatial tiles), stats accumulated in resident output
    blocks over the (last, 'arbitrary') spatial axis."""
    N, L, C = x_nlc.shape
    tl = _pick_l_tile(L)
    lt = L // tl

    mean, rstd = pl.pallas_call(
        functools.partial(_in_stats_kernel, inv_l=1.0 / L, eps=eps),
        out_shape=(jax.ShapeDtypeStruct((N, 1, C), jnp.float32),
                   jax.ShapeDtypeStruct((N, 1, C), jnp.float32)),
        grid=(N, lt),
        in_specs=[pl.BlockSpec((1, tl, C), lambda n, l: (n, l, 0))],
        out_specs=(pl.BlockSpec((1, 1, C), lambda n, l: (n, 0, 0)),
                   pl.BlockSpec((1, 1, C), lambda n, l: (n, 0, 0))),
        compiler_params=_cp("parallel", "arbitrary"),
    )(x_nlc)

    return pl.pallas_call(
        functools.partial(_in_apply_kernel, relu=relu),
        out_shape=jax.ShapeDtypeStruct((N, L, C), jnp.float32),
        grid=(N, lt),
        in_specs=[pl.BlockSpec((1, tl, C), lambda n, l: (n, l, 0)),
                  pl.BlockSpec((1, 1, C), lambda n, l: (n, 0, 0)),
                  pl.BlockSpec((1, 1, C), lambda n, l: (n, 0, 0))],
        out_specs=pl.BlockSpec((1, tl, C), lambda n, l: (n, l, 0)),
        compiler_params=_cp("parallel", "parallel"),
    )(x_nlc, mean, rstd)


# -------------------- fused residual-block chain kernel ----------------------

def _residual_chain_kernel(x_ref, o_ref, *, n_blocks, eps):
    # ResidualBlock.forward reduces to x -> x + InstanceNorm2d(x); run all
    # iterations on a VMEM-resident (1, H*W, C) slab (one HBM read + write).
    def body(_, x):
        mean = jnp.mean(x, axis=1, keepdims=True)
        var = jnp.mean(jnp.square(x - mean), axis=1, keepdims=True)
        return x + (x - mean) * jax.lax.rsqrt(var + eps)

    o_ref[...] = jax.lax.fori_loop(0, n_blocks, body, x_ref[...])


def pallas_residual_chain(x_nlc, n_blocks, eps=1e-5):
    if n_blocks == 0:
        return x_nlc
    N, L, C = x_nlc.shape
    return pl.pallas_call(
        functools.partial(_residual_chain_kernel, n_blocks=n_blocks, eps=eps),
        out_shape=jax.ShapeDtypeStruct((N, L, C), jnp.float32),
        grid=(N,),
        in_specs=[pl.BlockSpec((1, L, C), lambda n: (n, 0, 0))],
        out_specs=pl.BlockSpec((1, L, C), lambda n: (n, 0, 0)),
        compiler_params=_cp("parallel"),
    )(x_nlc)


# --------------------------------- JAX glue ----------------------------------

def instnorm_nhwc(x, *, relu):
    N, H, W, C = x.shape
    return pallas_instnorm(x.reshape(N, H * W, C), relu=relu).reshape(N, H, W, C)


def residual_chain_nhwc(x, n_blocks):
    N, H, W, C = x.shape
    return pallas_residual_chain(x.reshape(N, H * W, C), n_blocks).reshape(N, H, W, C)


def im2col(x, kh, kw, stride, pad):
    """x: (N,H,W,C). pad: int or ((ph0,ph1),(pw0,pw1)). -> (N*Ho*Wo, kh*kw*C)."""
    if isinstance(pad, int):
        pad = ((pad, pad), (pad, pad))
    xp = jnp.pad(x, ((0, 0), pad[0], pad[1], (0, 0)))
    N, H, W, C = xp.shape
    Ho = (H - kh) // stride + 1
    Wo = (W - kw) // stride + 1
    cols = []
    for i in range(kh):
        for j in range(kw):
            cols.append(xp[:, i:i + stride * Ho:stride,
                           j:j + stride * Wo:stride, :])
    patches = jnp.stack(cols, axis=3)                 # (N, Ho, Wo, kh*kw, C)
    return patches.reshape(N * Ho * Wo, kh * kw * C), (N, Ho, Wo)


def conv2d(x, w_hwio, *, stride=1, pad=0):
    """Conv2d (bias=False).  x: NHWC, w: (kh, kw, Cin, Cout)."""
    kh, kw, cin, cout = w_hwio.shape
    patches, (N, Ho, Wo) = im2col(x, kh, kw, stride, pad)
    y = pallas_matmul(patches, w_hwio.reshape(kh * kw * cin, cout))
    return y.reshape(N, Ho, Wo, cout)


def conv_transpose2d_s2(x, w_pt):
    """ConvTranspose2d(stride=2, k=3, padding=1, output_padding=1, bias=False)
    via 4-phase subpixel decomposition (no zero-dilated buffer: ~4x fewer MXU
    flops and im2col bytes).  x: NHWC, w_pt: PyTorch (Cin, Cout, 3, 3)."""
    cin, cout, kh, kw = w_pt.shape
    assert (kh, kw) == (3, 3)
    N, H, W, C = x.shape
    assert C == cin
    # Equivalent forward-conv weight: spatial flip, laid out (kh, kw, Cin, Cout).
    w_eq = jnp.flip(w_pt, axis=(2, 3)).transpose(2, 3, 0, 1)

    def taps(rows, cols):
        return jnp.stack([jnp.stack([w_eq[i, j] for j in cols], axis=0)
                          for i in rows], axis=0)      # (len(rows), len(cols), Cin, Cout)

    # out[2m+a, 2n+b]:  a=0 uses w_eq row 1 @ x[m];  a=1 uses rows 0@x[m], 2@x[m+1]
    # (columns analogous; the "+1" taps read a zero pad on the bottom/right).
    p00 = conv2d(x, taps([1], [1]),    stride=1, pad=((0, 0), (0, 0)))
    p01 = conv2d(x, taps([1], [0, 2]), stride=1, pad=((0, 0), (0, 1)))
    p10 = conv2d(x, taps([0, 2], [1]), stride=1, pad=((0, 1), (0, 0)))
    p11 = conv2d(x, taps([0, 2], [0, 2]), stride=1, pad=((0, 1), (0, 1)))

    y = jnp.zeros((N, 2 * H, 2 * W, cout), jnp.float32)
    y = y.at[:, 0::2, 0::2].set(p00)
    y = y.at[:, 0::2, 1::2].set(p01)
    y = y.at[:, 1::2, 0::2].set(p10)
    y = y.at[:, 1::2, 1::2].set(p11)
    return y


def refl_pad(x, p):
    return jnp.pad(x, ((0, 0), (p, p), (p, p), (0, 0)), mode='reflect')


# ------------------------------ Generator model ------------------------------

def init_params(key, channels):
    C = channels
    ks = jax.random.split(key, 7)

    def w(k, shape, fan_in):
        return (jax.random.normal(k, shape, jnp.float32)
                * (1.0 / jnp.sqrt(jnp.float32(fan_in))))

    return {
        # Conv2d weights, stored directly as HWIO.
        'conv1_w': w(ks[0], (7, 7, 3, C), 7 * 7 * 3),
        'conv2_w': w(ks[1], (3, 3, C, 2 * C), 3 * 3 * C),
        'conv3_w': w(ks[2], (3, 3, 2 * C, 4 * C), 3 * 3 * 2 * C),
        # ConvTranspose2d weights in PyTorch layout (Cin, Cout, kh, kw).
        'deconv1_w': w(ks[3], (4 * C, 2 * C, 3, 3), 4 * C * 3 * 3),
        'deconv2_w': w(ks[4], (2 * C, C, 3, 3), 2 * C * 3 * 3),
        # Final Conv2d (has bias) + tanh.
        'conv_out_w': w(ks[5], (7, 7, C, 3), 7 * 7 * C),
        'conv_out_b': w(ks[6], (1, 3), 7 * 7 * C),
        # ResidualBlock's own conv weights exist in the PyTorch module but are
        # dead code in its forward (results overwritten), so they are omitted.
    }


def generator_forward(params, x_nchw, residual_blocks):
    x = jnp.transpose(x_nchw, (0, 2, 3, 1)).astype(jnp.float32)   # NCHW -> NHWC

    x = refl_pad(x, 3)
    x = conv2d(x, params['conv1_w'], stride=1, pad=0)
    x = instnorm_nhwc(x, relu=True)

    x = conv2d(x, params['conv2_w'], stride=2, pad=1)
    x = instnorm_nhwc(x, relu=True)

    x = conv2d(x, params['conv3_w'], stride=2, pad=1)
    x = instnorm_nhwc(x, relu=True)

    # ResidualBlock.forward == x + InstanceNorm2d(x); all iterations fused
    # into a single VMEM-resident Pallas kernel (one HBM round-trip total).
    x = residual_chain_nhwc(x, residual_blocks)

    x = conv_transpose2d_s2(x, params['deconv1_w'])
    x = instnorm_nhwc(x, relu=True)

    x = conv_transpose2d_s2(x, params['deconv2_w'])
    x = instnorm_nhwc(x, relu=True)

    x = refl_pad(x, 3)
    kh, kw, cin, cout = params['conv_out_w'].shape
    patches, (N, Ho, Wo) = im2col(x, kh, kw, 1, 0)
    y = pallas_matmul(patches,
                      params['conv_out_w'].reshape(kh * kw * cin, cout),
                      bias=params['conv_out_b'], apply_tanh=True)   # fused epilogue
    y = y.reshape(N, Ho, Wo, cout)
    return jnp.transpose(y, (0, 3, 1, 2))                           # NHWC -> NCHW


# ----------------------------------- main ------------------------------------

if __name__ == "__main__":
    key = jax.random.PRNGKey(0)
    pkey, xkey = jax.random.split(key)

    channels = 8            # small stand-in for the default 64
    residual_blocks = 3     # small stand-in for the default 9
    params = init_params(pkey, channels)

    x = jax.random.normal(xkey, (2, 3, 16, 16), jnp.float32)        # NCHW input

    fwd = jax.jit(generator_forward, static_argnums=2)
    out = jax.block_until_ready(fwd(params, x, residual_blocks))

    assert out.shape == (2, 3, 16, 16), out.shape
    assert bool(jnp.all(jnp.isfinite(out)))
    assert bool(jnp.all(jnp.abs(out) <= 1.0))                       # tanh range
    print("KERNEL_OK")
</pallas_src>

<mosaic_0001>
module attributes {stable_mosaic.version = 11 : i64} {
  func.func @_matmul_kernel(%arg0: i32, %arg1: i32, %arg2: i32, %arg3: memref<256x256xbf16, #tpu.memory_space<vmem>>, %arg4: memref<256x128xbf16, #tpu.memory_space<vmem>>, %arg5: memref<1x128xf32, #tpu.memory_space<vmem>>, %arg6: memref<256x128xf32, #tpu.memory_space<vmem>>, %arg7: memref<256x128xf32, #tpu.memory_space<vmem>>) attributes {dimension_semantics = [#tpu.dimension_semantics<parallel>, #tpu.dimension_semantics<parallel>, #tpu.dimension_semantics<arbitrary>], iteration_bounds = array<i64: 2, 1, 1>, scalar_prefetch = 0 : i64, scratch_operands = 1 : i64, tpu.core_type = #tpu.core_type<tc>, window_params = [{transform_indices = @transform_0, window_bounds = array<i64: 256, 256>}, {transform_indices = @transform_1, window_bounds = array<i64: 256, 128>}, {transform_indices = @transform_2, window_bounds = array<i64: 1, 128>}, {transform_indices = @transform_3, window_bounds = array<i64: 256, 128>}]} {
    %c0_i32 = arith.constant 0 : i32
    %0 = arith.cmpi eq, %arg2, %c0_i32 : i32
    %1 = arith.extui %0 : i1 to i32
    %c0_i32_0 = arith.constant 0 : i32
    %2 = arith.cmpi ne, %1, %c0_i32_0 : i32
    scf.if %2 {
      %cst_10 = arith.constant 0.000000e+00 : f32
      %12 = vector.broadcast %cst_10 : f32 to vector<256x128xf32>
      %c0_11 = arith.constant 0 : index
      %c0_12 = arith.constant 0 : index
      %13 = vector.load %arg7[%c0_11, %c0_12] : memref<256x128xf32, #tpu.memory_space<vmem>>, vector<256x128xf32>
      tpu.vector_store %arg7[%c0_11, %c0_12], %12 {strides = array<i32>} : memref<256x128xf32, #tpu.memory_space<vmem>>, vector<256x128xf32>,
    } else {
    }
    %c0 = arith.constant 0 : index
    %c0_1 = arith.constant 0 : index
    %3 = vector.load %arg7[%c0, %c0_1] : memref<256x128xf32, #tpu.memory_space<vmem>>, vector<256x128xf32>
    %c0_2 = arith.constant 0 : index
    %c0_3 = arith.constant 0 : index
    %4 = vector.load %arg3[%c0_2, %c0_3] : memref<256x256xbf16, #tpu.memory_space<vmem>>, vector<256x256xbf16>
    %c0_4 = arith.constant 0 : index
    %c0_5 = arith.constant 0 : index
    %5 = vector.load %arg4[%c0_4, %c0_5] : memref<256x128xbf16, #tpu.memory_space<vmem>>, vector<256x128xbf16>
    %cst = arith.constant dense<0.000000e+00> : vector<256x128xf32>
    %6 = tpu.matmul %4, %5, %cst {dimension_numbers = #tpu.dot_dimension_numbers<[1], [0], [0], [1], [0, 0, 1, 1], [], []>} : vector<256x256xbf16>, vector<256x128xbf16>, vector<256x128xf32> -> vector<256x128xf32>
    %7 = arith.addf %3, %6 : vector<256x128xf32>
    %c0_6 = arith.constant 0 : index
    %c0_7 = arith.constant 0 : index
    %8 = vector.load %arg7[%c0_6, %c0_7] : memref<256x128xf32, #tpu.memory_space<vmem>>, vector<256x128xf32>
    tpu.vector_store %arg7[%c0_6, %c0_7], %7 {strides = array<i32>} : memref<256x128xf32, #tpu.memory_space<vmem>>, vector<256x128xf32>,
    %c0_i32_8 = arith.constant 0 : i32
    %9 = arith.cmpi eq, %arg2, %c0_i32_8 : i32
    %10 = arith.extui %9 : i1 to i32
    %c0_i32_9 = arith.constant 0 : i32
    %11 = arith.cmpi ne, %10, %c0_i32_9 : i32
    scf.if %11 {
      %c0_10 = arith.constant 0 : index
      %c0_11 = arith.constant 0 : index
      %12 = vector.load %arg7[%c0_10, %c0_11] : memref<256x128xf32, #tpu.memory_space<vmem>>, vector<256x128xf32>
      %c0_12 = arith.constant 0 : index
      %c0_13 = arith.constant 0 : index
      %13 = vector.load %arg5[%c0_12, %c0_13] : memref<1x128xf32, #tpu.memory_space<vmem>>, vector<1x128xf32>
      %14 = vector.broadcast %13 : vector<1x128xf32> to vector<256x128xf32>
      %15 = arith.addf %12, %14 : vector<256x128xf32>
      %c0_14 = arith.constant 0 : index
      %c0_15 = arith.constant 0 : index
      %16 = vector.load %arg6[%c0_14, %c0_15] : memref<256x128xf32, #tpu.memory_space<vmem>>, vector<256x128xf32>
      tpu.vector_store %arg6[%c0_14, %c0_15], %15 {strides = array<i32>} : memref<256x128xf32, #tpu.memory_space<vmem>>, vector<256x128xf32>,
    } else {
    }
    return
  }
  func.func @transform_0(%arg0: i32, %arg1: i32, %arg2: i32) -> (i32, i32) {
    %c0_i32 = arith.constant 0 : i32
    return %arg0, %arg2 : i32, i32
  }
  func.func @transform_1(%arg0: i32, %arg1: i32, %arg2: i32) -> (i32, i32) {
    %c0_i32 = arith.constant 0 : i32
    return %arg2, %arg1 : i32, i32
  }
  func.func @transform_2(%arg0: i32, %arg1: i32, %arg2: i32) -> (i32, i32) {
    %c0_i32 = arith.constant 0 : i32
    %c0_i32_0 = arith.constant 0 : i32
    return %c0_i32, %arg1 : i32, i32
  }
  func.func @transform_3(%arg0: i32, %arg1: i32, %arg2: i32) -> (i32, i32) {
    %c0_i32 = arith.constant 0 : i32
    return %arg0, %arg1 : i32, i32
  }
}

module attributes {stable_mosaic.version = 11 : i64} {
  func.func @_in_stats_kernel(%arg0: i32, %arg1: i32, %arg2: memref<1x256x8xf32, #tpu.memory_space<vmem>>, %arg3: memref<1x1x8xf32, #tpu.memory_space<vmem>>, %arg4: memref<1x1x8xf32, #tpu.memory_space<vmem>>) attributes {dimension_semantics = [#tpu.dimension_semantics<parallel>, #tpu.dimension_semantics<arbitrary>], iteration_bounds = array<i64: 2, 1>, scalar_prefetch = 0 : i64, scratch_operands = 0 : i64, tpu.core_type = #tpu.core_type<tc>, window_params = [{transform_indices = @transform_0, window_bounds = array<i64: 1, 256, 8>}, {transform_indices = @transform_1, window_bounds = array<i64: 1, 1, 8>}, {transform_indices = @transform_2, window_bounds = array<i64: 1, 1, 8>}]} {
    %c0_i32 = arith.constant 0 : i32
    %0 = arith.cmpi eq, %arg1, %c0_i32 : i32
    %1 = arith.extui %0 : i1 to i32
    %c0_i32_0 = arith.constant 0 : i32
    %2 = arith.cmpi ne, %1, %c0_i32_0 : i32
    scf.if %2 {
      %cst_18 = arith.constant 0.000000e+00 : f32
      %18 = vector.broadcast %cst_18 : f32 to vector<1x1x8xf32>
      %c0_19 = arith.constant 0 : index
      %c0_20 = arith.constant 0 : index
      %c0_21 = arith.constant 0 : index
      %19 = vector.load %arg3[%c0_19, %c0_20, %c0_21] : memref<1x1x8xf32, #tpu.memory_space<vmem>>, vector<1x1x8xf32>
      tpu.vector_store %arg3[%c0_19, %c0_20, %c0_21], %18 {strides = array<i32>} : memref<1x1x8xf32, #tpu.memory_space<vmem>>, vector<1x1x8xf32>,
      %cst_22 = arith.constant 0.000000e+00 : f32
      %20 = vector.broadcast %cst_22 : f32 to vector<1x1x8xf32>
      %c0_23 = arith.constant 0 : index
      %c0_24 = arith.constant 0 : index
      %c0_25 = arith.constant 0 : index
      %21 = vector.load %arg4[%c0_23, %c0_24, %c0_25] : memref<1x1x8xf32, #tpu.memory_space<vmem>>, vector<1x1x8xf32>
      tpu.vector_store %arg4[%c0_23, %c0_24, %c0_25], %20 {strides = array<i32>} : memref<1x1x8xf32, #tpu.memory_space<vmem>>, vector<1x1x8xf32>,
    } else {
    }
    %c0 = arith.constant 0 : index
    %c0_1 = arith.constant 0 : index
    %c0_2 = arith.constant 0 : index
    %3 = vector.load %arg2[%c0, %c0_1, %c0_2] : memref<1x256x8xf32, #tpu.memory_space<vmem>>, vector<1x256x8xf32>
    %c0_3 = arith.constant 0 : index
    %c0_4 = arith.constant 0 : index
    %c0_5 = arith.constant 0 : index
    %4 = vector.load %arg3[%c0_3, %c0_4, %c0_5] : memref<1x1x8xf32, #tpu.memory_space<vmem>>, vector<1x1x8xf32>
    %cst = arith.constant dense<0.000000e+00> : vector<1x8xf32>
    %5 = vector.multi_reduction <add>, %3, %cst [1] : vector<1x256x8xf32> to vector<1x8xf32>
    %6 = vector.shape_cast %5 : vector<1x8xf32> to vector<1x1x8xf32>
    %7 = arith.addf %4, %6 : vector<1x1x8xf32>
    %c0_6 = arith.constant 0 : index
    %c0_7 = arith.constant 0 : index
    %c0_8 = arith.constant 0 : index
    %8 = vector.load %arg3[%c0_6, %c0_7, %c0_8] : memref<1x1x8xf32, #tpu.memory_space<vmem>>, vector<1x1x8xf32>
    tpu.vector_store %arg3[%c0_6, %c0_7, %c0_8], %7 {strides = array<i32>} : memref<1x1x8xf32, #tpu.memory_space<vmem>>, vector<1x1x8xf32>,
    %c0_9 = arith.constant 0 : index
    %c0_10 = arith.constant 0 : index
    %c0_11 = arith.constant 0 : index
    %9 = vector.load %arg4[%c0_9, %c0_10, %c0_11] : memref<1x1x8xf32, #tpu.memory_space<vmem>>, vector<1x1x8xf32>
    %10 = arith.mulf %3, %3 : vector<1x256x8xf32>
    %cst_12 = arith.constant dense<0.000000e+00> : vector<1x8xf32>
    %11 = vector.multi_reduction <add>, %10, %cst_12 [1] : vector<1x256x8xf32> to vector<1x8xf32>
    %12 = vector.shape_cast %11 : vector<1x8xf32> to vector<1x1x8xf32>
    %13 = arith.addf %9, %12 : vector<1x1x8xf32>
    %c0_13 = arith.constant 0 : index
    %c0_14 = arith.constant 0 : index
    %c0_15 = arith.constant 0 : index
    %14 = vector.load %arg4[%c0_13, %c0_14, %c0_15] : memref<1x1x8xf32, #tpu.memory_space<vmem>>, vector<1x1x8xf32>
    tpu.vector_store %arg4[%c0_13, %c0_14, %c0_15], %13 {strides = array<i32>} : memref<1x1x8xf32, #tpu.memory_space<vmem>>, vector<1x1x8xf32>,
    %c0_i32_16 = arith.constant 0 : i32
    %15 = arith.cmpi eq, %arg1, %c0_i32_16 : i32
    %16 = arith.extui %15 : i1 to i32
    %c0_i32_17 = arith.constant 0 : i32
    %17 = arith.cmpi ne, %16, %c0_i32_17 : i32
    scf.if %17 {
      %c0_18 = arith.constant 0 : index
      %c0_19 = arith.constant 0 : index
      %c0_20 = arith.constant 0 : index
      %18 = vector.load %arg3[%c0_18, %c0_19, %c0_20] : memref<1x1x8xf32, #tpu.memory_space<vmem>>, vector<1x1x8xf32>
      %cst_21 = arith.constant 3.906250e-03 : f32
      %19 = vector.broadcast %cst_21 : f32 to vector<1x1x8xf32>
      %20 = arith.mulf %18, %19 : vector<1x1x8xf32>
      %c0_22 = arith.constant 0 : index
      %c0_23 = arith.constant 0 : index
      %c0_24 = arith.constant 0 : index
      %21 = vector.load %arg4[%c0_22, %c0_23, %c0_24] : memref<1x1x8xf32, #tpu.memory_space<vmem>>, vector<1x1x8xf32>
      %cst_25 = arith.constant 3.906250e-03 : f32
      %22 = vector.broadcast %cst_25 : f32 to vector<1x1x8xf32>
      %23 = arith.mulf %21, %22 : vector<1x1x8xf32>
      %24 = arith.mulf %20, %20 : vector<1x1x8xf32>
      %25 = arith.subf %23, %24 : vector<1x1x8xf32>
      %cst_26 = arith.constant 0.000000e+00 : f32
      %26 = vector.broadcast %cst_26 : f32 to vector<1x1x8xf32>
      %27 = arith.maximumf %25, %26 : vector<1x1x8xf32>
      %c0_27 = arith.constant 0 : index
      %c0_28 = arith.constant 0 : index
      %c0_29 = arith.constant 0 : index
      %28 = vector.load %arg3[%c0_27, %c0_28, %c0_29] : memref<1x1x8xf32, #tpu.memory_space<vmem>>, vector<1x1x8xf32>
      tpu.vector_store %arg3[%c0_27, %c0_28, %c0_29], %20 {strides = array<i32>} : memref<1x1x8xf32, #tpu.memory_space<vmem>>, vector<1x1x8xf32>,
      %cst_30 = arith.constant 9.99999974E-6 : f32
      %29 = vector.broadcast %cst_30 : f32 to vector<1x1x8xf32>
      %30 = arith.addf %27, %29 : vector<1x1x8xf32>
      %31 = math.rsqrt %30 : vector<1x1x8xf32>
      %c0_31 = arith.constant 0 : index
      %c0_32 = arith.constant 0 : index
      %c0_33 = arith.constant 0 : index
      %32 = vector.load %arg4[%c0_31, %c0_32, %c0_33] : memref<1x1x8xf32, #tpu.memory_space<vmem>>, vector<1x1x8xf32>
      tpu.vector_store %arg4[%c0_31, %c0_32, %c0_33], %31 {strides = array<i32>} : memref<1x1x8xf32, #tpu.memory_space<vmem>>, vector<1x1x8xf32>,
    } else {
    }
    return
  }
  func.func @transform_0(%arg0: i32, %arg1: i32) -> (i32, i32, i32) {
    %c0_i32 = arith.constant 0 : i32
    %c0_i32_0 = arith.constant 0 : i32
    return %arg0, %arg1, %c0_i32 : i32, i32, i32
  }
  func.func @transform_1(%arg0: i32, %arg1: i32) -> (i32, i32, i32) {
    %c0_i32 = arith.constant 0 : i32
    %c0_i32_0 = arith.constant 0 : i32
    %c0_i32_1 = arith.constant 0 : i32
    return %arg0, %c0_i32, %c0_i32_0 : i32, i32, i32
  }
  func.func @transform_2(%arg0: i32, %arg1: i32) -> (i32, i32, i32) {
    %c0_i32 = arith.constant 0 : i32
    %c0_i32_0 = arith.constant 0 : i32
    %c0_i32_1 = arith.constant 0 : i32
    return %arg0, %c0_i32, %c0_i32_0 : i32, i32, i32
  }
}

module attributes {stable_mosaic.version = 11 : i64} {
  func.func @_in_apply_kernel(%arg0: i32, %arg1: i32, %arg2: memref<1x256x8xf32, #tpu.memory_space<vmem>>, %arg3: memref<1x1x8xf32, #tpu.memory_space<vmem>>, %arg4: memref<1x1x8xf32, #tpu.memory_space<vmem>>, %arg5: memref<1x256x8xf32, #tpu.memory_space<vmem>>) attributes {dimension_semantics = [#tpu.dimension_semantics<parallel>, #tpu.dimension_semantics<parallel>], iteration_bounds = array<i64: 2, 1>, scalar_prefetch = 0 : i64, scratch_operands = 0 : i64, tpu.core_type = #tpu.core_type<tc>, window_params = [{transform_indices = @transform_0, window_bounds = array<i64: 1, 256, 8>}, {transform_indices = @transform_1, window_bounds = array<i64: 1, 1, 8>}, {transform_indices = @transform_2, window_bounds = array<i64: 1, 1, 8>}, {transform_indices = @transform_3, window_bounds = array<i64: 1, 256, 8>}]} {
    %c0 = arith.constant 0 : index
    %c0_0 = arith.constant 0 : index
    %c0_1 = arith.constant 0 : index
    %0 = vector.load %arg2[%c0, %c0_0, %c0_1] : memref<1x256x8xf32, #tpu.memory_space<vmem>>, vector<1x256x8xf32>
    %c0_2 = arith.constant 0 : index
    %c0_3 = arith.constant 0 : index
    %c0_4 = arith.constant 0 : index
    %1 = vector.load %arg3[%c0_2, %c0_3, %c0_4] : memref<1x1x8xf32, #tpu.memory_space<vmem>>, vector<1x1x8xf32>
    %2 = vector.broadcast %1 : vector<1x1x8xf32> to vector<1x256x8xf32>
    %3 = arith.subf %0, %2 : vector<1x256x8xf32>
    %c0_5 = arith.constant 0 : index
    %c0_6 = arith.constant 0 : index
    %c0_7 = arith.constant 0 : index
    %4 = vector.load %arg4[%c0_5, %c0_6, %c0_7] : memref<1x1x8xf32, #tpu.memory_space<vmem>>, vector<1x1x8xf32>
    %5 = vector.broadcast %4 : vector<1x1x8xf32> to vector<1x256x8xf32>
    %6 = arith.mulf %3, %5 : vector<1x256x8xf32>
    %cst = arith.constant 0.000000e+00 : f32
    %7 = vector.broadcast %cst : f32 to vector<1x256x8xf32>
    %8 = arith.maximumf %6, %7 : vector<1x256x8xf32>
    %c0_8 = arith.constant 0 : index
    %c0_9 = arith.constant 0 : index
    %c0_10 = arith.constant 0 : index
    %9 = vector.load %arg5[%c0_8, %c0_9, %c0_10] : memref<1x256x8xf32, #tpu.memory_space<vmem>>, vector<1x256x8xf32>
    tpu.vector_store %arg5[%c0_8, %c0_9, %c0_10], %8 {strides = array<i32>} : memref<1x256x8xf32, #tpu.memory_space<vmem>>, vector<1x256x8xf32>,
    return
  }
  func.func @transform_0(%arg0: i32, %arg1: i32) -> (i32, i32, i32) {
    %c0_i32 = arith.constant 0 : i32
    %c0_i32_0 = arith.constant 0 : i32
    return %arg0, %arg1, %c0_i32 : i32, i32, i32
  }
  func.func @transform_1(%arg0: i32, %arg1: i32) -> (i32, i32, i32) {
    %c0_i32 = arith.constant 0 : i32
    %c0_i32_0 = arith.constant 0 : i32
    %c0_i32_1 = arith.constant 0 : i32
    return %arg0, %c0_i32, %c0_i32_0 : i32, i32, i32
  }
  func.func @transform_2(%arg0: i32, %arg1: i32) -> (i32, i32, i32) {
    %c0_i32 = arith.constant 0 : i32
    %c0_i32_0 = arith.constant 0 : i32
    %c0_i32_1 = arith.constant 0 : i32
    return %arg0, %c0_i32, %c0_i32_0 : i32, i32, i32
  }
  func.func @transform_3(%arg0: i32, %arg1: i32) -> (i32, i32, i32) {
    %c0_i32 = arith.constant 0 : i32
    %c0_i32_0 = arith.constant 0 : i32
    return %arg0, %arg1, %c0_i32 : i32, i32, i32
  }
}

module attributes {stable_mosaic.version = 11 : i64} {
  func.func @_matmul_kernel(%arg0: i32, %arg1: i32, %arg2: i32, %arg3: memref<128x128xbf16, #tpu.memory_space<vmem>>, %arg4: memref<128x128xbf16, #tpu.memory_space<vmem>>, %arg5: memref<1x128xf32, #tpu.memory_space<vmem>>, %arg6: memref<128x128xf32, #tpu.memory_space<vmem>>, %arg7: memref<128x128xf32, #tpu.memory_space<vmem>>) attributes {dimension_semantics = [#tpu.dimension_semantics<parallel>, #tpu.dimension_semantics<parallel>, #tpu.dimension_semantics<arbitrary>], iteration_bounds = array<i64: 1, 1, 1>, scalar_prefetch = 0 : i64, scratch_operands = 1 : i64, tpu.core_type = #tpu.core_type<tc>, window_params = [{transform_indices = @transform_0, window_bounds = array<i64: 128, 128>}, {transform_indices = @transform_1, window_bounds = array<i64: 128, 128>}, {transform_indices = @transform_2, window_bounds = array<i64: 1, 128>}, {transform_indices = @transform_3, window_bounds = array<i64: 128, 128>}]} {
    %c0_i32 = arith.constant 0 : i32
    %0 = arith.cmpi eq, %arg2, %c0_i32 : i32
    %1 = arith.extui %0 : i1 to i32
    %c0_i32_0 = arith.constant 0 : i32
    %2 = arith.cmpi ne, %1, %c0_i32_0 : i32
    scf.if %2 {
      %cst_10 = arith.constant 0.000000e+00 : f32
      %12 = vector.broadcast %cst_10 : f32 to vector<128x128xf32>
      %c0_11 = arith.constant 0 : index
      %c0_12 = arith.constant 0 : index
      %13 = vector.load %arg7[%c0_11, %c0_12] : memref<128x128xf32, #tpu.memory_space<vmem>>, vector<128x128xf32>
      tpu.vector_store %arg7[%c0_11, %c0_12], %12 {strides = array<i32>} : memref<128x128xf32, #tpu.memory_space<vmem>>, vector<128x128xf32>,
    } else {
    }
    %c0 = arith.constant 0 : index
    %c0_1 = arith.constant 0 : index
    %3 = vector.load %arg7[%c0, %c0_1] : memref<128x128xf32, #tpu.memory_space<vmem>>, vector<128x128xf32>
    %c0_2 = arith.constant 0 : index
    %c0_3 = arith.constant 0 : index
    %4 = vector.load %arg3[%c0_2, %c0_3] : memref<128x128xbf16, #tpu.memory_space<vmem>>, vector<128x128xbf16>
    %c0_4 = arith.constant 0 : index
    %c0_5 = arith.constant 0 : index
    %5 = vector.load %arg4[%c0_4, %c0_5] : memref<128x128xbf16, #tpu.memory_space<vmem>>, vector<128x128xbf16>
    %cst = arith.constant dense<0.000000e+00> : vector<128x128xf32>
    %6 = tpu.matmul %4, %5, %cst {dimension_numbers = #tpu.dot_dimension_numbers<[1], [0], [0], [1], [0, 0, 1, 1], [], []>} : vector<128x128xbf16>, vector<128x128xbf16>, vector<128x128xf32> -> vector<128x128xf32>
    %7 = arith.addf %3, %6 : vector<128x128xf32>
    %c0_6 = arith.constant 0 : index
    %c0_7 = arith.constant 0 : index
    %8 = vector.load %arg7[%c0_6, %c0_7] : memref<128x128xf32, #tpu.memory_space<vmem>>, vector<128x128xf32>
    tpu.vector_store %arg7[%c0_6, %c0_7], %7 {strides = array<i32>} : memref<128x128xf32, #tpu.memory_space<vmem>>, vector<128x128xf32>,
    %c0_i32_8 = arith.constant 0 : i32
    %9 = arith.cmpi eq, %arg2, %c0_i32_8 : i32
    %10 = arith.extui %9 : i1 to i32
    %c0_i32_9 = arith.constant 0 : i32
    %11 = arith.cmpi ne, %10, %c0_i32_9 : i32
    scf.if %11 {
      %c0_10 = arith.constant 0 : index
      %c0_11 = arith.constant 0 : index
      %12 = vector.load %arg7[%c0_10, %c0_11] : memref<128x128xf32, #tpu.memory_space<vmem>>, vector<128x128xf32>
      %c0_12 = arith.constant 0 : index
      %c0_13 = arith.constant 0 : index
      %13 = vector.load %arg5[%c0_12, %c0_13] : memref<1x128xf32, #tpu.memory_space<vmem>>, vector<1x128xf32>
      %14 = vector.broadcast %13 : vector<1x128xf32> to vector<128x128xf32>
      %15 = arith.addf %12, %14 : vector<128x128xf32>
      %c0_14 = arith.constant 0 : index
      %c0_15 = arith.constant 0 : index
      %16 = vector.load %arg6[%c0_14, %c0_15] : memref<128x128xf32, #tpu.memory_space<vmem>>, vector<128x128xf32>
      tpu.vector_store %arg6[%c0_14, %c0_15], %15 {strides = array<i32>} : memref<128x128xf32, #tpu.memory_space<vmem>>, vector<128x128xf32>,
    } else {
    }
    return
  }
  func.func @transform_0(%arg0: i32, %arg1: i32, %arg2: i32) -> (i32, i32) {
    %c0_i32 = arith.constant 0 : i32
    return %arg0, %arg2 : i32, i32
  }
  func.func @transform_1(%arg0: i32, %arg1: i32, %arg2: i32) -> (i32, i32) {
    %c0_i32 = arith.constant 0 : i32
    return %arg2, %arg1 : i32, i32
  }
  func.func @transform_2(%arg0: i32, %arg1: i32, %arg2: i32) -> (i32, i32) {
    %c0_i32 = arith.constant 0 : i32
    %c0_i32_0 = arith.constant 0 : i32
    return %c0_i32, %arg1 : i32, i32
  }
  func.func @transform_3(%arg0: i32, %arg1: i32, %arg2: i32) -> (i32, i32) {
    %c0_i32 = arith.constant 0 : i32
    return %arg0, %arg1 : i32, i32
  }
}

module attributes {stable_mosaic.version = 11 : i64} {
  func.func @_in_stats_kernel(%arg0: i32, %arg1: i32, %arg2: memref<1x64x16xf32, #tpu.memory_space<vmem>>, %arg3: memref<1x1x16xf32, #tpu.memory_space<vmem>>, %arg4: memref<1x1x16xf32, #tpu.memory_space<vmem>>) attributes {dimension_semantics = [#tpu.dimension_semantics<parallel>, #tpu.dimension_semantics<arbitrary>], iteration_bounds = array<i64: 2, 1>, scalar_prefetch = 0 : i64, scratch_operands = 0 : i64, tpu.core_type = #tpu.core_type<tc>, window_params = [{transform_indices = @transform_0, window_bounds = array<i64: 1, 64, 16>}, {transform_indices = @transform_1, window_bounds = array<i64: 1, 1, 16>}, {transform_indices = @transform_2, window_bounds = array<i64: 1, 1, 16>}]} {
    %c0_i32 = arith.constant 0 : i32
    %0 = arith.cmpi eq, %arg1, %c0_i32 : i32
    %1 = arith.extui %0 : i1 to i32
    %c0_i32_0 = arith.constant 0 : i32
    %2 = arith.cmpi ne, %1, %c0_i32_0 : i32
    scf.if %2 {
      %cst_18 = arith.constant 0.000000e+00 : f32
      %18 = vector.broadcast %cst_18 : f32 to vector<1x1x16xf32>
      %c0_19 = arith.constant 0 : index
      %c0_20 = arith.constant 0 : index
      %c0_21 = arith.constant 0 : index
      %19 = vector.load %arg3[%c0_19, %c0_20, %c0_21] : memref<1x1x16xf32, #tpu.memory_space<vmem>>, vector<1x1x16xf32>
      tpu.vector_store %arg3[%c0_19, %c0_20, %c0_21], %18 {strides = array<i32>} : memref<1x1x16xf32, #tpu.memory_space<vmem>>, vector<1x1x16xf32>,
      %cst_22 = arith.constant 0.000000e+00 : f32
      %20 = vector.broadcast %cst_22 : f32 to vector<1x1x16xf32>
      %c0_23 = arith.constant 0 : index
      %c0_24 = arith.constant 0 : index
      %c0_25 = arith.constant 0 : index
      %21 = vector.load %arg4[%c0_23, %c0_24, %c0_25] : memref<1x1x16xf32, #tpu.memory_space<vmem>>, vector<1x1x16xf32>
      tpu.vector_store %arg4[%c0_23, %c0_24, %c0_25], %20 {strides = array<i32>} : memref<1x1x16xf32, #tpu.memory_space<vmem>>, vector<1x1x16xf32>,
    } else {
    }
    %c0 = arith.constant 0 : index
    %c0_1 = arith.constant 0 : index
    %c0_2 = arith.constant 0 : index
    %3 = vector.load %arg2[%c0, %c0_1, %c0_2] : memref<1x64x16xf32, #tpu.memory_space<vmem>>, vector<1x64x16xf32>
    %c0_3 = arith.constant 0 : index
    %c0_4 = arith.constant 0 : index
    %c0_5 = arith.constant 0 : index
    %4 = vector.load %arg3[%c0_3, %c0_4, %c0_5] : memref<1x1x16xf32, #tpu.memory_space<vmem>>, vector<1x1x16xf32>
    %cst = arith.constant dense<0.000000e+00> : vector<1x16xf32>
    %5 = vector.multi_reduction <add>, %3, %cst [1] : vector<1x64x16xf32> to vector<1x16xf32>
    %6 = vector.shape_cast %5 : vector<1x16xf32> to vector<1x1x16xf32>
    %7 = arith.addf %4, %6 : vector<1x1x16xf32>
    %c0_6 = arith.constant 0 : index
    %c0_7 = arith.constant 0 : index
    %c0_8 = arith.constant 0 : index
    %8 = vector.load %arg3[%c0_6, %c0_7, %c0_8] : memref<1x1x16xf32, #tpu.memory_space<vmem>>, vector<1x1x16xf32>
    tpu.vector_store %arg3[%c0_6, %c0_7, %c0_8], %7 {strides = array<i32>} : memref<1x1x16xf32, #tpu.memory_space<vmem>>, vector<1x1x16xf32>,
    %c0_9 = arith.constant 0 : index
    %c0_10 = arith.constant 0 : index
    %c0_11 = arith.constant 0 : index
    %9 = vector.load %arg4[%c0_9, %c0_10, %c0_11] : memref<1x1x16xf32, #tpu.memory_space<vmem>>, vector<1x1x16xf32>
    %10 = arith.mulf %3, %3 : vector<1x64x16xf32>
    %cst_12 = arith.constant dense<0.000000e+00> : vector<1x16xf32>
    %11 = vector.multi_reduction <add>, %10, %cst_12 [1] : vector<1x64x16xf32> to vector<1x16xf32>
    %12 = vector.shape_cast %11 : vector<1x16xf32> to vector<1x1x16xf32>
    %13 = arith.addf %9, %12 : vector<1x1x16xf32>
    %c0_13 = arith.constant 0 : index
    %c0_14 = arith.constant 0 : index
    %c0_15 = arith.constant 0 : index
    %14 = vector.load %arg4[%c0_13, %c0_14, %c0_15] : memref<1x1x16xf32, #tpu.memory_space<vmem>>, vector<1x1x16xf32>
    tpu.vector_store %arg4[%c0_13, %c0_14, %c0_15], %13 {strides = array<i32>} : memref<1x1x16xf32, #tpu.memory_space<vmem>>, vector<1x1x16xf32>,
    %c0_i32_16 = arith.constant 0 : i32
    %15 = arith.cmpi eq, %arg1, %c0_i32_16 : i32
    %16 = arith.extui %15 : i1 to i32
    %c0_i32_17 = arith.constant 0 : i32
    %17 = arith.cmpi ne, %16, %c0_i32_17 : i32
    scf.if %17 {
      %c0_18 = arith.constant 0 : index
      %c0_19 = arith.constant 0 : index
      %c0_20 = arith.constant 0 : index
      %18 = vector.load %arg3[%c0_18, %c0_19, %c0_20] : memref<1x1x16xf32, #tpu.memory_space<vmem>>, vector<1x1x16xf32>
      %cst_21 = arith.constant 1.562500e-02 : f32
      %19 = vector.broadcast %cst_21 : f32 to vector<1x1x16xf32>
      %20 = arith.mulf %18, %19 : vector<1x1x16xf32>
      %c0_22 = arith.constant 0 : index
      %c0_23 = arith.constant 0 : index
      %c0_24 = arith.constant 0 : index
      %21 = vector.load %arg4[%c0_22, %c0_23, %c0_24] : memref<1x1x16xf32, #tpu.memory_space<vmem>>, vector<1x1x16xf32>
      %cst_25 = arith.constant 1.562500e-02 : f32
      %22 = vector.broadcast %cst_25 : f32 to vector<1x1x16xf32>
      %23 = arith.mulf %21, %22 : vector<1x1x16xf32>
      %24 = arith.mulf %20, %20 : vector<1x1x16xf32>
      %25 = arith.subf %23, %24 : vector<1x1x16xf32>
      %cst_26 = arith.constant 0.000000e+00 : f32
      %26 = vector.broadcast %cst_26 : f32 to vector<1x1x16xf32>
      %27 = arith.maximumf %25, %26 : vector<1x1x16xf32>
      %c0_27 = arith.constant 0 : index
      %c0_28 = arith.constant 0 : index
      %c0_29 = arith.constant 0 : index
      %28 = vector.load %arg3[%c0_27, %c0_28, %c0_29] : memref<1x1x16xf32, #tpu.memory_space<vmem>>, vector<1x1x16xf32>
      tpu.vector_store %arg3[%c0_27, %c0_28, %c0_29], %20 {strides = array<i32>} : memref<1x1x16xf32, #tpu.memory_space<vmem>>, vector<1x1x16xf32>,
      %cst_30 = arith.constant 9.99999974E-6 : f32
      %29 = vector.broadcast %cst_30 : f32 to vector<1x1x16xf32>
      %30 = arith.addf %27, %29 : vector<1x1x16xf32>
      %31 = math.rsqrt %30 : vector<1x1x16xf32>
      %c0_31 = arith.constant 0 : index
      %c0_32 = arith.constant 0 : index
      %c0_33 = arith.constant 0 : index
      %32 = vector.load %arg4[%c0_31, %c0_32, %c0_33] : memref<1x1x16xf32, #tpu.memory_space<vmem>>, vector<1x1x16xf32>
      tpu.vector_store %arg4[%c0_31, %c0_32, %c0_33], %31 {strides = array<i32>} : memref<1x1x16xf32, #tpu.memory_space<vmem>>, vector<1x1x16xf32>,
    } else {
    }
    return
  }
  func.func @transform_0(%arg0: i32, %arg1: i32) -> (i32, i32, i32) {
    %c0_i32 = arith.constant 0 : i32
    %c0_i32_0 = arith.constant 0 : i32
    return %arg0, %arg1, %c0_i32 : i32, i32, i32
  }
  func.func @transform_1(%arg0: i32, %arg1: i32) -> (i32, i32, i32) {
    %c0_i32 = arith.constant 0 : i32
    %c0_i32_0 = arith.constant 0 : i32
    %c0_i32_1 = arith.constant 0 : i32
    return %arg0, %c0_i32, %c0_i32_0 : i32, i32, i32
  }
  func.func @transform_2(%arg0: i32, %arg1: i32) -> (i32, i32, i32) {
    %c0_i32 = arith.constant 0 : i32
    %c0_i32_0 = arith.constant 0 : i32
    %c0_i32_1 = arith.constant 0 : i32
    return %arg0, %c0_i32, %c0_i32_0 : i32, i32, i32
  }
}

module attributes {stable_mosaic.version = 11 : i64} {
  func.func @_in_apply_kernel(%arg0: i32, %arg1: i32, %arg2: memref<1x64x16xf32, #tpu.memory_space<vmem>>, %arg3: memref<1x1x16xf32, #tpu.memory_space<vmem>>, %arg4: memref<1x1x16xf32, #tpu.memory_space<vmem>>, %arg5: memref<1x64x16xf32, #tpu.memory_space<vmem>>) attributes {dimension_semantics = [#tpu.dimension_semantics<parallel>, #tpu.dimension_semantics<parallel>], iteration_bounds = array<i64: 2, 1>, scalar_prefetch = 0 : i64, scratch_operands = 0 : i64, tpu.core_type = #tpu.core_type<tc>, window_params = [{transform_indices = @transform_0, window_bounds = array<i64: 1, 64, 16>}, {transform_indices = @transform_1, window_bounds = array<i64: 1, 1, 16>}, {transform_indices = @transform_2, window_bounds = array<i64: 1, 1, 16>}, {transform_indices = @transform_3, window_bounds = array<i64: 1, 64, 16>}]} {
    %c0 = arith.constant 0 : index
    %c0_0 = arith.constant 0 : index
    %c0_1 = arith.constant 0 : index
    %0 = vector.load %arg2[%c0, %c0_0, %c0_1] : memref<1x64x16xf32, #tpu.memory_space<vmem>>, vector<1x64x16xf32>
    %c0_2 = arith.constant 0 : index
    %c0_3 = arith.constant 0 : index
    %c0_4 = arith.constant 0 : index
    %1 = vector.load %arg3[%c0_2, %c0_3, %c0_4] : memref<1x1x16xf32, #tpu.memory_space<vmem>>, vector<1x1x16xf32>
    %2 = vector.broadcast %1 : vector<1x1x16xf32> to vector<1x64x16xf32>
    %3 = arith.subf %0, %2 : vector<1x64x16xf32>
    %c0_5 = arith.constant 0 : index
    %c0_6 = arith.constant 0 : index
    %c0_7 = arith.constant 0 : index
    %4 = vector.load %arg4[%c0_5, %c0_6, %c0_7] : memref<1x1x16xf32, #tpu.memory_space<vmem>>, vector<1x1x16xf32>
    %5 = vector.broadcast %4 : vector<1x1x16xf32> to vector<1x64x16xf32>
    %6 = arith.mulf %3, %5 : vector<1x64x16xf32>
    %cst = arith.constant 0.000000e+00 : f32
    %7 = vector.broadcast %cst : f32 to vector<1x64x16xf32>
    %8 = arith.maximumf %6, %7 : vector<1x64x16xf32>
    %c0_8 = arith.constant 0 : index
    %c0_9 = arith.constant 0 : index
    %c0_10 = arith.constant 0 : index
    %9 = vector.load %arg5[%c0_8, %c0_9, %c0_10] : memref<1x64x16xf32, #tpu.memory_space<vmem>>, vector<1x64x16xf32>
    tpu.vector_store %arg5[%c0_8, %c0_9, %c0_10], %8 {strides = array<i32>} : memref<1x64x16xf32, #tpu.memory_space<vmem>>, vector<1x64x16xf32>,
    return
  }
  func.func @transform_0(%arg0: i32, %arg1: i32) -> (i32, i32, i32) {
    %c0_i32 = arith.constant 0 : i32
    %c0_i32_0 = arith.constant 0 : i32
    return %arg0, %arg1, %c0_i32 : i32, i32, i32
  }
  func.func @transform_1(%arg0: i32, %arg1: i32) -> (i32, i32, i32) {
    %c0_i32 = arith.constant 0 : i32
    %c0_i32_0 = arith.constant 0 : i32
    %c0_i32_1 = arith.constant 0 : i32
    return %arg0, %c0_i32, %c0_i32_0 : i32, i32, i32
  }
  func.func @transform_2(%arg0: i32, %arg1: i32) -> (i32, i32, i32) {
    %c0_i32 = arith.constant 0 : i32
    %c0_i32_0 = arith.constant 0 : i32
    %c0_i32_1 = arith.constant 0 : i32
    return %arg0, %c0_i32, %c0_i32_0 : i32, i32, i32
  }
  func.func @transform_3(%arg0: i32, %arg1: i32) -> (i32, i32, i32) {
    %c0_i32 = arith.constant 0 : i32
    %c0_i32_0 = arith.constant 0 : i32
    return %arg0, %arg1, %c0_i32 : i32, i32, i32
  }
}

module attributes {stable_mosaic.version = 11 : i64} {
  func.func @_matmul_kernel(%arg0: i32, %arg1: i32, %arg2: i32, %arg3: memref<128x256xbf16, #tpu.memory_space<vmem>>, %arg4: memref<256x128xbf16, #tpu.memory_space<vmem>>, %arg5: memref<1x128xf32, #tpu.memory_space<vmem>>, %arg6: memref<128x128xf32, #tpu.memory_space<vmem>>, %arg7: memref<128x128xf32, #tpu.memory_space<vmem>>) attributes {dimension_semantics = [#tpu.dimension_semantics<parallel>, #tpu.dimension_semantics<parallel>, #tpu.dimension_semantics<arbitrary>], iteration_bounds = array<i64: 1, 1, 1>, scalar_prefetch = 0 : i64, scratch_operands = 1 : i64, tpu.core_type = #tpu.core_type<tc>, window_params = [{transform_indices = @transform_0, window_bounds = array<i64: 128, 256>}, {transform_indices = @transform_1, window_bounds = array<i64: 256, 128>}, {transform_indices = @transform_2, window_bounds = array<i64: 1, 128>}, {transform_indices = @transform_3, window_bounds = array<i64: 128, 128>}]} {
    %c0_i32 = arith.constant 0 : i32
    %0 = arith.cmpi eq, %arg2, %c0_i32 : i32
    %1 = arith.extui %0 : i1 to i32
    %c0_i32_0 = arith.constant 0 : i32
    %2 = arith.cmpi ne, %1, %c0_i32_0 : i32
    scf.if %2 {
      %cst_10 = arith.constant 0.000000e+00 : f32
      %12 = vector.broadcast %cst_10 : f32 to vector<128x128xf32>
      %c0_11 = arith.constant 0 : index
      %c0_12 = arith.constant 0 : index
      %13 = vector.load %arg7[%c0_11, %c0_12] : memref<128x128xf32, #tpu.memory_space<vmem>>, vector<128x128xf32>
      tpu.vector_store %arg7[%c0_11, %c0_12], %12 {strides = array<i32>} : memref<128x128xf32, #tpu.memory_space<vmem>>, vector<128x128xf32>,
    } else {
    }
    %c0 = arith.constant 0 : index
    %c0_1 = arith.constant 0 : index
    %3 = vector.load %arg7[%c0, %c0_1] : memref<128x128xf32, #tpu.memory_space<vmem>>, vector<128x128xf32>
    %c0_2 = arith.constant 0 : index
    %c0_3 = arith.constant 0 : index
    %4 = vector.load %arg3[%c0_2, %c0_3] : memref<128x256xbf16, #tpu.memory_space<vmem>>, vector<128x256xbf16>
    %c0_4 = arith.constant 0 : index
    %c0_5 = arith.constant 0 : index
    %5 = vector.load %arg4[%c0_4, %c0_5] : memref<256x128xbf16, #tpu.memory_space<vmem>>, vector<256x128xbf16>
    %cst = arith.constant dense<0.000000e+00> : vector<128x128xf32>
    %6 = tpu.matmul %4, %5, %cst {dimension_numbers = #tpu.dot_dimension_numbers<[1], [0], [0], [1], [0, 0, 1, 1], [], []>} : vector<128x256xbf16>, vector<256x128xbf16>, vector<128x128xf32> -> vector<128x128xf32>
    %7 = arith.addf %3, %6 : vector<128x128xf32>
    %c0_6 = arith.constant 0 : index
    %c0_7 = arith.constant 0 : index
    %8 = vector.load %arg7[%c0_6, %c0_7] : memref<128x128xf32, #tpu.memory_space<vmem>>, vector<128x128xf32>
    tpu.vector_store %arg7[%c0_6, %c0_7], %7 {strides = array<i32>} : memref<128x128xf32, #tpu.memory_space<vmem>>, vector<128x128xf32>,
    %c0_i32_8 = arith.constant 0 : i32
    %9 = arith.cmpi eq, %arg2, %c0_i32_8 : i32
    %10 = arith.extui %9 : i1 to i32
    %c0_i32_9 = arith.constant 0 : i32
    %11 = arith.cmpi ne, %10, %c0_i32_9 : i32
    scf.if %11 {
      %c0_10 = arith.constant 0 : index
      %c0_11 = arith.constant 0 : index
      %12 = vector.load %arg7[%c0_10, %c0_11] : memref<128x128xf32, #tpu.memory_space<vmem>>, vector<128x128xf32>
      %c0_12 = arith.constant 0 : index
      %c0_13 = arith.constant 0 : index
      %13 = vector.load %arg5[%c0_12, %c0_13] : memref<1x128xf32, #tpu.memory_space<vmem>>, vector<1x128xf32>
      %14 = vector.broadcast %13 : vector<1x128xf32> to vector<128x128xf32>
      %15 = arith.addf %12, %14 : vector<128x128xf32>
      %c0_14 = arith.constant 0 : index
      %c0_15 = arith.constant 0 : index
      %16 = vector.load %arg6[%c0_14, %c0_15] : memref<128x128xf32, #tpu.memory_space<vmem>>, vector<128x128xf32>
      tpu.vector_store %arg6[%c0_14, %c0_15], %15 {strides = array<i32>} : memref<128x128xf32, #tpu.memory_space<vmem>>, vector<128x128xf32>,
    } else {
    }
    return
  }
  func.func @transform_0(%arg0: i32, %arg1: i32, %arg2: i32) -> (i32, i32) {
    %c0_i32 = arith.constant 0 : i32
    return %arg0, %arg2 : i32, i32
  }
  func.func @transform_1(%arg0: i32, %arg1: i32, %arg2: i32) -> (i32, i32) {
    %c0_i32 = arith.constant 0 : i32
    return %arg2, %arg1 : i32, i32
  }
  func.func @transform_2(%arg0: i32, %arg1: i32, %arg2: i32) -> (i32, i32) {
    %c0_i32 = arith.constant 0 : i32
    %c0_i32_0 = arith.constant 0 : i32
    return %c0_i32, %arg1 : i32, i32
  }
  func.func @transform_3(%arg0: i32, %arg1: i32, %arg2: i32) -> (i32, i32) {
    %c0_i32 = arith.constant 0 : i32
    return %arg0, %arg1 : i32, i32
  }
}

module attributes {stable_mosaic.version = 11 : i64} {
  func.func @_in_stats_kernel(%arg0: i32, %arg1: i32, %arg2: memref<1x16x32xf32, #tpu.memory_space<vmem>>, %arg3: memref<1x1x32xf32, #tpu.memory_space<vmem>>, %arg4: memref<1x1x32xf32, #tpu.memory_space<vmem>>) attributes {dimension_semantics = [#tpu.dimension_semantics<parallel>, #tpu.dimension_semantics<arbitrary>], iteration_bounds = array<i64: 2, 1>, scalar_prefetch = 0 : i64, scratch_operands = 0 : i64, tpu.core_type = #tpu.core_type<tc>, window_params = [{transform_indices = @transform_0, window_bounds = array<i64: 1, 16, 32>}, {transform_indices = @transform_1, window_bounds = array<i64: 1, 1, 32>}, {transform_indices = @transform_2, window_bounds = array<i64: 1, 1, 32>}]} {
    %c0_i32 = arith.constant 0 : i32
    %0 = arith.cmpi eq, %arg1, %c0_i32 : i32
    %1 = arith.extui %0 : i1 to i32
    %c0_i32_0 = arith.constant 0 : i32
    %2 = arith.cmpi ne, %1, %c0_i32_0 : i32
    scf.if %2 {
      %cst_18 = arith.constant 0.000000e+00 : f32
      %18 = vector.broadcast %cst_18 : f32 to vector<1x1x32xf32>
      %c0_19 = arith.constant 0 : index
      %c0_20 = arith.constant 0 : index
      %c0_21 = arith.constant 0 : index
      %19 = vector.load %arg3[%c0_19, %c0_20, %c0_21] : memref<1x1x32xf32, #tpu.memory_space<vmem>>, vector<1x1x32xf32>
      tpu.vector_store %arg3[%c0_19, %c0_20, %c0_21], %18 {strides = array<i32>} : memref<1x1x32xf32, #tpu.memory_space<vmem>>, vector<1x1x32xf32>,
      %cst_22 = arith.constant 0.000000e+00 : f32
      %20 = vector.broadcast %cst_22 : f32 to vector<1x1x32xf32>
      %c0_23 = arith.constant 0 : index
      %c0_24 = arith.constant 0 : index
      %c0_25 = arith.constant 0 : index
      %21 = vector.load %arg4[%c0_23, %c0_24, %c0_25] : memref<1x1x32xf32, #tpu.memory_space<vmem>>, vector<1x1x32xf32>
      tpu.vector_store %arg4[%c0_23, %c0_24, %c0_25], %20 {strides = array<i32>} : memref<1x1x32xf32, #tpu.memory_space<vmem>>, vector<1x1x32xf32>,
    } else {
    }
    %c0 = arith.constant 0 : index
    %c0_1 = arith.constant 0 : index
    %c0_2 = arith.constant 0 : index
    %3 = vector.load %arg2[%c0, %c0_1, %c0_2] : memref<1x16x32xf32, #tpu.memory_space<vmem>>, vector<1x16x32xf32>
    %c0_3 = arith.constant 0 : index
    %c0_4 = arith.constant 0 : index
    %c0_5 = arith.constant 0 : index
    %4 = vector.load %arg3[%c0_3, %c0_4, %c0_5] : memref<1x1x32xf32, #tpu.memory_space<vmem>>, vector<1x1x32xf32>
    %cst = arith.constant dense<0.000000e+00> : vector<1x32xf32>
    %5 = vector.multi_reduction <add>, %3, %cst [1] : vector<1x16x32xf32> to vector<1x32xf32>
    %6 = vector.shape_cast %5 : vector<1x32xf32> to vector<1x1x32xf32>
    %7 = arith.addf %4, %6 : vector<1x1x32xf32>
    %c0_6 = arith.constant 0 : index
    %c0_7 = arith.constant 0 : index
    %c0_8 = arith.constant 0 : index
    %8 = vector.load %arg3[%c0_6, %c0_7, %c0_8] : memref<1x1x32xf32, #tpu.memory_space<vmem>>, vector<1x1x32xf32>
    tpu.vector_store %arg3[%c0_6, %c0_7, %c0_8], %7 {strides = array<i32>} : memref<1x1x32xf32, #tpu.memory_space<vmem>>, vector<1x1x32xf32>,
    %c0_9 = arith.constant 0 : index
    %c0_10 = arith.constant 0 : index
    %c0_11 = arith.constant 0 : index
    %9 = vector.load %arg4[%c0_9, %c0_10, %c0_11] : memref<1x1x32xf32, #tpu.memory_space<vmem>>, vector<1x1x32xf32>
    %10 = arith.mulf %3, %3 : vector<1x16x32xf32>
    %cst_12 = arith.constant dense<0.000000e+00> : vector<1x32xf32>
    %11 = vector.multi_reduction <add>, %10, %cst_12 [1] : vector<1x16x32xf32> to vector<1x32xf32>
    %12 = vector.shape_cast %11 : vector<1x32xf32> to vector<1x1x32xf32>
    %13 = arith.addf %9, %12 : vector<1x1x32xf32>
    %c0_13 = arith.constant 0 : index
    %c0_14 = arith.constant 0 : index
    %c0_15 = arith.constant 0 : index
    %14 = vector.load %arg4[%c0_13, %c0_14, %c0_15] : memref<1x1x32xf32, #tpu.memory_space<vmem>>, vector<1x1x32xf32>
    tpu.vector_store %arg4[%c0_13, %c0_14, %c0_15], %13 {strides = array<i32>} : memref<1x1x32xf32, #tpu.memory_space<vmem>>, vector<1x1x32xf32>,
    %c0_i32_16 = arith.constant 0 : i32
    %15 = arith.cmpi eq, %arg1, %c0_i32_16 : i32
    %16 = arith.extui %15 : i1 to i32
    %c0_i32_17 = arith.constant 0 : i32
    %17 = arith.cmpi ne, %16, %c0_i32_17 : i32
    scf.if %17 {
      %c0_18 = arith.constant 0 : index
      %c0_19 = arith.constant 0 : index
      %c0_20 = arith.constant 0 : index
      %18 = vector.load %arg3[%c0_18, %c0_19, %c0_20] : memref<1x1x32xf32, #tpu.memory_space<vmem>>, vector<1x1x32xf32>
      %cst_21 = arith.constant 6.250000e-02 : f32
      %19 = vector.broadcast %cst_21 : f32 to vector<1x1x32xf32>
      %20 = arith.mulf %18, %19 : vector<1x1x32xf32>
      %c0_22 = arith.constant 0 : index
      %c0_23 = arith.constant 0 : index
      %c0_24 = arith.constant 0 : index
      %21 = vector.load %arg4[%c0_22, %c0_23, %c0_24] : memref<1x1x32xf32, #tpu.memory_space<vmem>>, vector<1x1x32xf32>
      %cst_25 = arith.constant 6.250000e-02 : f32
      %22 = vector.broadcast %cst_25 : f32 to vector<1x1x32xf32>
      %23 = arith.mulf %21, %22 : vector<1x1x32xf32>
      %24 = arith.mulf %20, %20 : vector<1x1x32xf32>
      %25 = arith.subf %23, %24 : vector<1x1x32xf32>
      %cst_26 = arith.constant 0.000000e+00 : f32
      %26 = vector.broadcast %cst_26 : f32 to vector<1x1x32xf32>
      %27 = arith.maximumf %25, %26 : vector<1x1x32xf32>
      %c0_27 = arith.constant 0 : index
      %c0_28 = arith.constant 0 : index
      %c0_29 = arith.constant 0 : index
      %28 = vector.load %arg3[%c0_27, %c0_28, %c0_29] : memref<1x1x32xf32, #tpu.memory_space<vmem>>, vector<1x1x32xf32>
      tpu.vector_store %arg3[%c0_27, %c0_28, %c0_29], %20 {strides = array<i32>} : memref<1x1x32xf32, #tpu.memory_space<vmem>>, vector<1x1x32xf32>,
      %cst_30 = arith.constant 9.99999974E-6 : f32
      %29 = vector.broadcast %cst_30 : f32 to vector<1x1x32xf32>
      %30 = arith.addf %27, %29 : vector<1x1x32xf32>
      %31 = math.rsqrt %30 : vector<1x1x32xf32>
      %c0_31 = arith.constant 0 : index
      %c0_32 = arith.constant 0 : index
      %c0_33 = arith.constant 0 : index
      %32 = vector.load %arg4[%c0_31, %c0_32, %c0_33] : memref<1x1x32xf32, #tpu.memory_space<vmem>>, vector<1x1x32xf32>
      tpu.vector_store %arg4[%c0_31, %c0_32, %c0_33], %31 {strides = array<i32>} : memref<1x1x32xf32, #tpu.memory_space<vmem>>, vector<1x1x32xf32>,
    } else {
    }
    return
  }
  func.func @transform_0(%arg0: i32, %arg1: i32) -> (i32, i32, i32) {
    %c0_i32 = arith.constant 0 : i32
    %c0_i32_0 = arith.constant 0 : i32
    return %arg0, %arg1, %c0_i32 : i32, i32, i32
  }
  func.func @transform_1(%arg0: i32, %arg1: i32) -> (i32, i32, i32) {
    %c0_i32 = arith.constant 0 : i32
    %c0_i32_0 = arith.constant 0 : i32
    %c0_i32_1 = arith.constant 0 : i32
    return %arg0, %c0_i32, %c0_i32_0 : i32, i32, i32
  }
  func.func @transform_2(%arg0: i32, %arg1: i32) -> (i32, i32, i32) {
    %c0_i32 = arith.constant 0 : i32
    %c0_i32_0 = arith.constant 0 : i32
    %c0_i32_1 = arith.constant 0 : i32
    return %arg0, %c0_i32, %c0_i32_0 : i32, i32, i32
  }
}

module attributes {stable_mosaic.version = 11 : i64} {
  func.func @_residual_chain_kernel(%arg0: i32, %arg1: memref<1x16x32xf32, #tpu.memory_space<vmem>>, %arg2: memref<1x16x32xf32, #tpu.memory_space<vmem>>) attributes {dimension_semantics = [#tpu.dimension_semantics<parallel>], iteration_bounds = array<i64: 2>, scalar_prefetch = 0 : i64, scratch_operands = 0 : i64, tpu.core_type = #tpu.core_type<tc>, window_params = [{transform_indices = @transform_0, window_bounds = array<i64: 1, 16, 32>}, {transform_indices = @transform_1, window_bounds = array<i64: 1, 16, 32>}]} {
    %c0 = arith.constant 0 : index
    %c0_0 = arith.constant 0 : index
    %c0_1 = arith.constant 0 : index
    %0 = vector.load %arg1[%c0, %c0_0, %c0_1] : memref<1x16x32xf32, #tpu.memory_space<vmem>>, vector<1x16x32xf32>
    %c0_i32 = arith.constant 0 : i32
    %c3_i32 = arith.constant 3 : i32
    %1 = arith.addi %c0_i32, %c3_i32 : i32
    %c1_i32 = arith.constant 1 : i32
    %2 = scf.for %arg3 = %c0_i32 to %1 step %c1_i32 iter_args(%arg4 = %0) -> (vector<1x16x32xf32>)  : i32 {
      %cst = arith.constant dense<0.000000e+00> : vector<1x32xf32>
      %4 = vector.multi_reduction <add>, %arg4, %cst [1] : vector<1x16x32xf32> to vector<1x32xf32>
      %5 = vector.shape_cast %4 : vector<1x32xf32> to vector<1x1x32xf32>
      %cst_5 = arith.constant 1.600000e+01 : f32
      %6 = vector.broadcast %cst_5 : f32 to vector<1x1x32xf32>
      %7 = arith.divf %5, %6 : vector<1x1x32xf32>
      %8 = vector.broadcast %7 : vector<1x1x32xf32> to vector<1x16x32xf32>
      %9 = arith.subf %arg4, %8 : vector<1x16x32xf32>
      %10 = arith.mulf %9, %9 : vector<1x16x32xf32>
      %cst_6 = arith.constant dense<0.000000e+00> : vector<1x32xf32>
      %11 = vector.multi_reduction <add>, %10, %cst_6 [1] : vector<1x16x32xf32> to vector<1x32xf32>
      %12 = vector.shape_cast %11 : vector<1x32xf32> to vector<1x1x32xf32>
      %cst_7 = arith.constant 1.600000e+01 : f32
      %13 = vector.broadcast %cst_7 : f32 to vector<1x1x32xf32>
      %14 = arith.divf %12, %13 : vector<1x1x32xf32>
      %15 = vector.broadcast %7 : vector<1x1x32xf32> to vector<1x16x32xf32>
      %16 = arith.subf %arg4, %15 : vector<1x16x32xf32>
      %cst_8 = arith.constant 9.99999974E-6 : f32
      %17 = vector.broadcast %cst_8 : f32 to vector<1x1x32xf32>
      %18 = arith.addf %14, %17 : vector<1x1x32xf32>
      %19 = math.rsqrt %18 : vector<1x1x32xf32>
      %20 = vector.broadcast %19 : vector<1x1x32xf32> to vector<1x16x32xf32>
      %21 = arith.mulf %16, %20 : vector<1x16x32xf32>
      %22 = arith.addf %arg4, %21 : vector<1x16x32xf32>
      scf.yield %22 : vector<1x16x32xf32>
    }
    %c0_2 = arith.constant 0 : index
    %c0_3 = arith.constant 0 : index
    %c0_4 = arith.constant 0 : index
    %3 = vector.load %arg2[%c0_2, %c0_3, %c0_4] : memref<1x16x32xf32, #tpu.memory_space<vmem>>, vector<1x16x32xf32>
    tpu.vector_store %arg2[%c0_2, %c0_3, %c0_4], %2 {strides = array<i32>} : memref<1x16x32xf32, #tpu.memory_space<vmem>>, vector<1x16x32xf32>,
    return
  }
  func.func @transform_0(%arg0: i32) -> (i32, i32, i32) {
    %c0_i32 = arith.constant 0 : i32
    %c0_i32_0 = arith.constant 0 : i32
    %c0_i32_1 = arith.constant 0 : i32
    return %arg0, %c0_i32, %c0_i32_0 : i32, i32, i32
  }
  func.func @transform_1(%arg0: i32) -> (i32, i32, i32) {
    %c0_i32 = arith.constant 0 : i32
    %c0_i32_0 = arith.constant 0 : i32
    %c0_i32_1 = arith.constant 0 : i32
    return %arg0, %c0_i32, %c0_i32_0 : i32, i32, i32
  }
}

module attributes {stable_mosaic.version = 11 : i64} {
  func.func @_in_apply_kernel(%arg0: i32, %arg1: i32, %arg2: memref<1x16x32xf32, #tpu.memory_space<vmem>>, %arg3: memref<1x1x32xf32, #tpu.memory_space<vmem>>, %arg4: memref<1x1x32xf32, #tpu.memory_space<vmem>>, %arg5: memref<1x16x32xf32, #tpu.memory_space<vmem>>) attributes {dimension_semantics = [#tpu.dimension_semantics<parallel>, #tpu.dimension_semantics<parallel>], iteration_bounds = array<i64: 2, 1>, scalar_prefetch = 0 : i64, scratch_operands = 0 : i64, tpu.core_type = #tpu.core_type<tc>, window_params = [{transform_indices = @transform_0, window_bounds = array<i64: 1, 16, 32>}, {transform_indices = @transform_1, window_bounds = array<i64: 1, 1, 32>}, {transform_indices = @transform_2, window_bounds = array<i64: 1, 1, 32>}, {transform_indices = @transform_3, window_bounds = array<i64: 1, 16, 32>}]} {
    %c0 = arith.constant 0 : index
    %c0_0 = arith.constant 0 : index
    %c0_1 = arith.constant 0 : index
    %0 = vector.load %arg2[%c0, %c0_0, %c0_1] : memref<1x16x32xf32, #tpu.memory_space<vmem>>, vector<1x16x32xf32>
    %c0_2 = arith.constant 0 : index
    %c0_3 = arith.constant 0 : index
    %c0_4 = arith.constant 0 : index
    %1 = vector.load %arg3[%c0_2, %c0_3, %c0_4] : memref<1x1x32xf32, #tpu.memory_space<vmem>>, vector<1x1x32xf32>
    %2 = vector.broadcast %1 : vector<1x1x32xf32> to vector<1x16x32xf32>
    %3 = arith.subf %0, %2 : vector<1x16x32xf32>
    %c0_5 = arith.constant 0 : index
    %c0_6 = arith.constant 0 : index
    %c0_7 = arith.constant 0 : index
    %4 = vector.load %arg4[%c0_5, %c0_6, %c0_7] : memref<1x1x32xf32, #tpu.memory_space<vmem>>, vector<1x1x32xf32>
    %5 = vector.broadcast %4 : vector<1x1x32xf32> to vector<1x16x32xf32>
    %6 = arith.mulf %3, %5 : vector<1x16x32xf32>
    %cst = arith.constant 0.000000e+00 : f32
    %7 = vector.broadcast %cst : f32 to vector<1x16x32xf32>
    %8 = arith.maximumf %6, %7 : vector<1x16x32xf32>
    %c0_8 = arith.constant 0 : index
    %c0_9 = arith.constant 0 : index
    %c0_10 = arith.constant 0 : index
    %9 = vector.load %arg5[%c0_8, %c0_9, %c0_10] : memref<1x16x32xf32, #tpu.memory_space<vmem>>, vector<1x16x32xf32>
    tpu.vector_store %arg5[%c0_8, %c0_9, %c0_10], %8 {strides = array<i32>} : memref<1x16x32xf32, #tpu.memory_space<vmem>>, vector<1x16x32xf32>,
    return
  }
  func.func @transform_0(%arg0: i32, %arg1: i32) -> (i32, i32, i32) {
    %c0_i32 = arith.constant 0 : i32
    %c0_i32_0 = arith.constant 0 : i32
    return %arg0, %arg1, %c0_i32 : i32, i32, i32
  }
  func.func @transform_1(%arg0: i32, %arg1: i32) -> (i32, i32, i32) {
    %c0_i32 = arith.constant 0 : i32
    %c0_i32_0 = arith.constant 0 : i32
    %c0_i32_1 = arith.constant 0 : i32
    return %arg0, %c0_i32, %c0_i32_0 : i32, i32, i32
  }
  func.func @transform_2(%arg0: i32, %arg1: i32) -> (i32, i32, i32) {
    %c0_i32 = arith.constant 0 : i32
    %c0_i32_0 = arith.constant 0 : i32
    %c0_i32_1 = arith.constant 0 : i32
    return %arg0, %c0_i32, %c0_i32_0 : i32, i32, i32
  }
  func.func @transform_3(%arg0: i32, %arg1: i32) -> (i32, i32, i32) {
    %c0_i32 = arith.constant 0 : i32
    %c0_i32_0 = arith.constant 0 : i32
    return %arg0, %arg1, %c0_i32 : i32, i32, i32
  }
}

module attributes {stable_mosaic.version = 11 : i64} {
  func.func @_matmul_kernel(%arg0: i32, %arg1: i32, %arg2: i32, %arg3: memref<256x256xbf16, #tpu.memory_space<vmem>>, %arg4: memref<256x128xbf16, #tpu.memory_space<vmem>>, %arg5: memref<1x128xf32, #tpu.memory_space<vmem>>, %arg6: memref<256x128xf32, #tpu.memory_space<vmem>>, %arg7: memref<256x128xf32, #tpu.memory_space<vmem>>) attributes {dimension_semantics = [#tpu.dimension_semantics<parallel>, #tpu.dimension_semantics<parallel>, #tpu.dimension_semantics<arbitrary>], iteration_bounds = array<i64: 2, 1, 2>, scalar_prefetch = 0 : i64, scratch_operands = 1 : i64, tpu.core_type = #tpu.core_type<tc>, window_params = [{transform_indices = @transform_0, window_bounds = array<i64: 256, 256>}, {transform_indices = @transform_1, window_bounds = array<i64: 256, 128>}, {transform_indices = @transform_2, window_bounds = array<i64: 1, 128>}, {transform_indices = @transform_3, window_bounds = array<i64: 256, 128>}]} {
    %c0_i32 = arith.constant 0 : i32
    %0 = arith.cmpi eq, %arg2, %c0_i32 : i32
    %1 = arith.extui %0 : i1 to i32
    %c0_i32_0 = arith.constant 0 : i32
    %2 = arith.cmpi ne, %1, %c0_i32_0 : i32
    scf.if %2 {
      %cst_9 = arith.constant 0.000000e+00 : f32
      %12 = vector.broadcast %cst_9 : f32 to vector<256x128xf32>
      %c0_10 = arith.constant 0 : index
      %c0_11 = arith.constant 0 : index
      %13 = vector.load %arg7[%c0_10, %c0_11] : memref<256x128xf32, #tpu.memory_space<vmem>>, vector<256x128xf32>
      tpu.vector_store %arg7[%c0_10, %c0_11], %12 {strides = array<i32>} : memref<256x128xf32, #tpu.memory_space<vmem>>, vector<256x128xf32>,
    } else {
    }
    %c0 = arith.constant 0 : index
    %c0_1 = arith.constant 0 : index
    %3 = vector.load %arg7[%c0, %c0_1] : memref<256x128xf32, #tpu.memory_space<vmem>>, vector<256x128xf32>
    %c0_2 = arith.constant 0 : index
    %c0_3 = arith.constant 0 : index
    %4 = vector.load %arg3[%c0_2, %c0_3] : memref<256x256xbf16, #tpu.memory_space<vmem>>, vector<256x256xbf16>
    %c0_4 = arith.constant 0 : index
    %c0_5 = arith.constant 0 : index
    %5 = vector.load %arg4[%c0_4, %c0_5] : memref<256x128xbf16, #tpu.memory_space<vmem>>, vector<256x128xbf16>
    %cst = arith.constant dense<0.000000e+00> : vector<256x128xf32>
    %6 = tpu.matmul %4, %5, %cst {dimension_numbers = #tpu.dot_dimension_numbers<[1], [0], [0], [1], [0, 0, 1, 1], [], []>} : vector<256x256xbf16>, vector<256x128xbf16>, vector<256x128xf32> -> vector<256x128xf32>
    %7 = arith.addf %3, %6 : vector<256x128xf32>
    %c0_6 = arith.constant 0 : index
    %c0_7 = arith.constant 0 : index
    %8 = vector.load %arg7[%c0_6, %c0_7] : memref<256x128xf32, #tpu.memory_space<vmem>>, vector<256x128xf32>
    tpu.vector_store %arg7[%c0_6, %c0_7], %7 {strides = array<i32>} : memref<256x128xf32, #tpu.memory_space<vmem>>, vector<256x128xf32>,
    %c1_i32 = arith.constant 1 : i32
    %9 = arith.cmpi eq, %arg2, %c1_i32 : i32
    %10 = arith.extui %9 : i1 to i32
    %c0_i32_8 = arith.constant 0 : i32
    %11 = arith.cmpi ne, %10, %c0_i32_8 : i32
    scf.if %11 {
      %c0_9 = arith.constant 0 : index
      %c0_10 = arith.constant 0 : index
      %12 = vector.load %arg7[%c0_9, %c0_10] : memref<256x128xf32, #tpu.memory_space<vmem>>, vector<256x128xf32>
      %c0_11 = arith.constant 0 : index
      %c0_12 = arith.constant 0 : index
      %13 = vector.load %arg5[%c0_11, %c0_12] : memref<1x128xf32, #tpu.memory_space<vmem>>, vector<1x128xf32>
      %14 = vector.broadcast %13 : vector<1x128xf32> to vector<256x128xf32>
      %15 = arith.addf %12, %14 : vector<256x128xf32>
      %16 = math.tanh %15 : vector<256x128xf32>
      %c0_13 = arith.constant 0 : index
      %c0_14 = arith.constant 0 : index
      %17 = vector.load %arg6[%c0_13, %c0_14] : memref<256x128xf32, #tpu.memory_space<vmem>>, vector<256x128xf32>
      tpu.vector_store %arg6[%c0_13, %c0_14], %16 {strides = array<i32>} : memref<256x128xf32, #tpu.memory_space<vmem>>, vector<256x128xf32>,
    } else {
    }
    return
  }
  func.func @transform_0(%arg0: i32, %arg1: i32, %arg2: i32) -> (i32, i32) {
    %c0_i32 = arith.constant 0 : i32
    return %arg0, %arg2 : i32, i32
  }
  func.func @transform_1(%arg0: i32, %arg1: i32, %arg2: i32) -> (i32, i32) {
    %c0_i32 = arith.constant 0 : i32
    return %arg2, %arg1 : i32, i32
  }
  func.func @transform_2(%arg0: i32, %arg1: i32, %arg2: i32) -> (i32, i32) {
    %c0_i32 = arith.constant 0 : i32
    %c0_i32_0 = arith.constant 0 : i32
    return %c0_i32, %arg1 : i32, i32
  }
  func.func @transform_3(%arg0: i32, %arg1: i32, %arg2: i32) -> (i32, i32) {
    %c0_i32 = arith.constant 0 : i32
    return %arg0, %arg1 : i32, i32
  }
}

</mosaic_0001>

<bundles_post_ra>
// kernel: generator_forward.24
= control target key start
LH: loop header
LB: loop body
LE: loop exit
PB: predicated region body
PF: predicated region fallthrough
CT: control target
= control target key end

     0   :  { %s571_s9 = smov 0   ;;  %s573_s10 = smov 0   ;;  %s725_s0 = inlined_call_operand.vmem [shape: f32[2,256,8], index: 0, kind: input, shape index: {}]   ;;  %s726_s1 = inlined_call_operand.vmem [shape: f32[2,1,8], index: 1, kind: output, shape index: {0}]   ;;  %s727_s2 = inlined_call_operand.vmem [shape: f32[2,1,8], index: 2, kind: output, shape index: {1}]  }
   0x1   :  { %s575_s11 = smov 0  }
   0x2 LB: > { %s25_s12 = sadd.s32 1, %s549_s10  ;;  %p498_p0 = scmp.ge.s32.totalorder %s553_s11, 1  ;;  %s553_s11 = sphi %s575_s11, %s13_s11   ;;  %s549_s10 = sphi %s573_s10, %s729_s10   ;;  %s545_s9 = sphi %s571_s9, %s728_s9  }
   0x3   : > { %p27_p1 = scmp.ge.s32.totalorder %s25_s12, 2  ;;  %p134_p2 = scmp.lt.s32.totalorder %s553_s11, 3 }
   0x5   : > { %s731_s12 = smov (%p27_p1, %s25_s12), 0  ;;  %p135_p3 = pnand %p498_p0, %p134_p2 }
   0x6   : > { %p162_p4 = scmp.lt.s32.totalorder (!%p135_p3), %s545_s9, 1 }
   0x7   : > { %138 = sbr.rel (%p135_p3) target bundleno = 129 (0x81), region = 24 }
   0xc   : > { %s733_s9 = smov (!%p162_p4, %s545_s9), 1  ;;  %vm181_vm0 = vcmask 57344   ;;  %vm217_vm1 = vcmask 64512   ;;  %v555_v0 = vmov 0.0  }
   0xd   : > { %s503_s13 = sshll.u32 %s733_s9, 8  ;;  %s592_s16 = scalar_lea.vmem %s726_s1, %s733_s9 }
   0xe   : > { %s597_s19 = scalar_lea.vmem %s725_s0, %s503_s13  ;;  %182 = vst.msk [vmem:[%s592_s16] sm:$0x1] %vm181_vm0, %v555_v0  ;;  %s604_s22 = scalar_lea.vmem %s727_s2, %s733_s9 }
   0xf   : > { %183 = vst.msk [vmem:[%s604_s22] sm:$0x1] %vm181_vm0, %v555_v0  ;;  %v184_v1 = vld [vmem:[%s597_s19] sm:$0xff]  ;;  %v185_v2 = vld [vmem:[%s597_s19 + $0x8] sm:$0xff]  ;;  %v186_v3 = vld [vmem:[%s597_s19 + $0x10] sm:$0xff] }
  0x10   : > { %v187_v4 = vld [vmem:[%s597_s19 + $0x18] sm:$0xff]  ;;  %v218_v5 = vsel %vm217_vm1, %v184_v1, 0.0  ;;  %v219_v6 = vsel %vm217_vm1, %v185_v2, 0.0  ;;  %v221_v7 = vsel %vm217_vm1, %v186_v3, 0.0  ;;  %v188_v8 = vld [vmem:[%s597_s19 + $0x20] sm:$0xff]  ;;  %v189_v11 = vld [vmem:[%s597_s19 + $0x28] sm:$0xff]  ;;  %v291_v30 = vmul.f32 %v184_v1, %v184_v1 }
  0x11   : > { %v220_v9 = vadd.f32 %v219_v6, %v218_v5  ;;  %v223_v10 = vsel %vm217_vm1, %v187_v4, 0.0  ;;  %v225_v13 = vsel %vm217_vm1, %v188_v8, 0.0  ;;  %v190_v14 = vld [vmem:[%s597_s19 + $0x30] sm:$0xff]  ;;  %v227_v16 = vsel %vm217_vm1, %v189_v11, 0.0  ;;  %v191_v17 = vld [vmem:[%s597_s19 + $0x38] sm:$0xff]  ;;  %v192_v20 = vld [vmem:[%s597_s19 + $0x40] sm:$0xff] }
  0x12   : > { %v229_v19 = vsel %vm217_vm1, %v190_v14, 0.0  ;;  %v231_v22 = vsel %vm217_vm1, %v191_v17, 0.0  ;;  %v193_v23 = vld [vmem:[%s597_s19 + $0x48] sm:$0xff]  ;;  %v233_v25 = vsel %vm217_vm1, %v192_v20, 0.0  ;;  %v194_v26 = vld [vmem:[%s597_s19 + $0x50] sm:$0xff]  ;;  %v195_v28 = vld [vmem:[%s597_s19 + $0x58] sm:$0xff]  ;;  %v292_v31 = vmul.f32 %v185_v2, %v185_v2 }
  0x13   : > { %v222_v12 = vadd.f32 %v221_v7, %v220_v9  ;;  %v235_v29 = vsel %vm217_vm1, %v193_v23, 0.0  ;;  %v293_v32 = vmul.f32 %v186_v3, %v186_v3  ;;  %v237_v34 = vsel %vm217_vm1, %v194_v26, 0.0  ;;  %v196_v36 = vld [vmem:[%s597_s19 + $0x60] sm:$0xff]  ;;  %v197_v43 = vld [vmem:[%s597_s19 + $0x68] sm:$0xff]  ;;  %v198_v49 = vld [vmem:[%s597_s19 + $0x70] sm:$0xff] }
  0x14   : > { %v294_v35 = vmul.f32 %v187_v4, %v187_v4  ;;  %v239_v38 = vsel %vm217_vm1, %v195_v28, 0.0  ;;  %v295_v39 = vmul.f32 %v188_v8, %v188_v8  ;;  %v323_v40 = vsel %vm217_vm1, %v291_v30, 0.0  ;;  %v199_v55 = vld [vmem:[%s597_s19 + $0x78] sm:$0xff]  ;;  %v200_v61 = vld [vmem:[%s597_s19 + $0x80] sm:$0xff]  ;;  %v201_v3 = vld [vmem:[%s597_s19 + $0x88] sm:$0xff] }
  0x15   : > { %v224_v15 = vadd.f32 %v223_v10, %v222_v12  ;;  %v324_v41 = vsel %vm217_vm1, %v292_v31, 0.0  ;;  %v326_v42 = vsel %vm217_vm1, %v293_v32, 0.0  ;;  %v241_v46 = vsel %vm217_vm1, %v196_v36, 0.0  ;;  %v202_v9 = vld [vmem:[%s597_s19 + $0x90] sm:$0xff] }
  0x16   : > { %v325_v45 = vadd.f32 %v324_v41, %v323_v40  ;;  %v296_v47 = vmul.f32 %v189_v11, %v189_v11  ;;  %v328_v48 = vsel %vm217_vm1, %v294_v35, 0.0  ;;  %v243_v52 = vsel %vm217_vm1, %v197_v43, 0.0 }
  0x17   : > { %v226_v18 = vadd.f32 %v225_v13, %v224_v15  ;;  %v297_v53 = vmul.f32 %v190_v14, %v190_v14  ;;  %v330_v54 = vsel %vm217_vm1, %v295_v39, 0.0  ;;  %v245_v58 = vsel %vm217_vm1, %v198_v49, 0.0  ;;  %v203_v15 = vld [vmem:[%s597_s19 + $0x98] sm:$0xff] }
  0x18   : > { %v327_v51 = vadd.f32 %v326_v42, %v325_v45  ;;  %v298_v59 = vmul.f32 %v191_v17, %v191_v17  ;;  %v332_v60 = vsel %vm217_vm1, %v296_v47, 0.0  ;;  %v247_v0 = vsel %vm217_vm1, %v199_v55, 0.0  ;;  %v207_v39 = vld [vmem:[%s597_s19 + $0xb8] sm:$0xff]  ;;  %v208_v45 = vld [vmem:[%s597_s19 + $0xc0] sm:$0xff] }
  0x19   : > { %v228_v21 = vadd.f32 %v227_v16, %v226_v18  ;;  %v299_v1 = vmul.f32 %v192_v20, %v192_v20  ;;  %v334_v2 = vsel %vm217_vm1, %v297_v53, 0.0  ;;  %v249_v6 = vsel %vm217_vm1, %v200_v61, 0.0 }
  0x1a   : > { %v329_v57 = vadd.f32 %v328_v48, %v327_v51  ;;  %v300_v7 = vmul.f32 %v193_v23, %v193_v23  ;;  %v336_v8 = vsel %vm217_vm1, %v298_v59, 0.0  ;;  %v251_v12 = vsel %vm217_vm1, %v201_v3, 0.0  ;;  %v209_v51 = vld [vmem:[%s597_s19 + $0xc8] sm:$0xff] }
  0x1b   : > { %v230_v24 = vadd.f32 %v229_v19, %v228_v21  ;;  %v301_v13 = vmul.f32 %v194_v26, %v194_v26  ;;  %v338_v14 = vsel %vm217_vm1, %v299_v1, 0.0  ;;  %v253_v18 = vsel %vm217_vm1, %v202_v9, 0.0  ;;  %v204_v21 = vld [vmem:[%s597_s19 + $0xa0] sm:$0xff] }
  0x1c   : > { %v331_v63 = vadd.f32 %v330_v54, %v329_v57  ;;  %v302_v19 = vmul.f32 %v195_v28, %v195_v28  ;;  %v340_v20 = vsel %vm217_vm1, %v300_v7, 0.0  ;;  %v257_v31 = vsel %vm217_vm1, %v204_v21, 0.0  ;;  %v210_v57 = vld [vmem:[%s597_s19 + $0xd0] sm:$0xff] }
  0x1d   : > { %v232_v27 = vadd.f32 %v231_v22, %v230_v24  ;;  %v255_v24 = vsel %vm217_vm1, %v203_v15, 0.0  ;;  %v342_v26 = vsel %vm217_vm1, %v301_v13, 0.0  ;;  %v304_v32 = vmul.f32 %v197_v43, %v197_v43 }
  0x1e   : > { %v333_v5 = vadd.f32 %v332_v60, %v331_v63  ;;  %v344_v28 = vsel %vm217_vm1, %v302_v19, 0.0  ;;  %v263_v48 = vsel %vm217_vm1, %v207_v39, 0.0  ;;  %v265_v54 = vsel %vm217_vm1, %v208_v45, 0.0  ;;  %v211_v63 = vld [vmem:[%s597_s19 + $0xd8] sm:$0xff] }
  0x1f   : > { %v234_v33 = vadd.f32 %v233_v25, %v232_v27  ;;  %v303_v25 = vmul.f32 %v196_v36, %v196_v36  ;;  %v205_v27 = vld [vmem:[%s597_s19 + $0xa8] sm:$0xff]  ;;  %v348_v43 = vsel %vm217_vm1, %v304_v32, 0.0  ;;  %v267_v60 = vsel %vm217_vm1, %v209_v51, 0.0 }
  0x20   : > { %v335_v11 = vadd.f32 %v334_v2, %v333_v5  ;;  %v269_v2 = vsel %vm217_vm1, %v210_v57, 0.0  ;;  %v212_v5 = vld [vmem:[%s597_s19 + $0xe0] sm:$0xff] }
  0x21   : > { %v236_v37 = vadd.f32 %v235_v29, %v234_v33  ;;  %v206_v33 = vld [vmem:[%s597_s19 + $0xb0] sm:$0xff]  ;;  %v346_v36 = vsel %vm217_vm1, %v303_v25, 0.0 }
  0x22   : > { %v337_v17 = vadd.f32 %v336_v8, %v335_v11  ;;  %v261_v42 = vsel %vm217_vm1, %v206_v33, 0.0  ;;  %v271_v8 = vsel %vm217_vm1, %v211_v63, 0.0  ;;  %v213_v11 = vld [vmem:[%s597_s19 + $0xe8] sm:$0xff] }
  0x23   : > { %v238_v44 = vadd.f32 %v237_v34, %v236_v37  ;;  %v259_v37 = vsel %vm217_vm1, %v205_v27, 0.0 }
  0x24   : > { %v339_v23 = vadd.f32 %v338_v14, %v337_v17  ;;  %v273_v14 = vsel %vm217_vm1, %v212_v5, 0.0 }
  0x25   : > { %v240_v50 = vadd.f32 %v239_v38, %v238_v44  ;;  %v305_v38 = vmul.f32 %v198_v49, %v198_v49  ;;  %v306_v44 = vmul.f32 %v199_v55, %v199_v55 }
  0x26   : > { %v341_v30 = vadd.f32 %v340_v20, %v339_v23  ;;  %v275_v20 = vsel %vm217_vm1, %v213_v11, 0.0 }
  0x27   : > { %v242_v56 = vadd.f32 %v241_v46, %v240_v50  ;;  %v307_v50 = vmul.f32 %v200_v61, %v200_v61  ;;  %v350_v49 = vsel %vm217_vm1, %v305_v38, 0.0  ;;  %v352_v55 = vsel %vm217_vm1, %v306_v44, 0.0 }
  0x28   : > { %v343_v35 = vadd.f32 %v342_v26, %v341_v30 }
  0x29   : > { %v244_v62 = vadd.f32 %v243_v52, %v242_v56  ;;  %v308_v56 = vmul.f32 %v201_v3, %v201_v3  ;;  %v354_v61 = vsel %vm217_vm1, %v307_v50, 0.0 }
  0x2a   : > { %v345_v41 = vadd.f32 %v344_v28, %v343_v35  ;;  %v315_v28 = vmul.f32 %v208_v45, %v208_v45 }
  0x2b   : > { %v246_v4 = vadd.f32 %v245_v58, %v244_v62  ;;  %v309_v62 = vmul.f32 %v202_v9, %v202_v9  ;;  %v356_v3 = vsel %vm217_vm1, %v308_v56, 0.0 }
  0x2c   : > { %v347_v47 = vadd.f32 %v346_v36, %v345_v41  ;;  %v317_v41 = vmul.f32 %v210_v57, %v210_v57 }
  0x2d   : > { %v248_v10 = vadd.f32 %v247_v0, %v246_v4  ;;  %v310_v4 = vmul.f32 %v203_v15, %v203_v15  ;;  %v358_v9 = vsel %vm217_vm1, %v309_v62, 0.0  ;;  %v214_v15 = vld [vmem:[%s597_s19 + $0xf0] sm:$0xff] }
  0x2e   : > { %v349_v53 = vadd.f32 %v348_v43, %v347_v47  ;;  %v277_v26 = vsel %vm217_vm1, %v214_v15, 0.0  ;;  %v318_v43 = vmul.f32 %v211_v63, %v211_v63  ;;  %v374_v50 = vsel %vm217_vm1, %v317_v41, 0.0 }
  0x2f   : > { %v250_v16 = vadd.f32 %v249_v6, %v248_v10  ;;  %v311_v10 = vmul.f32 %v204_v21, %v204_v21  ;;  %v360_v17 = vsel %vm217_vm1, %v310_v4, 0.0 }
  0x30   : > { %v351_v59 = vadd.f32 %v350_v49, %v349_v53  ;;  %v376_v53 = vsel %vm217_vm1, %v318_v43, 0.0 }
  0x31   : > { %v252_v22 = vadd.f32 %v251_v12, %v250_v16  ;;  %v312_v16 = vmul.f32 %v205_v27, %v205_v27  ;;  %v362_v23 = vsel %vm217_vm1, %v311_v10, 0.0 }
  0x32   : > { %v353_v1 = vadd.f32 %v352_v55, %v351_v59  ;;  %v321_v55 = vmul.f32 %v214_v15, %v214_v15 }
  0x33   : > { %v254_v29 = vadd.f32 %v253_v18, %v252_v22  ;;  %v313_v22 = vmul.f32 %v206_v33, %v206_v33  ;;  %v364_v30 = vsel %vm217_vm1, %v312_v16, 0.0  ;;  %v316_v33 = vmul.f32 %v209_v51, %v209_v51 }
  0x34   : > { %v355_v7 = vadd.f32 %v354_v61, %v353_v1  ;;  %v382_v1 = vsel %vm217_vm1, %v321_v55, 0.0 }
  0x35   : > { %v256_v34 = vadd.f32 %v255_v24, %v254_v29  ;;  %v215_v24 = vld [vmem:[%s597_s19 + $0xf8] sm:$0xff]  ;;  %v314_v29 = vmul.f32 %v207_v39, %v207_v39 }
  0x36   : > { %v357_v13 = vadd.f32 %v356_v3, %v355_v7  ;;  %v279_v32 = vsel %vm217_vm1, %v215_v24, 0.0  ;;  %v322_v62 = vmul.f32 %v215_v24, %v215_v24 }
  0x37   : > { %v258_v40 = vadd.f32 %v257_v31, %v256_v34  ;;  %v366_v34 = vsel %vm217_vm1, %v313_v22, 0.0  ;;  %v368_v38 = vsel %vm217_vm1, %v314_v29, 0.0 }
  0x38   : > { %v359_v19 = vadd.f32 %v358_v9, %v357_v13  ;;  %v384_v3 = vsel %vm217_vm1, %v322_v62, 0.0 }
  0x39   : > { %v260_v46 = vadd.f32 %v259_v37, %v258_v40 }
  0x3a   : > { %v361_v25 = vadd.f32 %v360_v17, %v359_v19 }
  0x3b   : > { %v262_v52 = vadd.f32 %v261_v42, %v260_v46  ;;  %v370_v42 = vsel %vm217_vm1, %v315_v28, 0.0  ;;  %v372_v46 = vsel %vm217_vm1, %v316_v33, 0.0 }
  0x3c   : > { %v363_v27 = vadd.f32 %v362_v23, %v361_v25 }
  0x3d   : > { %v264_v58 = vadd.f32 %v263_v48, %v262_v52  ;;  %v319_v48 = vmul.f32 %v212_v5, %v212_v5  ;;  %v320_v52 = vmul.f32 %v213_v11, %v213_v11 }
  0x3e   : > { %v365_v37 = vadd.f32 %v364_v30, %v363_v27 }
  0x3f   : > { %v266_v0 = vadd.f32 %v265_v54, %v264_v58  ;;  %v378_v57 = vsel %vm217_vm1, %v319_v48, 0.0  ;;  %v380_v61 = vsel %vm217_vm1, %v320_v52, 0.0 }
  0x40   : > { %v367_v40 = vadd.f32 %v366_v34, %v365_v37 }
  0x41   : > { %v268_v6 = vadd.f32 %v267_v60, %v266_v0  ;;  %v216_v60 = vld [vmem:[%s592_s16] sm:$0x1] }
  0x42   : > { %v369_v44 = vadd.f32 %v368_v38, %v367_v40 }
  0x43   : > { %v270_v12 = vadd.f32 %v269_v2, %v268_v6 }
  0x44   : > { %v371_v45 = vadd.f32 %v370_v42, %v369_v44 }
  0x45   : > { %v272_v18 = vadd.f32 %v271_v8, %v270_v12 }
  0x46   : > { %v373_v51 = vadd.f32 %v372_v46, %v371_v45 }
  0x47   : > { %v274_v21 = vadd.f32 %v273_v14, %v272_v18  ;;  %v290_v14 = vld [vmem:[%s604_s22] sm:$0x1] }
  0x48   : > { %v375_v56 = vadd.f32 %v374_v50, %v373_v51 }
  0x49   : > { %v276_v31 = vadd.f32 %v275_v20, %v274_v21 }
  0x4a   : > { %v377_v59 = vadd.f32 %v376_v53, %v375_v56 }
  0x4b   : > { %v278_v35 = vadd.f32 %v277_v26, %v276_v31 }
  0x4c   : > { %v379_v0 = vadd.f32 %v378_v57, %v377_v59 }
  0x4d   : > { %v280_v36 = vadd.f32 %v279_v32, %v278_v35 }
  0x4e   : > { %v381_v4 = vadd.f32 %v380_v61, %v379_v0 }
  0x4f   : > { %v281_v39 = vrot.slane %v280_v36, 4 }
  0x50   : > { %v383_v5 = vadd.f32 %v382_v1, %v381_v4 }
  0x51   : > { %v282_v47 = vadd.f32 %v281_v39, %v280_v36 }
  0x52   : > { %v385_v6 = vadd.f32 %v384_v3, %v383_v5 }
  0x53   : > { %v283_v49 = vrot.slane %v282_v47, 2 }
  0x54   : > { %v386_v7 = vrot.slane %v385_v6, 4 }
  0x55   : > { %v284_v54 = vadd.f32 %v283_v49, %v282_v47 }
  0x56   : > { %v387_v8 = vadd.f32 %v386_v7, %v385_v6 }
  0x57   : > { %v285_v58 = vrot.slane %v284_v54, 1 }
  0x58   : > { %v388_v9 = vrot.slane %v387_v8, 2 }
  0x59   : > { %v286_v63 = vadd.f32 %v285_v58, %v284_v54 }
  0x5a   : > { %v389_v12 = vadd.f32 %v388_v9, %v387_v8 }
  0x5b   : > { %v287_v2 = vadd.f32 %v286_v63, %v216_v60 }
  0x5c   : > { %v390_v13 = vrot.slane %v389_v12, 1 }
  0x5d   : > { %289 = vst.msk [vmem:[%s592_s16] sm:$0x1] %vm181_vm0, %v287_v2 }
  0x5e   : > { %v391_v16 = vadd.f32 %v390_v13, %v389_v12 }
  0x60   : > { %v392_v17 = vadd.f32 %v391_v16, %v290_v14 }
  0x62   : > { %393 = vst.msk [vmem:[%s604_s22] sm:$0x1] %vm181_vm0, %v392_v17 }
  0x64   : > { %v397_v10 = vld [vmem:[%s592_s16] sm:$0x1] }
  0x65   : > { %v398_v11 = vmul.f32 0.00390625, %v397_v10 }
  0x67   : > { %404 = vst.msk [vmem:[%s592_s16] sm:$0x1] %vm181_vm0, %v398_v11  ;;  %v401_v15 = vmul.f32 %v398_v11, %v398_v11 }
  0x69   : > { %v399_v18 = vld [vmem:[%s604_s22] sm:$0x1] }
  0x6a   : > { %v400_v19 = vmul.f32 0.00390625, %v399_v18 }
  0x6c   : > { %v402_v20 = vsub.f32 %v400_v19, %v401_v15 }
  0x6e   : > { %v403_v22 = vmax.f32 %v402_v20, 0.0 }
  0x70   : > { %v405_v23 = vadd.f32 1e-05, %v403_v22 }
  0x72   : > { %529 = vrsqrt.f32 %v405_v23 }
  0x7f   : > { %v530_v24 = vpop.eup %529 }
  0x80   : > { %407 = vst.msk [vmem:[%s604_s22] sm:$0x1] %vm181_vm0, %v530_v24 }
  0x81 PF: > { %s13_s11 = sadd.s32 1, %s553_s11   ;;  %s728_s9 = smov %s549_s10 }
  0x82   : > { %p10_p5 = scmp.ge.s32.totalorder %s13_s11, 4   ;;  %s729_s10 = smov %s731_s12 }
  0x84   :  { %12 = sbr.rel (!%p10_p5) target bundleno = 2 (0x2), region = 74 }

// kernel: generator_forward.23
= control target key start
LH: loop header
LB: loop body
LE: loop exit
PB: predicated region body
PF: predicated region fallthrough
CT: control target
= control target key end

     0   :  { %s1425_s12 = smov 0   ;;  %s1427_s13 = smov 0   ;;  %s1618_s0 = inlined_call_operand.vmem [shape: bf16[512,256], index: 0, kind: input, shape index: {}]   ;;  %s1619_s1 = inlined_call_operand.vmem [shape: bf16[256,128], index: 1, kind: input, shape index: {}]   ;;  %s1620_s2 = inlined_call_operand.vmem [shape: f32[1,128], index: 2, kind: input, shape index: {}]   ;;  %s1621_s3 = inlined_call_operand.vmem [shape: f32[512,128], index: 3, kind: output, shape index: {}]  }
   0x1   :  { %s1429_s14 = smov 0  }
   0x2 LB: > { %s32_s15 = sadd.s32 1, %s1399_s13  ;;  %p1107_p0 = scmp.ge.s32.totalorder %s1403_s14, 1  ;;  %s1403_s14 = sphi %s1429_s14, %s13_s14   ;;  %s1399_s13 = sphi %s1427_s13, %s1623_s13   ;;  %s1395_s12 = sphi %s1425_s12, %s1622_s12  }
   0x3   : > { %p34_p1 = scmp.ge.s32.totalorder %s32_s15, 2  ;;  %p191_p2 = scmp.lt.s32.totalorder %s1403_s14, 3 }
   0x5   : > { %s1625_s15 = smov (%p34_p1, %s32_s15), 0  ;;  %p192_p3 = pnand %p1107_p0, %p191_p2 }
   0x6   : > { %s1108_s18 = sshll.u32 (!%p192_p3), %s1395_s12, 5 }
   0x7   : > { %195 = sbr.rel (%p192_p3) target bundleno = 305 (0x131), region = 32  ;;  %p236_p4 = scmp.lt.s32.totalorder (!%p192_p3), %s1108_s18, 63 }
   0xc   : > { %v1317_v0 = vld [vmem:[%s1619_s1 + $0x78] sm:$0xff]   ;;  %v1319_v2 = vld [vmem:[%s1619_s1 + $0x70] sm:$0xff]   ;;  %v1321_v4 = vld [vmem:[%s1619_s1 + $0x68] sm:$0xff]   ;;  %s1627_s18 = smov (!%p236_p4, %s1108_s18), 63 }
   0xd   : > { %v1318_v1 = vld [vmem:[%s1619_s1 + $0x38] sm:$0xff]   ;;  %1165 = vmatprep.subr.bf16.mxu0 %v1317_v0  ;;  %1277 = vmatprep.subr.bf16.mxu1 %v1317_v0  ;;  %v1320_v3 = vld [vmem:[%s1619_s1 + $0x30] sm:$0xff]   ;;  %v1322_v5 = vld [vmem:[%s1619_s1 + $0x28] sm:$0xff]   ;;  %s1164_s6 = sshll.u32 %s1627_s18, 3 }
   0xe   : > { %1166 = vmatpush3.bf16.msra.mxu0 %v1318_v1  ;;  %1285 = vmatpush3.bf16.msra.mxu1 %v1318_v1  ;;  %v1323_v6 = vld [vmem:[%s1619_s1 + $0x60] sm:$0xff]   ;;  %v1325_v8 = vld [vmem:[%s1619_s1 + $0x58] sm:$0xff]   ;;  %s1478_s11 = scalar_lea.vmem %s1618_s0, %s1164_s6  ;;  %v1327_v10 = vld [vmem:[%s1619_s1 + $0x50] sm:$0xff]   ;;  %s1543_s8 = scalar_lea.vmem %s1621_s3, %s1164_s6 }
   0xf   : > { %1167 = vmatprep.subr.bf16.mxu0 %v1319_v2  ;;  %1278 = vmatprep.subr.bf16.mxu1 %v1319_v2  ;;  %v1324_v7 = vld [vmem:[%s1619_s1 + $0x20] sm:$0xff]   ;;  %v1326_v9 = vld [vmem:[%s1619_s1 + $0x18] sm:$0xff]   ;;  %v1328_v13 = vld [vmem:[%s1619_s1 + $0x10] sm:$0xff]  }
  0x10   : > { %v1335_v11 = vld [vmem:[%s1478_s11 + $0x4] ss:$8 sps:$4 sm:$0xff]   ;;  %v1333_v18 = vld [vmem:[%s1478_s11] ss:$8 sps:$4 sm:$0xff]   ;;  %v1339_v20 = vld [vmem:[%s1478_s11 + $0x14] ss:$8 sps:$4 sm:$0xff]  }
  0x11   : > { %v1338_v12 = vld [vmem:[%s1478_s11 + $0x84] ss:$8 sps:$4 sm:$0xff]   ;;  %688 = vmatprep.mubr.bf16.mxu0 %v1335_v11  ;;  %v1336_v19 = vld [vmem:[%s1478_s11 + $0x80] ss:$8 sps:$4 sm:$0xff]   ;;  %v1341_v21 = vld [vmem:[%s1478_s11 + $0x94] ss:$8 sps:$4 sm:$0xff]  }
  0x12   : > { %1168 = vmatpush3.bf16.msra.mxu0 %v1320_v3  ;;  %1286 = vmatpush3.bf16.msra.mxu1 %v1320_v3  ;;  %v1329_v14 = vld [vmem:[%s1619_s1 + $0x48] sm:$0xff]   ;;  %v1331_v16 = vld [vmem:[%s1619_s1 + $0x40] sm:$0xff]   ;;  %v1343_v22 = vld [vmem:[%s1478_s11 + $0x10] ss:$8 sps:$4 sm:$0xff]  }
  0x13   : > { %1169 = vmatprep.subr.bf16.mxu0 %v1321_v4  ;;  %1279 = vmatprep.subr.bf16.mxu1 %v1321_v4  ;;  %v1330_v15 = vld [vmem:[%s1619_s1 + $0x8] sm:$0xff]   ;;  %v1332_v17 = vld [vmem:[%s1619_s1] sm:$0xff]   ;;  %v1344_v23 = vld [vmem:[%s1478_s11 + $0x90] ss:$8 sps:$4 sm:$0xff]  }
  0x14   : > { %752 = vmatprep.mubr.bf16.mxu1 %v1338_v12  ;;  %v1345_v24 = vld [vmem:[%s1478_s11 + $0x24] ss:$8 sps:$4 sm:$0xff]   ;;  %v1349_v26 = vld [vmem:[%s1478_s11 + $0x20] ss:$8 sps:$4 sm:$0xff]   ;;  %v1351_v28 = vld [vmem:[%s1478_s11 + $0x34] ss:$8 sps:$4 sm:$0xff]  }
  0x15   : > { %v1347_v25 = vld [vmem:[%s1478_s11 + $0xa4] ss:$8 sps:$4 sm:$0xff]   ;;  %v1350_v27 = vld [vmem:[%s1478_s11 + $0xa0] ss:$8 sps:$4 sm:$0xff]   ;;  %v1353_v29 = vld [vmem:[%s1478_s11 + $0xb4] ss:$8 sps:$4 sm:$0xff]  }
  0x16   : > { %1170 = vmatpush3.bf16.msra.mxu0 %v1322_v5  ;;  %1287 = vmatpush3.bf16.msra.mxu1 %v1322_v5  ;;  %v1355_v30 = vld [vmem:[%s1478_s11 + $0x30] ss:$8 sps:$4 sm:$0xff]   ;;  %v1357_v32 = vld [vmem:[%s1478_s11 + $0x44] ss:$8 sps:$4 sm:$0xff]   ;;  %v1361_v34 = vld [vmem:[%s1478_s11 + $0x40] ss:$8 sps:$4 sm:$0xff]  }
  0x17   : > { %1171 = vmatprep.subr.bf16.mxu0 %v1323_v6  ;;  %1280 = vmatprep.subr.bf16.mxu1 %v1323_v6  ;;  %v1356_v31 = vld [vmem:[%s1478_s11 + $0xb0] ss:$8 sps:$4 sm:$0xff]   ;;  %v1359_v33 = vld [vmem:[%s1478_s11 + $0xc4] ss:$8 sps:$4 sm:$0xff]   ;;  %v1362_v35 = vld [vmem:[%s1478_s11 + $0xc0] ss:$8 sps:$4 sm:$0xff]  }
  0x18   : > { %v1363_v36 = vld [vmem:[%s1478_s11 + $0x54] ss:$8 sps:$4 sm:$0xff]   ;;  %v1367_v38 = vld [vmem:[%s1478_s11 + $0x50] ss:$8 sps:$4 sm:$0xff]   ;;  %v1369_v40 = vld [vmem:[%s1478_s11 + $0x64] ss:$8 sps:$4 sm:$0xff]  }
  0x19   : > { %v1365_v37 = vld [vmem:[%s1478_s11 + $0xd4] ss:$8 sps:$4 sm:$0xff]   ;;  %v1368_v39 = vld [vmem:[%s1478_s11 + $0xd0] ss:$8 sps:$4 sm:$0xff]   ;;  %v1371_v41 = vld [vmem:[%s1478_s11 + $0xe4] ss:$8 sps:$4 sm:$0xff]  }
  0x1a   : > { %1172 = vmatpush3.bf16.msra.mxu0 %v1324_v7  ;;  %1288 = vmatpush3.bf16.msra.mxu1 %v1324_v7  ;;  %v1373_v42 = vld [vmem:[%s1478_s11 + $0x60] ss:$8 sps:$4 sm:$0xff]   ;;  %v1375_v44 = vld [vmem:[%s1478_s11 + $0x74] ss:$8 sps:$4 sm:$0xff]   ;;  %v1379_v46 = vld [vmem:[%s1478_s11 + $0x70] ss:$8 sps:$4 sm:$0xff]  }
  0x1b   : > { %1173 = vmatprep.subr.bf16.mxu0 %v1325_v8  ;;  %1281 = vmatprep.subr.bf16.mxu1 %v1325_v8  ;;  %v1374_v43 = vld [vmem:[%s1478_s11 + $0xe0] ss:$8 sps:$4 sm:$0xff]   ;;  %v1377_v45 = vld [vmem:[%s1478_s11 + $0xf4] ss:$8 sps:$4 sm:$0xff]   ;;  %v1380_v47 = vld [vmem:[%s1478_s11 + $0xf0] ss:$8 sps:$4 sm:$0xff]  }
  0x1c   : > { %v1536_v51 = vld [vmem:[%s1620_s2] ss:$0 sm:$0xff] }
  0x1e   : > { %1174 = vmatpush3.bf16.msra.mxu0 %v1326_v9  ;;  %1289 = vmatpush3.bf16.msra.mxu1 %v1326_v9 }
  0x1f   : > { %1175 = vmatprep.subr.bf16.mxu0 %v1327_v10  ;;  %1282 = vmatprep.subr.bf16.mxu1 %v1327_v10 }
  0x22   : > { %1176 = vmatpush3.bf16.msra.mxu0 %v1328_v13  ;;  %1290 = vmatpush3.bf16.msra.mxu1 %v1328_v13 }
  0x23   : > { %1177 = vmatprep.subr.bf16.mxu0 %v1329_v14  ;;  %1283 = vmatprep.subr.bf16.mxu1 %v1329_v14 }
  0x26   : > { %1178 = vmatpush3.bf16.msra.mxu0 %v1330_v15  ;;  %1291 = vmatpush3.bf16.msra.mxu1 %v1330_v15 }
  0x27   : > { %1179 = vmatprep.subr.bf16.mxu0 %v1331_v16  ;;  %1284 = vmatprep.subr.bf16.mxu1 %v1331_v16 }
  0x2a   : > { %1180 = vmatpush3.bf16.msra.mxu0 %v1332_v17  ;;  %1292 = vmatpush3.bf16.msra.mxu1 %v1332_v17 }
  0x2d   : > { %689 = vmatmul.mubr.bf16.vlgmr.msra.gmra.mxu0 %v1333_v18  ;;  %753 = vmatmul.mubr.bf16.vlgmr.msra.gmra.mxu1 %v1336_v19 }
  0x2e   : > { %696 = vmatprep.mubr.bf16.mxu0 %v1339_v20  ;;  %760 = vmatprep.mubr.bf16.mxu1 %v1341_v21 }
  0x35   : > { %697 = vmatmul.mubr.bf16.gmra.mxu0 %v1343_v22  ;;  %761 = vmatmul.mubr.bf16.gmra.mxu1 %v1344_v23 }
  0x36   : > { %704 = vmatprep.mubr.bf16.mxu0 %v1345_v24  ;;  %768 = vmatprep.mubr.bf16.mxu1 %v1347_v25 }
  0x3d   : > { %705 = vmatmul.mubr.bf16.gmra.mxu0 %v1349_v26  ;;  %769 = vmatmul.mubr.bf16.gmra.mxu1 %v1350_v27 }
  0x3e   : > { %712 = vmatprep.mubr.bf16.mxu0 %v1351_v28  ;;  %776 = vmatprep.mubr.bf16.mxu1 %v1353_v29 }
  0x45   : > { %713 = vmatmul.mubr.bf16.gmra.mxu0 %v1355_v30  ;;  %777 = vmatmul.mubr.bf16.gmra.mxu1 %v1356_v31 }
  0x46   : > { %720 = vmatprep.mubr.bf16.mxu0 %v1357_v32  ;;  %784 = vmatprep.mubr.bf16.mxu1 %v1359_v33 }
  0x4d   : > { %721 = vmatmul.mubr.bf16.gmra.mxu0 %v1361_v34  ;;  %785 = vmatmul.mubr.bf16.gmra.mxu1 %v1362_v35 }
  0x4e   : > { %728 = vmatprep.mubr.bf16.mxu0 %v1363_v36  ;;  %792 = vmatprep.mubr.bf16.mxu1 %v1365_v37 }
  0x55   : > { %729 = vmatmul.mubr.bf16.gmra.mxu0 %v1367_v38  ;;  %793 = vmatmul.mubr.bf16.gmra.mxu1 %v1368_v39 }
  0x56   : > { %736 = vmatprep.mubr.bf16.mxu0 %v1369_v40  ;;  %800 = vmatprep.mubr.bf16.mxu1 %v1371_v41 }
  0x5d   : > { %737 = vmatmul.mubr.bf16.gmra.mxu0 %v1373_v42  ;;  %801 = vmatmul.mubr.bf16.gmra.mxu1 %v1374_v43 }
  0x5e   : > { %744 = vmatprep.mubr.bf16.mxu0 %v1375_v44  ;;  %808 = vmatprep.mubr.bf16.mxu1 %v1377_v45 }
  0x65   : > { %745 = vmatmul.mubr.bf16.gmra.mxu0 %v1379_v46  ;;  %809 = vmatmul.mubr.bf16.gmra.mxu1 %v1380_v47 }
  0xed   : > { %v1181_v48 = vpop.f32.mrf.mxu0  ;;  %v1229_v49 = vpop.f32.mrf.mxu1 }
  0xef   : > { %v1182_v50 = vpop.f32.mrf.mxu0  ;;  %v1230_v52 = vpop.f32.mrf.mxu1 }
  0xf0   : > { %v1183_v53 = vadd.f32 %v1182_v50, %v1181_v48  ;;  %v1231_v54 = vadd.f32 %v1230_v52, %v1229_v49 }
  0xf1   : > { %v1184_v55 = vpop.f32.mrf.mxu0  ;;  %v1232_v56 = vpop.f32.mrf.mxu1 }
  0xf2   : > { %v923_v57 = vadd.f32 %v1183_v53, %v1536_v51  ;;  %v939_v58 = vadd.f32 %v1231_v54, %v1536_v51 }
  0xf3   : > { %v1185_v59 = vpop.f32.mrf.mxu0  ;;  %v1233_v60 = vpop.f32.mrf.mxu1 }
  0xf4   : > { %955 = vst [vmem:[%s1543_s8] sm:$0xff] %v923_v57  ;;  %971 = vst [vmem:[%s1543_s8 + $0x80] sm:$0xff] %v939_v58  ;;  %v1186_v61 = vadd.f32 %v1185_v59, %v1184_v55  ;;  %v1234_v62 = vadd.f32 %v1233_v60, %v1232_v56 }
  0xf5   : > { %v1187_v63 = vpop.f32.mrf.mxu0  ;;  %v1235_v0 = vpop.f32.mrf.mxu1 }
  0xf6   : > { %v924_v1 = vadd.f32 %v1186_v61, %v1536_v51  ;;  %v940_v2 = vadd.f32 %v1234_v62, %v1536_v51 }
  0xf7   : > { %v1188_v3 = vpop.f32.mrf.mxu0  ;;  %v1236_v4 = vpop.f32.mrf.mxu1 }
  0xf8   : > { %956 = vst [vmem:[%s1543_s8 + $0x8] sm:$0xff] %v924_v1  ;;  %972 = vst [vmem:[%s1543_s8 + $0x88] sm:$0xff] %v940_v2  ;;  %v1189_v5 = vadd.f32 %v1188_v3, %v1187_v63  ;;  %v1237_v6 = vadd.f32 %v1236_v4, %v1235_v0 }
  0xf9   : > { %v1190_v7 = vpop.f32.mrf.mxu0  ;;  %v1238_v8 = vpop.f32.mrf.mxu1 }
  0xfa   : > { %v925_v9 = vadd.f32 %v1189_v5, %v1536_v51  ;;  %v941_v10 = vadd.f32 %v1237_v6, %v1536_v51 }
  0xfb   : > { %v1191_v11 = vpop.f32.mrf.mxu0  ;;  %v1239_v12 = vpop.f32.mrf.mxu1 }
  0xfc   : > { %957 = vst [vmem:[%s1543_s8 + $0x10] sm:$0xff] %v925_v9  ;;  %973 = vst [vmem:[%s1543_s8 + $0x90] sm:$0xff] %v941_v10  ;;  %v1192_v13 = vadd.f32 %v1191_v11, %v1190_v7  ;;  %v1240_v14 = vadd.f32 %v1239_v12, %v1238_v8 }
  0xfd   : > { %v1193_v15 = vpop.f32.mrf.mxu0  ;;  %v1241_v16 = vpop.f32.mrf.mxu1 }
  0xfe   : > { %v926_v17 = vadd.f32 %v1192_v13, %v1536_v51  ;;  %v942_v18 = vadd.f32 %v1240_v14, %v1536_v51 }
  0xff   : > { %v1194_v19 = vpop.f32.mrf.mxu0  ;;  %v1242_v20 = vpop.f32.mrf.mxu1 }
 0x100   : > { %958 = vst [vmem:[%s1543_s8 + $0x18] sm:$0xff] %v926_v17  ;;  %974 = vst [vmem:[%s1543_s8 + $0x98] sm:$0xff] %v942_v18  ;;  %v1195_v21 = vadd.f32 %v1194_v19, %v1193_v15  ;;  %v1243_v22 = vadd.f32 %v1242_v20, %v1241_v16 }
 0x101   : > { %v1196_v23 = vpop.f32.mrf.mxu0  ;;  %v1244_v24 = vpop.f32.mrf.mxu1 }
 0x102   : > { %v927_v25 = vadd.f32 %v1195_v21, %v1536_v51  ;;  %v943_v26 = vadd.f32 %v1243_v22, %v1536_v51 }
 0x103   : > { %v1197_v27 = vpop.f32.mrf.mxu0  ;;  %v1245_v28 = vpop.f32.mrf.mxu1 }
 0x104   : > { %959 = vst [vmem:[%s1543_s8 + $0x20] sm:$0xff] %v927_v25  ;;  %975 = vst [vmem:[%s1543_s8 + $0xa0] sm:$0xff] %v943_v26  ;;  %v1198_v29 = vadd.f32 %v1197_v27, %v1196_v23  ;;  %v1246_v30 = vadd.f32 %v1245_v28, %v1244_v24 }
 0x105   : > { %v1199_v31 = vpop.f32.mrf.mxu0  ;;  %v1247_v32 = vpop.f32.mrf.mxu1 }
 0x106   : > { %v928_v33 = vadd.f32 %v1198_v29, %v1536_v51  ;;  %v944_v34 = vadd.f32 %v1246_v30, %v1536_v51 }
 0x107   : > { %v1200_v35 = vpop.f32.mrf.mxu0  ;;  %v1248_v36 = vpop.f32.mrf.mxu1 }
 0x108   : > { %960 = vst [vmem:[%s1543_s8 + $0x28] sm:$0xff] %v928_v33  ;;  %976 = vst [vmem:[%s1543_s8 + $0xa8] sm:$0xff] %v944_v34  ;;  %v1201_v37 = vadd.f32 %v1200_v35, %v1199_v31  ;;  %v1249_v38 = vadd.f32 %v1248_v36, %v1247_v32 }
 0x109   : > { %v1202_v39 = vpop.f32.mrf.mxu0  ;;  %v1250_v40 = vpop.f32.mrf.mxu1 }
 0x10a   : > { %v929_v41 = vadd.f32 %v1201_v37, %v1536_v51  ;;  %v945_v42 = vadd.f32 %v1249_v38, %v1536_v51 }
 0x10b   : > { %v1203_v43 = vpop.f32.mrf.mxu0  ;;  %v1251_v44 = vpop.f32.mrf.mxu1 }
 0x10c   : > { %961 = vst [vmem:[%s1543_s8 + $0x30] sm:$0xff] %v929_v41  ;;  %977 = vst [vmem:[%s1543_s8 + $0xb0] sm:$0xff] %v945_v42  ;;  %v1204_v45 = vadd.f32 %v1203_v43, %v1202_v39  ;;  %v1252_v46 = vadd.f32 %v1251_v44, %v1250_v40 }
 0x10d   : > { %v1205_v47 = vpop.f32.mrf.mxu0  ;;  %v1253_v48 = vpop.f32.mrf.mxu1 }
 0x10e   : > { %v930_v49 = vadd.f32 %v1204_v45, %v1536_v51  ;;  %v946_v50 = vadd.f32 %v1252_v46, %v1536_v51 }
 0x10f   : > { %v1206_v52 = vpop.f32.mrf.mxu0  ;;  %v1254_v53 = vpop.f32.mrf.mxu1 }
 0x110   : > { %962 = vst [vmem:[%s1543_s8 + $0x38] sm:$0xff] %v930_v49  ;;  %978 = vst [vmem:[%s1543_s8 + $0xb8] sm:$0xff] %v946_v50  ;;  %v1207_v54 = vadd.f32 %v1206_v52, %v1205_v47  ;;  %v1255_v55 = vadd.f32 %v1254_v53, %v1253_v48 }
 0x111   : > { %v1208_v56 = vpop.f32.mrf.mxu0  ;;  %v1256_v57 = vpop.f32.mrf.mxu1 }
 0x112   : > { %v931_v58 = vadd.f32 %v1207_v54, %v1536_v51  ;;  %v947_v59 = vadd.f32 %v1255_v55, %v1536_v51 }
 0x113   : > { %v1209_v60 = vpop.f32.mrf.mxu0  ;;  %v1257_v61 = vpop.f32.mrf.mxu1 }
 0x114   : > { %963 = vst [vmem:[%s1543_s8 + $0x40] sm:$0xff] %v931_v58  ;;  %979 = vst [vmem:[%s1543_s8 + $0xc0] sm:$0xff] %v947_v59  ;;  %v1210_v62 = vadd.f32 %v1209_v60, %v1208_v56  ;;  %v1258_v63 = vadd.f32 %v1257_v61, %v1256_v57 }
 0x115   : > { %v1211_v0 = vpop.f32.mrf.mxu0  ;;  %v1259_v1 = vpop.f32.mrf.mxu1 }
 0x116   : > { %v932_v2 = vadd.f32 %v1210_v62, %v1536_v51  ;;  %v948_v3 = vadd.f32 %v1258_v63, %v1536_v51 }
 0x117   : > { %v1212_v4 = vpop.f32.mrf.mxu0  ;;  %v1260_v5 = vpop.f32.mrf.mxu1 }
 0x118   : > { %964 = vst [vmem:[%s1543_s8 + $0x48] sm:$0xff] %v932_v2  ;;  %980 = vst [vmem:[%s1543_s8 + $0xc8] sm:$0xff] %v948_v3  ;;  %v1213_v6 = vadd.f32 %v1212_v4, %v1211_v0  ;;  %v1261_v7 = vadd.f32 %v1260_v5, %v1259_v1 }
 0x119   : > { %v1214_v8 = vpop.f32.mrf.mxu0  ;;  %v1262_v9 = vpop.f32.mrf.mxu1 }
 0x11a   : > { %v933_v10 = vadd.f32 %v1213_v6, %v1536_v51  ;;  %v949_v11 = vadd.f32 %v1261_v7, %v1536_v51 }
 0x11b   : > { %v1215_v12 = vpop.f32.mrf.mxu0  ;;  %v1263_v13 = vpop.f32.mrf.mxu1 }
 0x11c   : > { %965 = vst [vmem:[%s1543_s8 + $0x50] sm:$0xff] %v933_v10  ;;  %981 = vst [vmem:[%s1543_s8 + $0xd0] sm:$0xff] %v949_v11  ;;  %v1216_v14 = vadd.f32 %v1215_v12, %v1214_v8  ;;  %v1264_v15 = vadd.f32 %v1263_v13, %v1262_v9 }
 0x11d   : > { %v1217_v16 = vpop.f32.mrf.mxu0  ;;  %v1265_v17 = vpop.f32.mrf.mxu1 }
 0x11e   : > { %v934_v18 = vadd.f32 %v1216_v14, %v1536_v51  ;;  %v950_v19 = vadd.f32 %v1264_v15, %v1536_v51 }
 0x11f   : > { %v1218_v20 = vpop.f32.mrf.mxu0  ;;  %v1266_v21 = vpop.f32.mrf.mxu1 }
 0x120   : > { %966 = vst [vmem:[%s1543_s8 + $0x58] sm:$0xff] %v934_v18  ;;  %982 = vst [vmem:[%s1543_s8 + $0xd8] sm:$0xff] %v950_v19  ;;  %v1219_v22 = vadd.f32 %v1218_v20, %v1217_v16  ;;  %v1267_v23 = vadd.f32 %v1266_v21, %v1265_v17 }
 0x121   : > { %v1220_v24 = vpop.f32.mrf.mxu0  ;;  %v1268_v25 = vpop.f32.mrf.mxu1 }
 0x122   : > { %v935_v26 = vadd.f32 %v1219_v22, %v1536_v51  ;;  %v951_v27 = vadd.f32 %v1267_v23, %v1536_v51 }
 0x123   : > { %v1221_v28 = vpop.f32.mrf.mxu0  ;;  %v1269_v29 = vpop.f32.mrf.mxu1 }
 0x124   : > { %967 = vst [vmem:[%s1543_s8 + $0x60] sm:$0xff] %v935_v26  ;;  %983 = vst [vmem:[%s1543_s8 + $0xe0] sm:$0xff] %v951_v27  ;;  %v1222_v30 = vadd.f32 %v1221_v28, %v1220_v24  ;;  %v1270_v31 = vadd.f32 %v1269_v29, %v1268_v25 }
 0x125   : > { %v1223_v32 = vpop.f32.mrf.mxu0  ;;  %v1271_v33 = vpop.f32.mrf.mxu1 }
 0x126   : > { %v936_v34 = vadd.f32 %v1222_v30, %v1536_v51  ;;  %v952_v35 = vadd.f32 %v1270_v31, %v1536_v51 }
 0x127   : > { %v1224_v36 = vpop.f32.mrf.mxu0  ;;  %v1272_v37 = vpop.f32.mrf.mxu1 }
 0x128   : > { %968 = vst [vmem:[%s1543_s8 + $0x68] sm:$0xff] %v936_v34  ;;  %984 = vst [vmem:[%s1543_s8 + $0xe8] sm:$0xff] %v952_v35  ;;  %v1225_v38 = vadd.f32 %v1224_v36, %v1223_v32  ;;  %v1273_v39 = vadd.f32 %v1272_v37, %v1271_v33 }
 0x129   : > { %v1226_v40 = vpop.f32.mrf.mxu0  ;;  %v1274_v41 = vpop.f32.mrf.mxu1 }
 0x12a   : > { %v937_v42 = vadd.f32 %v1225_v38, %v1536_v51  ;;  %v953_v43 = vadd.f32 %v1273_v39, %v1536_v51 }
 0x12b   : > { %v1227_v44 = vpop.f32.mrf.mxu0  ;;  %v1275_v45 = vpop.f32.mrf.mxu1 }
 0x12c   : > { %969 = vst [vmem:[%s1543_s8 + $0x70] sm:$0xff] %v937_v42  ;;  %985 = vst [vmem:[%s1543_s8 + $0xf0] sm:$0xff] %v953_v43  ;;  %v1228_v46 = vadd.f32 %v1227_v44, %v1226_v40  ;;  %v1276_v47 = vadd.f32 %v1275_v45, %v1274_v41 }
 0x12e   : > { %v938_v48 = vadd.f32 %v1228_v46, %v1536_v51  ;;  %v954_v49 = vadd.f32 %v1276_v47, %v1536_v51 }
 0x130   : > { %970 = vst [vmem:[%s1543_s8 + $0x78] sm:$0xff] %v938_v48  ;;  %986 = vst [vmem:[%s1543_s8 + $0xf8] sm:$0xff] %v954_v49 }
 0x131 PF: > { %s13_s14 = sadd.s32 1, %s1403_s14   ;;  %s1622_s12 = smov %s1399_s13 }
 0x132   : > { %p10_p5 = scmp.ge.s32.totalorder %s13_s14, 4   ;;  %s1623_s13 = smov %s1625_s15 }
 0x134   :  { %12 = sbr.rel (!%p10_p5) target bundleno = 2 (0x2), region = 76 }

// kernel: generator_forward.25
= control target key start
LH: loop header
LB: loop body
LE: loop exit
PB: predicated region body
PF: predicated region fallthrough
CT: control target
= control target key end

     0   :  { %s601_s12 = smov 0   ;;  %s603_s13 = smov 0   ;;  %s808_s0 = inlined_call_operand.vmem [shape: f32[2,256,8], index: 0, kind: input, shape index: {}]   ;;  %s809_s1 = inlined_call_operand.vmem [shape: f32[2,1,8], index: 1, kind: input, shape index: {}]   ;;  %s810_s2 = inlined_call_operand.vmem [shape: f32[2,1,8], index: 2, kind: input, shape index: {}]   ;;  %s811_s3 = inlined_call_operand.vmem [shape: f32[2,256,8], index: 3, kind: output, shape index: {}]  }
   0x1   :  { %s605_s14 = smov 0  }
   0x2 LB: > { %s25_s15 = sadd.s32 1, %s575_s13  ;;  %p522_p0 = scmp.ge.s32.totalorder %s579_s14, 1  ;;  %s579_s14 = sphi %s605_s14, %s13_s14   ;;  %s575_s13 = sphi %s603_s13, %s813_s13   ;;  %s571_s12 = sphi %s601_s12, %s812_s12  }
   0x3   : > { %p27_p1 = scmp.ge.s32.totalorder %s25_s15, 2  ;;  %p174_p2 = scmp.lt.s32.totalorder %s579_s14, 3 }
   0x5   : > { %s815_s15 = smov (%p27_p1, %s25_s15), 0  ;;  %p175_p3 = pnand %p522_p0, %p174_p2 }
   0x6   : > { %p213_p4 = scmp.lt.s32.totalorder (!%p175_p3), %s571_s12, 1 }
   0x7   : > { %178 = sbr.rel (%p175_p3) target bundleno = 45 (0x2d), region = 32 }
   0xc   : > { %s817_s12 = smov (!%p213_p4, %s571_s12), 1  ;;  %vm380_vm0 = vcmask 64512  }
   0xd   : > { %s531_s16 = sshll.u32 %s817_s12, 8  ;;  %s224_s19 = scalar_lea.vmem %s809_s1, %s817_s12 }
   0xe   : > { %s625_s22 = scalar_lea.vmem %s808_s0, %s531_s16  ;;  %s227_s25 = scalar_lea.vmem %s810_s2, %s817_s12  ;;  %v630_v0 = vld [vmem:[%s224_s19] ss:$0 sm:$0xff] }
   0xf   : > { %v238_v1 = vld [vmem:[%s625_s22] sm:$0xff]  ;;  %v239_v3 = vld [vmem:[%s625_s22 + $0x8] sm:$0xff]  ;;  %v240_v6 = vld [vmem:[%s625_s22 + $0x10] sm:$0xff]  ;;  %s654_s28 = scalar_lea.vmem %s811_s3, %s531_s16 }
  0x10   : > { %v633_v2 = vld [vmem:[%s227_s25] ss:$0 sm:$0xff]  ;;  %v277_v4 = vsub.f32 %v238_v1, %v630_v0  ;;  %v278_v5 = vsub.f32 %v239_v3, %v630_v0  ;;  %v241_v7 = vld [vmem:[%s625_s22 + $0x18] sm:$0xff]  ;;  %v279_v9 = vsub.f32 %v240_v6, %v630_v0  ;;  %v243_v12 = vld [vmem:[%s625_s22 + $0x28] sm:$0xff] }
  0x11   : > { %v242_v8 = vld [vmem:[%s625_s22 + $0x20] sm:$0xff]  ;;  %v280_v10 = vsub.f32 %v241_v7, %v630_v0  ;;  %v244_v13 = vld [vmem:[%s625_s22 + $0x30] sm:$0xff]  ;;  %v245_v14 = vld [vmem:[%s625_s22 + $0x38] sm:$0xff]  ;;  %v282_v17 = vsub.f32 %v243_v12, %v630_v0 }
  0x12   : > { %v281_v11 = vsub.f32 %v242_v8, %v630_v0  ;;  %v316_v15 = vmul.f32 %v633_v2, %v277_v4  ;;  %v317_v16 = vmul.f32 %v633_v2, %v278_v5  ;;  %v283_v18 = vsub.f32 %v244_v13, %v630_v0  ;;  %v246_v23 = vld [vmem:[%s625_s22 + $0x40] sm:$0xff]  ;;  %v247_v24 = vld [vmem:[%s625_s22 + $0x48] sm:$0xff]  ;;  %v248_v29 = vld [vmem:[%s625_s22 + $0x50] sm:$0xff] }
  0x13   : > { %v318_v19 = vmul.f32 %v633_v2, %v279_v9  ;;  %v319_v20 = vmul.f32 %v633_v2, %v280_v10  ;;  %v284_v22 = vsub.f32 %v245_v14, %v630_v0  ;;  %v321_v27 = vmul.f32 %v633_v2, %v282_v17  ;;  %v249_v30 = vld [vmem:[%s625_s22 + $0x58] sm:$0xff]  ;;  %v250_v31 = vld [vmem:[%s625_s22 + $0x60] sm:$0xff]  ;;  %v251_v36 = vld [vmem:[%s625_s22 + $0x68] sm:$0xff] }
  0x14   : > { %v320_v21 = vmul.f32 %v633_v2, %v281_v11  ;;  %v348_v25 = vmax.f32 %v316_v15, 0.0  ;;  %v349_v26 = vmax.f32 %v317_v16, 0.0  ;;  %v322_v28 = vmul.f32 %v633_v2, %v283_v18  ;;  %v252_v37 = vld [vmem:[%s625_s22 + $0x70] sm:$0xff]  ;;  %v253_v42 = vld [vmem:[%s625_s22 + $0x78] sm:$0xff]  ;;  %v254_v55 = vld [vmem:[%s625_s22 + $0x80] sm:$0xff] }
  0x15   : > { %v350_v32 = vmax.f32 %v318_v19, 0.0  ;;  %v351_v33 = vmax.f32 %v319_v20, 0.0  ;;  %v323_v35 = vmul.f32 %v633_v2, %v284_v22  ;;  %v353_v38 = vmax.f32 %v321_v27, 0.0  ;;  %v255_v56 = vld [vmem:[%s625_s22 + $0x88] sm:$0xff]  ;;  %v256_v61 = vld [vmem:[%s625_s22 + $0x90] sm:$0xff]  ;;  %v257_v62 = vld [vmem:[%s625_s22 + $0x98] sm:$0xff] }
  0x16   : > { %v352_v34 = vmax.f32 %v320_v21, 0.0  ;;  %381 = vst.msk [vmem:[%s654_s28] sm:$0xff] %vm380_vm0, %v348_v25  ;;  %382 = vst.msk [vmem:[%s654_s28 + $0x8] sm:$0xff] %vm380_vm0, %v349_v26  ;;  %v354_v39 = vmax.f32 %v322_v28, 0.0  ;;  %v285_v40 = vsub.f32 %v246_v23, %v630_v0  ;;  %v286_v41 = vsub.f32 %v247_v24, %v630_v0  ;;  %v258_v63 = vld [vmem:[%s625_s22 + $0xa0] sm:$0xff]  ;;  %v259_v6 = vld [vmem:[%s625_s22 + $0xa8] sm:$0xff] }
  0x17   : > { %383 = vst.msk [vmem:[%s654_s28 + $0x10] sm:$0xff] %vm380_vm0, %v350_v32  ;;  %384 = vst.msk [vmem:[%s654_s28 + $0x18] sm:$0xff] %vm380_vm0, %v351_v33  ;;  %v355_v43 = vmax.f32 %v323_v35, 0.0  ;;  %v287_v44 = vsub.f32 %v248_v29, %v630_v0  ;;  %v288_v45 = vsub.f32 %v249_v30, %v630_v0  ;;  %v289_v46 = vsub.f32 %v250_v31, %v630_v0  ;;  %v260_v7 = vld [vmem:[%s625_s22 + $0xb0] sm:$0xff]  ;;  %v261_v12 = vld [vmem:[%s625_s22 + $0xb8] sm:$0xff] }
  0x18   : > { %385 = vst.msk [vmem:[%s654_s28 + $0x20] sm:$0xff] %vm380_vm0, %v352_v34  ;;  %386 = vst.msk [vmem:[%s654_s28 + $0x28] sm:$0xff] %vm380_vm0, %v353_v38  ;;  %v324_v47 = vmul.f32 %v633_v2, %v285_v40  ;;  %v325_v48 = vmul.f32 %v633_v2, %v286_v41  ;;  %v290_v49 = vsub.f32 %v251_v36, %v630_v0  ;;  %v262_v25 = vld [vmem:[%s625_s22 + $0xc0] sm:$0xff]  ;;  %v263_v26 = vld [vmem:[%s625_s22 + $0xc8] sm:$0xff] }
  0x19   : > { %387 = vst.msk [vmem:[%s654_s28 + $0x30] sm:$0xff] %vm380_vm0, %v354_v39  ;;  %v291_v50 = vsub.f32 %v252_v37, %v630_v0  ;;  %388 = vst.msk [vmem:[%s654_s28 + $0x38] sm:$0xff] %vm380_vm0, %v355_v43  ;;  %v326_v51 = vmul.f32 %v633_v2, %v287_v44  ;;  %v327_v52 = vmul.f32 %v633_v2, %v288_v45  ;;  %v264_v31 = vld [vmem:[%s625_s22 + $0xd0] sm:$0xff]  ;;  %v265_v32 = vld [vmem:[%s625_s22 + $0xd8] sm:$0xff] }
  0x1a   : > { %v328_v53 = vmul.f32 %v633_v2, %v289_v46  ;;  %v292_v54 = vsub.f32 %v253_v42, %v630_v0  ;;  %v356_v57 = vmax.f32 %v324_v47, 0.0  ;;  %v357_v58 = vmax.f32 %v325_v48, 0.0  ;;  %v266_v33 = vld [vmem:[%s625_s22 + $0xe0] sm:$0xff]  ;;  %v267_v38 = vld [vmem:[%s625_s22 + $0xe8] sm:$0xff]  ;;  %v268_v39 = vld [vmem:[%s625_s22 + $0xf0] sm:$0xff] }
  0x1b   : > { %v329_v59 = vmul.f32 %v633_v2, %v290_v49  ;;  %v330_v60 = vmul.f32 %v633_v2, %v291_v50  ;;  %v358_v1 = vmax.f32 %v326_v51, 0.0  ;;  %v359_v3 = vmax.f32 %v327_v52, 0.0  ;;  %v269_v44 = vld [vmem:[%s625_s22 + $0xf8] sm:$0xff] }
  0x1c   : > { %v360_v4 = vmax.f32 %v328_v53, 0.0  ;;  %v331_v5 = vmul.f32 %v633_v2, %v292_v54  ;;  %389 = vst.msk [vmem:[%s654_s28 + $0x40] sm:$0xff] %vm380_vm0, %v356_v57  ;;  %390 = vst.msk [vmem:[%s654_s28 + $0x48] sm:$0xff] %vm380_vm0, %v357_v58  ;;  %v293_v10 = vsub.f32 %v254_v55, %v630_v0  ;;  %v294_v11 = vsub.f32 %v255_v56, %v630_v0 }
  0x1d   : > { %v361_v8 = vmax.f32 %v329_v59, 0.0  ;;  %v362_v9 = vmax.f32 %v330_v60, 0.0  ;;  %391 = vst.msk [vmem:[%s654_s28 + $0x50] sm:$0xff] %vm380_vm0, %v358_v1  ;;  %392 = vst.msk [vmem:[%s654_s28 + $0x58] sm:$0xff] %vm380_vm0, %v359_v3  ;;  %v295_v14 = vsub.f32 %v256_v61, %v630_v0  ;;  %v296_v15 = vsub.f32 %v257_v62, %v630_v0 }
  0x1e   : > { %393 = vst.msk [vmem:[%s654_s28 + $0x60] sm:$0xff] %vm380_vm0, %v360_v4  ;;  %v363_v13 = vmax.f32 %v331_v5, 0.0  ;;  %v297_v16 = vsub.f32 %v258_v63, %v630_v0  ;;  %v332_v17 = vmul.f32 %v633_v2, %v293_v10  ;;  %v333_v18 = vmul.f32 %v633_v2, %v294_v11 }
  0x1f   : > { %394 = vst.msk [vmem:[%s654_s28 + $0x68] sm:$0xff] %vm380_vm0, %v361_v8  ;;  %395 = vst.msk [vmem:[%s654_s28 + $0x70] sm:$0xff] %vm380_vm0, %v362_v9  ;;  %v298_v19 = vsub.f32 %v259_v6, %v630_v0  ;;  %v299_v20 = vsub.f32 %v260_v7, %v630_v0  ;;  %v334_v21 = vmul.f32 %v633_v2, %v295_v14 }
  0x20   : > { %396 = vst.msk [vmem:[%s654_s28 + $0x78] sm:$0xff] %vm380_vm0, %v363_v13  ;;  %v335_v22 = vmul.f32 %v633_v2, %v296_v15  ;;  %v336_v23 = vmul.f32 %v633_v2, %v297_v16  ;;  %v300_v24 = vsub.f32 %v261_v12, %v630_v0  ;;  %v364_v27 = vmax.f32 %v332_v17, 0.0 }
  0x21   : > { %v365_v28 = vmax.f32 %v333_v18, 0.0  ;;  %v337_v29 = vmul.f32 %v633_v2, %v298_v19  ;;  %v338_v30 = vmul.f32 %v633_v2, %v299_v20  ;;  %v366_v34 = vmax.f32 %v334_v21, 0.0 }
  0x22   : > { %v367_v35 = vmax.f32 %v335_v22, 0.0  ;;  %v368_v36 = vmax.f32 %v336_v23, 0.0  ;;  %v339_v37 = vmul.f32 %v633_v2, %v300_v24  ;;  %397 = vst.msk [vmem:[%s654_s28 + $0x80] sm:$0xff] %vm380_vm0, %v364_v27  ;;  %v301_v42 = vsub.f32 %v262_v25, %v630_v0 }
  0x23   : > { %398 = vst.msk [vmem:[%s654_s28 + $0x88] sm:$0xff] %vm380_vm0, %v365_v28  ;;  %v369_v40 = vmax.f32 %v337_v29, 0.0  ;;  %v370_v41 = vmax.f32 %v338_v30, 0.0  ;;  %v302_v43 = vsub.f32 %v263_v26, %v630_v0  ;;  %399 = vst.msk [vmem:[%s654_s28 + $0x90] sm:$0xff] %vm380_vm0, %v366_v34  ;;  %v303_v46 = vsub.f32 %v264_v31, %v630_v0 }
  0x24   : > { %400 = vst.msk [vmem:[%s654_s28 + $0x98] sm:$0xff] %vm380_vm0, %v367_v35  ;;  %401 = vst.msk [vmem:[%s654_s28 + $0xa0] sm:$0xff] %vm380_vm0, %v368_v36  ;;  %v371_v45 = vmax.f32 %v339_v37, 0.0  ;;  %v304_v47 = vsub.f32 %v265_v32, %v630_v0  ;;  %v305_v48 = vsub.f32 %v266_v33, %v630_v0  ;;  %v340_v49 = vmul.f32 %v633_v2, %v301_v42 }
  0x25   : > { %402 = vst.msk [vmem:[%s654_s28 + $0xa8] sm:$0xff] %vm380_vm0, %v369_v40  ;;  %403 = vst.msk [vmem:[%s654_s28 + $0xb0] sm:$0xff] %vm380_vm0, %v370_v41  ;;  %v341_v50 = vmul.f32 %v633_v2, %v302_v43  ;;  %v306_v51 = vsub.f32 %v267_v38, %v630_v0  ;;  %v307_v52 = vsub.f32 %v268_v39, %v630_v0 }
  0x26   : > { %404 = vst.msk [vmem:[%s654_s28 + $0xb8] sm:$0xff] %vm380_vm0, %v371_v45  ;;  %v342_v53 = vmul.f32 %v633_v2, %v303_v46  ;;  %v343_v54 = vmul.f32 %v633_v2, %v304_v47  ;;  %v344_v55 = vmul.f32 %v633_v2, %v305_v48  ;;  %v308_v56 = vsub.f32 %v269_v44, %v630_v0 }
  0x27   : > { %v372_v57 = vmax.f32 %v340_v49, 0.0  ;;  %v373_v58 = vmax.f32 %v341_v50, 0.0  ;;  %v345_v59 = vmul.f32 %v633_v2, %v306_v51  ;;  %v346_v60 = vmul.f32 %v633_v2, %v307_v52 }
  0x28   : > { %v374_v61 = vmax.f32 %v342_v53, 0.0  ;;  %v375_v62 = vmax.f32 %v343_v54, 0.0  ;;  %v376_v63 = vmax.f32 %v344_v55, 0.0  ;;  %v347_v1 = vmul.f32 %v633_v2, %v308_v56 }
  0x29   : > { %405 = vst.msk [vmem:[%s654_s28 + $0xc0] sm:$0xff] %vm380_vm0, %v372_v57  ;;  %406 = vst.msk [vmem:[%s654_s28 + $0xc8] sm:$0xff] %vm380_vm0, %v373_v58  ;;  %v377_v3 = vmax.f32 %v345_v59, 0.0  ;;  %v378_v0 = vmax.f32 %v346_v60, 0.0 }
  0x2a   : > { %407 = vst.msk [vmem:[%s654_s28 + $0xd0] sm:$0xff] %vm380_vm0, %v374_v61  ;;  %408 = vst.msk [vmem:[%s654_s28 + $0xd8] sm:$0xff] %vm380_vm0, %v375_v62  ;;  %v379_v4 = vmax.f32 %v347_v1, 0.0 }
  0x2b   : > { %409 = vst.msk [vmem:[%s654_s28 + $0xe0] sm:$0xff] %vm380_vm0, %v376_v63  ;;  %410 = vst.msk [vmem:[%s654_s28 + $0xe8] sm:$0xff] %vm380_vm0, %v377_v3 }
  0x2c   : > { %411 = vst.msk [vmem:[%s654_s28 + $0xf0] sm:$0xff] %vm380_vm0, %v378_v0  ;;  %412 = vst.msk [vmem:[%s654_s28 + $0xf8] sm:$0xff] %vm380_vm0, %v379_v4 }
  0x2d PF: > { %s13_s14 = sadd.s32 1, %s579_s14   ;;  %s812_s12 = smov %s575_s13 }
  0x2e   : > { %p10_p5 = scmp.ge.s32.totalorder %s13_s14, 4   ;;  %s813_s13 = smov %s815_s15 }
  0x30   :  { %12 = sbr.rel (!%p10_p5) target bundleno = 2 (0x2), region = 68 }

// kernel: generator_forward.26
= control target key start
LH: loop header
LB: loop body
LE: loop exit
PB: predicated region body
PF: predicated region fallthrough
CT: control target
= control target key end

     0   :  { %s586_s1 = inlined_call_operand.vmem [shape: bf16[128,128], index: 1, kind: input, shape index: {}]   ;;  %s587_s0 = inlined_call_operand.vmem [shape: bf16[128,128], index: 0, kind: input, shape index: {}]   ;;  %s588_s2 = inlined_call_operand.vmem [shape: f32[1,128], index: 2, kind: input, shape index: {}]   ;;  %s589_s3 = inlined_call_operand.vmem [shape: f32[128,128], index: 3, kind: output, shape index: {}]  }
   0x1   :  { %v451_v0 = vld [vmem:[%s586_s1 + $0x38] sm:$0xff]   ;;  %v452_v1 = vld [vmem:[%s586_s1 + $0x30] sm:$0xff]   ;;  %v453_v2 = vld [vmem:[%s586_s1 + $0x28] sm:$0xff]  }
   0x2   :  { %403 = vmatprep.subr.bf16.mxu0 %v451_v0  ;;  %435 = vmatprep.subr.bf16.mxu1 %v451_v0  ;;  %v454_v3 = vld [vmem:[%s586_s1 + $0x20] sm:$0xff]   ;;  %v455_v6 = vld [vmem:[%s586_s1 + $0x18] sm:$0xff]   ;;  %v456_v7 = vld [vmem:[%s586_s1 + $0x10] sm:$0xff]  }
   0x3   :  { %404 = vmatpush3.bf16.msra.mxu0 %v451_v0  ;;  %443 = vmatpush3.bf16.msra.mxu1 %v451_v0  ;;  %v459_v4 = vld [vmem:[%s587_s0] sm:$0xff]   ;;  %v457_v8 = vld [vmem:[%s586_s1 + $0x8] sm:$0xff]   ;;  %v463_v12 = vld [vmem:[%s587_s0 + $0x10] sm:$0xff]  }
   0x4   :  { %405 = vmatprep.subr.bf16.mxu0 %v452_v1  ;;  %436 = vmatprep.subr.bf16.mxu1 %v452_v1  ;;  %v460_v5 = vld [vmem:[%s587_s0 + $0x20] sm:$0xff]   ;;  %v461_v10 = vld [vmem:[%s587_s0 + $0x8] sm:$0xff]   ;;  %v464_v13 = vld [vmem:[%s587_s0 + $0x30] sm:$0xff]  }
   0x5   :  { %419 = vmatprep.mubr.bf16.mxu0 %v459_v4  ;;  %427 = vmatprep.mubr.bf16.mxu1 %v460_v5  ;;  %v458_v9 = vld [vmem:[%s586_s1] sm:$0xff]   ;;  %v462_v11 = vld [vmem:[%s587_s0 + $0x28] sm:$0xff]   ;;  %v465_v14 = vld [vmem:[%s587_s0 + $0x18] sm:$0xff]  }
   0x6   :  { %v466_v15 = vld [vmem:[%s587_s0 + $0x38] sm:$0xff]   ;;  %v386_v16 = vld [vmem:[%s588_s2] ss:$0 sm:$0xff] }
   0x7   :  { %406 = vmatpush3.bf16.msra.mxu0 %v452_v1  ;;  %444 = vmatpush3.bf16.msra.mxu1 %v452_v1 }
   0x8   :  { %407 = vmatprep.subr.bf16.mxu0 %v453_v2  ;;  %437 = vmatprep.subr.bf16.mxu1 %v453_v2 }
   0xb   :  { %408 = vmatpush3.bf16.msra.mxu0 %v453_v2  ;;  %445 = vmatpush3.bf16.msra.mxu1 %v453_v2 }
   0xc   :  { %409 = vmatprep.subr.bf16.mxu0 %v454_v3  ;;  %438 = vmatprep.subr.bf16.mxu1 %v454_v3 }
   0xf   :  { %410 = vmatpush3.bf16.msra.mxu0 %v454_v3  ;;  %446 = vmatpush3.bf16.msra.mxu1 %v454_v3 }
  0x10   :  { %411 = vmatprep.subr.bf16.mxu0 %v455_v6  ;;  %439 = vmatprep.subr.bf16.mxu1 %v455_v6 }
  0x13   :  { %412 = vmatpush3.bf16.msra.mxu0 %v455_v6  ;;  %447 = vmatpush3.bf16.msra.mxu1 %v455_v6 }
  0x14   :  { %413 = vmatprep.subr.bf16.mxu0 %v456_v7  ;;  %440 = vmatprep.subr.bf16.mxu1 %v456_v7 }
  0x17   :  { %414 = vmatpush3.bf16.msra.mxu0 %v456_v7  ;;  %448 = vmatpush3.bf16.msra.mxu1 %v456_v7 }
  0x18   :  { %415 = vmatprep.subr.bf16.mxu0 %v457_v8  ;;  %441 = vmatprep.subr.bf16.mxu1 %v457_v8 }
  0x1b   :  { %416 = vmatpush3.bf16.msra.mxu0 %v457_v8  ;;  %449 = vmatpush3.bf16.msra.mxu1 %v457_v8 }
  0x1c   :  { %417 = vmatprep.subr.bf16.mxu0 %v458_v9  ;;  %442 = vmatprep.subr.bf16.mxu1 %v458_v9 }
  0x1f   :  { %418 = vmatpush3.bf16.msra.mxu0 %v458_v9  ;;  %450 = vmatpush3.bf16.msra.mxu1 %v458_v9 }
  0x22   :  { %420 = vmatmul.mubr.bf16.vlgmr.msra.gmra.mxu0 %v461_v10  ;;  %428 = vmatmul.mubr.bf16.vlgmr.msra.gmra.mxu1 %v462_v11 }
  0x23   :  { %423 = vmatprep.mubr.bf16.mxu0 %v463_v12  ;;  %431 = vmatprep.mubr.bf16.mxu1 %v464_v13 }
  0x2a   :  { %424 = vmatmul.mubr.bf16.gmra.mxu0 %v465_v14  ;;  %432 = vmatmul.mubr.bf16.gmra.mxu1 %v466_v15 }
  0xe2   :  { %v421_v17 = vpop.f32.mrf.mxu0  ;;  %v429_v18 = vpop.f32.mrf.mxu1 }
  0xe3   :  { %v336_v19 = vadd.f32 %v421_v17, %v386_v16  ;;  %v344_v20 = vadd.f32 %v429_v18, %v386_v16 }
  0xe4   :  { %v213_v21 = vpop.f32.mrf.mxu0  ;;  %v245_v22 = vpop.f32.mrf.mxu1 }
  0xe5   :  { %352 = vst [vmem:[%s589_s3 + $0x10] sm:$0xff] %v336_v19  ;;  %360 = vst [vmem:[%s589_s3 + $0x50] sm:$0xff] %v344_v20  ;;  %v334_v23 = vadd.f32 %v386_v16, %v213_v21  ;;  %v342_v24 = vadd.f32 %v386_v16, %v245_v22 }
  0xe6   :  { %v422_v25 = vpop.f32.mrf.mxu0  ;;  %v430_v26 = vpop.f32.mrf.mxu1 }
  0xe7   :  { %350 = vst [vmem:[%s589_s3] sm:$0xff] %v334_v23  ;;  %358 = vst [vmem:[%s589_s3 + $0x40] sm:$0xff] %v342_v24  ;;  %v337_v27 = vadd.f32 %v422_v25, %v386_v16  ;;  %v345_v28 = vadd.f32 %v430_v26, %v386_v16 }
  0xe8   :  { %v216_v29 = vpop.f32.mrf.mxu0  ;;  %v248_v30 = vpop.f32.mrf.mxu1 }
  0xe9   :  { %353 = vst [vmem:[%s589_s3 + $0x18] sm:$0xff] %v337_v27  ;;  %361 = vst [vmem:[%s589_s3 + $0x58] sm:$0xff] %v345_v28  ;;  %v335_v31 = vadd.f32 %v386_v16, %v216_v29  ;;  %v343_v32 = vadd.f32 %v386_v16, %v248_v30 }
  0xea   :  { %v425_v33 = vpop.f32.mrf.mxu0  ;;  %v433_v34 = vpop.f32.mrf.mxu1 }
  0xeb   :  { %351 = vst [vmem:[%s589_s3 + $0x8] sm:$0xff] %v335_v31  ;;  %359 = vst [vmem:[%s589_s3 + $0x48] sm:$0xff] %v343_v32  ;;  %v340_v35 = vadd.f32 %v425_v33, %v386_v16  ;;  %v348_v36 = vadd.f32 %v433_v34, %v386_v16 }
  0xec   :  { %v229_v37 = vpop.f32.mrf.mxu0  ;;  %v261_v38 = vpop.f32.mrf.mxu1 }
  0xed   :  { %356 = vst [vmem:[%s589_s3 + $0x30] sm:$0xff] %v340_v35  ;;  %364 = vst [vmem:[%s589_s3 + $0x70] sm:$0xff] %v348_v36  ;;  %v338_v39 = vadd.f32 %v386_v16, %v229_v37  ;;  %v346_v40 = vadd.f32 %v386_v16, %v261_v38 }
  0xee   :  { %v426_v41 = vpop.f32.mrf.mxu0  ;;  %v434_v42 = vpop.f32.mrf.mxu1 }
  0xef   :  { %354 = vst [vmem:[%s589_s3 + $0x20] sm:$0xff] %v338_v39  ;;  %362 = vst [vmem:[%s589_s3 + $0x60] sm:$0xff] %v346_v40  ;;  %v341_v43 = vadd.f32 %v426_v41, %v386_v16  ;;  %v349_v44 = vadd.f32 %v434_v42, %v386_v16 }
  0xf0   :  { %v232_v45 = vpop.f32.mrf.mxu0  ;;  %v264_v46 = vpop.f32.mrf.mxu1 }
  0xf1   :  { %357 = vst [vmem:[%s589_s3 + $0x38] sm:$0xff] %v341_v43  ;;  %365 = vst [vmem:[%s589_s3 + $0x78] sm:$0xff] %v349_v44  ;;  %v339_v47 = vadd.f32 %v386_v16, %v232_v45  ;;  %v347_v48 = vadd.f32 %v386_v16, %v264_v46 }
  0xf3   :  { %355 = vst [vmem:[%s589_s3 + $0x28] sm:$0xff] %v339_v47  ;;  %363 = vst [vmem:[%s589_s3 + $0x68] sm:$0xff] %v347_v48 }

// kernel: generator_forward.27
= control target key start
LH: loop header
LB: loop body
LE: loop exit
PB: predicated region body
PF: predicated region fallthrough
CT: control target
= control target key end

     0   :  { %s427_s9 = smov 0   ;;  %s429_s10 = smov 0   ;;  %s509_s0 = inlined_call_operand.vmem [shape: f32[2,64,16], index: 0, kind: input, shape index: {}]   ;;  %s510_s1 = inlined_call_operand.vmem [shape: f32[2,1,16], index: 1, kind: output, shape index: {0}]   ;;  %s511_s2 = inlined_call_operand.vmem [shape: f32[2,1,16], index: 2, kind: output, shape index: {1}]  }
   0x1   :  { %s431_s11 = smov 0  }
   0x2 LB: > { %s25_s12 = sadd.s32 1, %s405_s10  ;;  %p354_p0 = scmp.ge.s32.totalorder %s409_s11, 1  ;;  %s409_s11 = sphi %s431_s11, %s13_s11   ;;  %s405_s10 = sphi %s429_s10, %s513_s10   ;;  %s401_s9 = sphi %s427_s9, %s512_s9  }
   0x3   : > { %p27_p1 = scmp.ge.s32.totalorder %s25_s12, 2  ;;  %p134_p2 = scmp.lt.s32.totalorder %s409_s11, 3 }
   0x5   : > { %s515_s12 = smov (%p27_p1, %s25_s12), 0  ;;  %p135_p3 = pnand %p354_p0, %p134_p2 }
   0x6   : > { %p162_p4 = scmp.lt.s32.totalorder (!%p135_p3), %s401_s9, 1 }
   0x7   : > { %138 = sbr.rel (%p135_p3) target bundleno = 79 (0x4f), region = 24 }
   0xc   : > { %s517_s9 = smov (!%p162_p4, %s401_s9), 1  ;;  %vm181_vm0 = vcmask 122880   ;;  %vm193_vm1 = vcmask 130048   ;;  %v411_v0 = vmov 0.0  }
   0xd   : > { %s359_s13 = sshll.u32 %s517_s9, 6  ;;  %s448_s16 = scalar_lea.vmem %s510_s1, %s517_s9 }
   0xe   : > { %s453_s19 = scalar_lea.vmem %s509_s0, %s359_s13  ;;  %182 = vst.msk [vmem:[%s448_s16] sm:$0x1] %vm181_vm0, %v411_v0  ;;  %s460_s22 = scalar_lea.vmem %s511_s2, %s517_s9 }
   0xf   : > { %183 = vst.msk [vmem:[%s460_s22] sm:$0x1] %vm181_vm0, %v411_v0  ;;  %v184_v1 = vld [vmem:[%s453_s19] sm:$0xff]  ;;  %v185_v2 = vld [vmem:[%s453_s19 + $0x8] sm:$0xff]  ;;  %v186_v3 = vld [vmem:[%s453_s19 + $0x10] sm:$0xff] }
  0x10   : > { %v187_v4 = vld [vmem:[%s453_s19 + $0x18] sm:$0xff]  ;;  %v194_v5 = vsel %vm193_vm1, %v184_v1, 0.0  ;;  %v195_v6 = vsel %vm193_vm1, %v185_v2, 0.0  ;;  %v197_v7 = vsel %vm193_vm1, %v186_v3, 0.0  ;;  %v219_v8 = vmul.f32 %v184_v1, %v184_v1  ;;  %v188_v9 = vld [vmem:[%s453_s19 + $0x20] sm:$0xff]  ;;  %v189_v14 = vld [vmem:[%s453_s19 + $0x28] sm:$0xff] }
  0x11   : > { %v196_v10 = vadd.f32 %v195_v6, %v194_v5  ;;  %v199_v11 = vsel %vm193_vm1, %v187_v4, 0.0  ;;  %v220_v12 = vmul.f32 %v185_v2, %v185_v2  ;;  %v221_v13 = vmul.f32 %v186_v3, %v186_v3  ;;  %v190_v21 = vld [vmem:[%s453_s19 + $0x30] sm:$0xff]  ;;  %v191_v28 = vld [vmem:[%s453_s19 + $0x38] sm:$0xff] }
  0x12   : > { %v222_v16 = vmul.f32 %v187_v4, %v187_v4  ;;  %v201_v17 = vsel %vm193_vm1, %v188_v9, 0.0  ;;  %v223_v18 = vmul.f32 %v188_v9, %v188_v9  ;;  %v227_v19 = vsel %vm193_vm1, %v219_v8, 0.0 }
  0x13   : > { %v198_v15 = vadd.f32 %v197_v7, %v196_v10  ;;  %v228_v20 = vsel %vm193_vm1, %v220_v12, 0.0  ;;  %v230_v24 = vsel %vm193_vm1, %v221_v13, 0.0  ;;  %v203_v25 = vsel %vm193_vm1, %v189_v14, 0.0 }
  0x14   : > { %v229_v23 = vadd.f32 %v228_v20, %v227_v19  ;;  %v224_v26 = vmul.f32 %v189_v14, %v189_v14  ;;  %v232_v27 = vsel %vm193_vm1, %v222_v16, 0.0  ;;  %v205_v31 = vsel %vm193_vm1, %v190_v21, 0.0 }
  0x15   : > { %v200_v22 = vadd.f32 %v199_v11, %v198_v15  ;;  %v225_v32 = vmul.f32 %v190_v21, %v190_v21  ;;  %v234_v33 = vsel %vm193_vm1, %v223_v18, 0.0  ;;  %v207_v36 = vsel %vm193_vm1, %v191_v28, 0.0  ;;  %v192_v55 = vld [vmem:[%s448_s16] sm:$0x1] }
  0x16   : > { %v231_v30 = vadd.f32 %v230_v24, %v229_v23  ;;  %v226_v37 = vmul.f32 %v191_v28, %v191_v28  ;;  %v236_v38 = vsel %vm193_vm1, %v224_v26, 0.0  ;;  %v218_v60 = vld [vmem:[%s460_s22] sm:$0x1] }
  0x17   : > { %v202_v29 = vadd.f32 %v201_v17, %v200_v22  ;;  %v238_v41 = vsel %vm193_vm1, %v225_v32, 0.0 }
  0x18   : > { %v233_v35 = vadd.f32 %v232_v27, %v231_v30  ;;  %v240_v44 = vsel %vm193_vm1, %v226_v37, 0.0 }
  0x19   : > { %v204_v34 = vadd.f32 %v203_v25, %v202_v29 }
  0x1a   : > { %v235_v40 = vadd.f32 %v234_v33, %v233_v35 }
  0x1b   : > { %v206_v39 = vadd.f32 %v205_v31, %v204_v34 }
  0x1c   : > { %v237_v43 = vadd.f32 %v236_v38, %v235_v40 }
  0x1d   : > { %v208_v42 = vadd.f32 %v207_v36, %v206_v39 }
  0x1e   : > { %v239_v46 = vadd.f32 %v238_v41, %v237_v43 }
  0x1f   : > { %v209_v45 = vrot.slane %v208_v42, 4 }
  0x20   : > { %v241_v48 = vadd.f32 %v240_v44, %v239_v46 }
  0x21   : > { %v210_v47 = vadd.f32 %v209_v45, %v208_v42 }
  0x22   : > { %v242_v50 = vrot.slane %v241_v48, 4 }
  0x23   : > { %v211_v49 = vrot.slane %v210_v47, 2 }
  0x24   : > { %v243_v52 = vadd.f32 %v242_v50, %v241_v48 }
  0x25   : > { %v212_v51 = vadd.f32 %v211_v49, %v210_v47 }
  0x26   : > { %v244_v54 = vrot.slane %v243_v52, 2 }
  0x27   : > { %v213_v53 = vrot.slane %v212_v51, 1 }
  0x28   : > { %v245_v57 = vadd.f32 %v244_v54, %v243_v52 }
  0x29   : > { %v214_v56 = vadd.f32 %v213_v53, %v212_v51 }
  0x2a   : > { %v246_v59 = vrot.slane %v245_v57, 1 }
  0x2b   : > { %v215_v58 = vadd.f32 %v214_v56, %v192_v55 }
  0x2c   : > { %v247_v61 = vadd.f32 %v246_v59, %v245_v57 }
  0x2d   : > { %217 = vst.msk [vmem:[%s448_s16] sm:$0x1] %vm181_vm0, %v215_v58 }
  0x2e   : > { %v248_v62 = vadd.f32 %v247_v61, %v218_v60 }
  0x30   : > { %249 = vst.msk [vmem:[%s460_s22] sm:$0x1] %vm181_vm0, %v248_v62 }
  0x34   : > { %v253_v63 = vld [vmem:[%s448_s16] sm:$0x1] }
  0x35   : > { %v254_v0 = vmul.f32 0.015625, %v253_v63 }
  0x37   : > { %v257_v1 = vmul.f32 %v254_v0, %v254_v0  ;;  %260 = vst.msk [vmem:[%s448_s16] sm:$0x1] %vm181_vm0, %v254_v0  ;;  %v255_v2 = vld [vmem:[%s460_s22] sm:$0x1] }
  0x38   : > { %v256_v3 = vmul.f32 0.015625, %v255_v2 }
  0x3a   : > { %v258_v4 = vsub.f32 %v256_v3, %v257_v1 }
  0x3c   : > { %v259_v5 = vmax.f32 %v258_v4, 0.0 }
  0x3e   : > { %v261_v6 = vadd.f32 1e-05, %v259_v5 }
  0x40   : > { %385 = vrsqrt.f32 %v261_v6 }
  0x4d   : > { %v386_v7 = vpop.eup %385 }
  0x4e   : > { %263 = vst.msk [vmem:[%s460_s22] sm:$0x1] %vm181_vm0, %v386_v7 }
  0x4f PF: > { %s13_s11 = sadd.s32 1, %s409_s11   ;;  %s512_s9 = smov %s405_s10 }
  0x50   : > { %p10_p5 = scmp.ge.s32.totalorder %s13_s11, 4   ;;  %s513_s10 = smov %s515_s12 }
  0x52   :  { %12 = sbr.rel (!%p10_p5) target bundleno = 2 (0x2), region = 74 }

// kernel: generator_forward.28
= control target key start
LH: loop header
LB: loop body
LE: loop exit
PB: predicated region body
PF: predicated region fallthrough
CT: control target
= control target key end

     0   :  { %s481_s12 = smov 0   ;;  %s483_s13 = smov 0   ;;  %s528_s0 = inlined_call_operand.vmem [shape: f32[2,64,16], index: 0, kind: input, shape index: {}]   ;;  %s529_s1 = inlined_call_operand.vmem [shape: f32[2,1,16], index: 1, kind: input, shape index: {}]   ;;  %s530_s2 = inlined_call_operand.vmem [shape: f32[2,1,16], index: 2, kind: input, shape index: {}]   ;;  %s531_s3 = inlined_call_operand.vmem [shape: f32[2,64,16], index: 3, kind: output, shape index: {}]  }
   0x1   :  { %s485_s14 = smov 0  }
   0x2 LB: > { %s25_s15 = sadd.s32 1, %s455_s13  ;;  %p402_p0 = scmp.ge.s32.totalorder %s459_s14, 1  ;;  %s459_s14 = sphi %s485_s14, %s13_s14   ;;  %s455_s13 = sphi %s483_s13, %s533_s13   ;;  %s451_s12 = sphi %s481_s12, %s532_s12  }
   0x3   : > { %p27_p1 = scmp.ge.s32.totalorder %s25_s15, 2  ;;  %p174_p2 = scmp.lt.s32.totalorder %s459_s14, 3 }
   0x5   : > { %s535_s15 = smov (%p27_p1, %s25_s15), 0  ;;  %p175_p3 = pnand %p402_p0, %p174_p2 }
   0x6   : > { %p213_p4 = scmp.lt.s32.totalorder (!%p175_p3), %s451_s12, 1 }
   0x7   : > { %178 = sbr.rel (%p175_p3) target bundleno = 26 (0x1a), region = 32 }
   0xc   : > { %s537_s12 = smov (!%p213_p4, %s451_s12), 1  ;;  %vm284_vm0 = vcmask 130048  }
   0xd   : > { %s411_s16 = sshll.u32 %s537_s12, 6  ;;  %s224_s19 = scalar_lea.vmem %s529_s1, %s537_s12 }
   0xe   : > { %s220_s22 = scalar_lea.vmem %s528_s0, %s411_s16  ;;  %s227_s25 = scalar_lea.vmem %s530_s2, %s537_s12  ;;  %v407_v0 = vld [vmem:[%s224_s19] ss:$0 sm:$0xff] }
   0xf   : > { %v238_v1 = vld [vmem:[%s220_s22] sm:$0xff]  ;;  %v239_v3 = vld [vmem:[%s220_s22 + $0x8] sm:$0xff]  ;;  %v240_v6 = vld [vmem:[%s220_s22 + $0x10] sm:$0xff]  ;;  %s236_s28 = scalar_lea.vmem %s531_s3, %s411_s16 }
  0x10   : > { %v408_v2 = vld [vmem:[%s227_s25] ss:$0 sm:$0xff]  ;;  %v253_v4 = vsub.f32 %v238_v1, %v407_v0  ;;  %v254_v5 = vsub.f32 %v239_v3, %v407_v0  ;;  %v241_v7 = vld [vmem:[%s220_s22 + $0x18] sm:$0xff]  ;;  %v255_v9 = vsub.f32 %v240_v6, %v407_v0  ;;  %v243_v12 = vld [vmem:[%s220_s22 + $0x28] sm:$0xff] }
  0x11   : > { %v242_v8 = vld [vmem:[%s220_s22 + $0x20] sm:$0xff]  ;;  %v256_v10 = vsub.f32 %v241_v7, %v407_v0  ;;  %v244_v13 = vld [vmem:[%s220_s22 + $0x30] sm:$0xff]  ;;  %v245_v14 = vld [vmem:[%s220_s22 + $0x38] sm:$0xff]  ;;  %v258_v17 = vsub.f32 %v243_v12, %v407_v0 }
  0x12   : > { %v257_v11 = vsub.f32 %v242_v8, %v407_v0  ;;  %v268_v15 = vmul.f32 %v408_v2, %v253_v4  ;;  %v269_v16 = vmul.f32 %v408_v2, %v254_v5  ;;  %v259_v18 = vsub.f32 %v244_v13, %v407_v0 }
  0x13   : > { %v270_v19 = vmul.f32 %v408_v2, %v255_v9  ;;  %v271_v20 = vmul.f32 %v408_v2, %v256_v10  ;;  %v260_v22 = vsub.f32 %v245_v14, %v407_v0  ;;  %v273_v25 = vmul.f32 %v408_v2, %v258_v17 }
  0x14   : > { %v272_v21 = vmul.f32 %v408_v2, %v257_v11  ;;  %v276_v23 = vmax.f32 %v268_v15, 0.0  ;;  %v277_v24 = vmax.f32 %v269_v16, 0.0  ;;  %v274_v26 = vmul.f32 %v408_v2, %v259_v18 }
  0x15   : > { %v278_v27 = vmax.f32 %v270_v19, 0.0  ;;  %v279_v28 = vmax.f32 %v271_v20, 0.0  ;;  %v275_v30 = vmul.f32 %v408_v2, %v260_v22  ;;  %v281_v31 = vmax.f32 %v273_v25, 0.0 }
  0x16   : > { %v280_v29 = vmax.f32 %v272_v21, 0.0  ;;  %285 = vst.msk [vmem:[%s236_s28] sm:$0xff] %vm284_vm0, %v276_v23  ;;  %286 = vst.msk [vmem:[%s236_s28 + $0x8] sm:$0xff] %vm284_vm0, %v277_v24  ;;  %v282_v32 = vmax.f32 %v274_v26, 0.0 }
  0x17   : > { %287 = vst.msk [vmem:[%s236_s28 + $0x10] sm:$0xff] %vm284_vm0, %v278_v27  ;;  %288 = vst.msk [vmem:[%s236_s28 + $0x18] sm:$0xff] %vm284_vm0, %v279_v28  ;;  %v283_v33 = vmax.f32 %v275_v30, 0.0 }
  0x18   : > { %289 = vst.msk [vmem:[%s236_s28 + $0x20] sm:$0xff] %vm284_vm0, %v280_v29  ;;  %290 = vst.msk [vmem:[%s236_s28 + $0x28] sm:$0xff] %vm284_vm0, %v281_v31 }
  0x19   : > { %291 = vst.msk [vmem:[%s236_s28 + $0x30] sm:$0xff] %vm284_vm0, %v282_v32  ;;  %292 = vst.msk [vmem:[%s236_s28 + $0x38] sm:$0xff] %vm284_vm0, %v283_v33 }
  0x1a PF: > { %s13_s14 = sadd.s32 1, %s459_s14   ;;  %s532_s12 = smov %s455_s13 }
  0x1b   : > { %p10_p5 = scmp.ge.s32.totalorder %s13_s14, 4   ;;  %s533_s13 = smov %s535_s15 }
  0x1d   :  { %12 = sbr.rel (!%p10_p5) target bundleno = 2 (0x2), region = 68 }

// kernel: generator_forward.29
= control target key start
LH: loop header
LB: loop body
LE: loop exit
PB: predicated region body
PF: predicated region fallthrough
CT: control target
= control target key end

     0   :  { %s804_s1 = inlined_call_operand.vmem [shape: bf16[256,128], index: 1, kind: input, shape index: {}]   ;;  %s805_s0 = inlined_call_operand.vmem [shape: bf16[128,256], index: 0, kind: input, shape index: {}]   ;;  %s806_s2 = inlined_call_operand.vmem [shape: f32[1,128], index: 2, kind: input, shape index: {}]   ;;  %s807_s3 = inlined_call_operand.vmem [shape: f32[128,128], index: 3, kind: output, shape index: {}]  }
   0x1   :  { %v579_v0 = vld [vmem:[%s804_s1 + $0x78] sm:$0xff]   ;;  %v581_v2 = vld [vmem:[%s804_s1 + $0x70] sm:$0xff]   ;;  %v583_v4 = vld [vmem:[%s804_s1 + $0x68] sm:$0xff]  }
   0x2   :  { %v580_v1 = vld [vmem:[%s804_s1 + $0x38] sm:$0xff]   ;;  %499 = vmatprep.subr.bf16.mxu0 %v579_v0  ;;  %563 = vmatprep.subr.bf16.mxu1 %v579_v0  ;;  %v582_v3 = vld [vmem:[%s804_s1 + $0x30] sm:$0xff]   ;;  %v584_v5 = vld [vmem:[%s804_s1 + $0x28] sm:$0xff]  }
   0x3   :  { %500 = vmatpush3.bf16.msra.mxu0 %v580_v1  ;;  %571 = vmatpush3.bf16.msra.mxu1 %v580_v1  ;;  %v585_v6 = vld [vmem:[%s804_s1 + $0x60] sm:$0xff]   ;;  %v587_v8 = vld [vmem:[%s804_s1 + $0x58] sm:$0xff]   ;;  %v589_v10 = vld [vmem:[%s804_s1 + $0x50] sm:$0xff]  }
   0x4   :  { %501 = vmatprep.subr.bf16.mxu0 %v581_v2  ;;  %564 = vmatprep.subr.bf16.mxu1 %v581_v2  ;;  %v586_v7 = vld [vmem:[%s804_s1 + $0x20] sm:$0xff]   ;;  %v588_v9 = vld [vmem:[%s804_s1 + $0x18] sm:$0xff]   ;;  %v590_v13 = vld [vmem:[%s804_s1 + $0x10] sm:$0xff]  }
   0x5   :  { %v597_v11 = vld [vmem:[%s805_s0 + $0x4] ss:$8 sps:$4 sm:$0xff]   ;;  %v595_v18 = vld [vmem:[%s805_s0] ss:$8 sps:$4 sm:$0xff]   ;;  %v601_v20 = vld [vmem:[%s805_s0 + $0x14] ss:$8 sps:$4 sm:$0xff]  }
   0x6   :  { %v600_v12 = vld [vmem:[%s805_s0 + $0x44] ss:$8 sps:$4 sm:$0xff]   ;;  %307 = vmatprep.mubr.bf16.mxu0 %v597_v11  ;;  %v598_v19 = vld [vmem:[%s805_s0 + $0x40] ss:$8 sps:$4 sm:$0xff]   ;;  %v603_v21 = vld [vmem:[%s805_s0 + $0x54] ss:$8 sps:$4 sm:$0xff]  }
   0x7   :  { %502 = vmatpush3.bf16.msra.mxu0 %v582_v3  ;;  %572 = vmatpush3.bf16.msra.mxu1 %v582_v3  ;;  %v591_v14 = vld [vmem:[%s804_s1 + $0x48] sm:$0xff]   ;;  %v593_v16 = vld [vmem:[%s804_s1 + $0x40] sm:$0xff]   ;;  %v605_v22 = vld [vmem:[%s805_s0 + $0x10] ss:$8 sps:$4 sm:$0xff]  }
   0x8   :  { %503 = vmatprep.subr.bf16.mxu0 %v583_v4  ;;  %565 = vmatprep.subr.bf16.mxu1 %v583_v4  ;;  %v592_v15 = vld [vmem:[%s804_s1 + $0x8] sm:$0xff]   ;;  %v594_v17 = vld [vmem:[%s804_s1] sm:$0xff]   ;;  %v606_v23 = vld [vmem:[%s805_s0 + $0x50] ss:$8 sps:$4 sm:$0xff]  }
   0x9   :  { %339 = vmatprep.mubr.bf16.mxu1 %v600_v12  ;;  %v607_v24 = vld [vmem:[%s805_s0 + $0x24] ss:$8 sps:$4 sm:$0xff]   ;;  %v611_v26 = vld [vmem:[%s805_s0 + $0x20] ss:$8 sps:$4 sm:$0xff]   ;;  %v613_v28 = vld [vmem:[%s805_s0 + $0x34] ss:$8 sps:$4 sm:$0xff]  }
   0xa   :  { %v609_v25 = vld [vmem:[%s805_s0 + $0x64] ss:$8 sps:$4 sm:$0xff]   ;;  %v612_v27 = vld [vmem:[%s805_s0 + $0x60] ss:$8 sps:$4 sm:$0xff]   ;;  %v615_v29 = vld [vmem:[%s805_s0 + $0x74] ss:$8 sps:$4 sm:$0xff]  }
   0xb   :  { %504 = vmatpush3.bf16.msra.mxu0 %v584_v5  ;;  %573 = vmatpush3.bf16.msra.mxu1 %v584_v5  ;;  %v617_v30 = vld [vmem:[%s805_s0 + $0x30] ss:$8 sps:$4 sm:$0xff]   ;;  %v738_v35 = vld [vmem:[%s806_s2] ss:$0 sm:$0xff] }
   0xc   :  { %505 = vmatprep.subr.bf16.mxu0 %v585_v6  ;;  %566 = vmatprep.subr.bf16.mxu1 %v585_v6  ;;  %v618_v31 = vld [vmem:[%s805_s0 + $0x70] ss:$8 sps:$4 sm:$0xff]  }
   0xf   :  { %506 = vmatpush3.bf16.msra.mxu0 %v586_v7  ;;  %574 = vmatpush3.bf16.msra.mxu1 %v586_v7 }
  0x10   :  { %507 = vmatprep.subr.bf16.mxu0 %v587_v8  ;;  %567 = vmatprep.subr.bf16.mxu1 %v587_v8 }
  0x13   :  { %508 = vmatpush3.bf16.msra.mxu0 %v588_v9  ;;  %575 = vmatpush3.bf16.msra.mxu1 %v588_v9 }
  0x14   :  { %509 = vmatprep.subr.bf16.mxu0 %v589_v10  ;;  %568 = vmatprep.subr.bf16.mxu1 %v589_v10 }
  0x17   :  { %510 = vmatpush3.bf16.msra.mxu0 %v590_v13  ;;  %576 = vmatpush3.bf16.msra.mxu1 %v590_v13 }
  0x18   :  { %511 = vmatprep.subr.bf16.mxu0 %v591_v14  ;;  %569 = vmatprep.subr.bf16.mxu1 %v591_v14 }
  0x1b   :  { %512 = vmatpush3.bf16.msra.mxu0 %v592_v15  ;;  %577 = vmatpush3.bf16.msra.mxu1 %v592_v15 }
  0x1c   :  { %513 = vmatprep.subr.bf16.mxu0 %v593_v16  ;;  %570 = vmatprep.subr.bf16.mxu1 %v593_v16 }
  0x1f   :  { %514 = vmatpush3.bf16.msra.mxu0 %v594_v17  ;;  %578 = vmatpush3.bf16.msra.mxu1 %v594_v17 }
  0x22   :  { %308 = vmatmul.mubr.bf16.vlgmr.msra.gmra.mxu0 %v595_v18  ;;  %340 = vmatmul.mubr.bf16.vlgmr.msra.gmra.mxu1 %v598_v19 }
  0x23   :  { %315 = vmatprep.mubr.bf16.mxu0 %v601_v20  ;;  %347 = vmatprep.mubr.bf16.mxu1 %v603_v21 }
  0x2a   :  { %316 = vmatmul.mubr.bf16.gmra.mxu0 %v605_v22  ;;  %348 = vmatmul.mubr.bf16.gmra.mxu1 %v606_v23 }
  0x2b   :  { %323 = vmatprep.mubr.bf16.mxu0 %v607_v24  ;;  %355 = vmatprep.mubr.bf16.mxu1 %v609_v25 }
  0x32   :  { %324 = vmatmul.mubr.bf16.gmra.mxu0 %v611_v26  ;;  %356 = vmatmul.mubr.bf16.gmra.mxu1 %v612_v27 }
  0x33   :  { %331 = vmatprep.mubr.bf16.mxu0 %v613_v28  ;;  %363 = vmatprep.mubr.bf16.mxu1 %v615_v29 }
  0x3a   :  { %332 = vmatmul.mubr.bf16.gmra.mxu0 %v617_v30  ;;  %364 = vmatmul.mubr.bf16.gmra.mxu1 %v618_v31 }
  0xe2   :  { %v515_v32 = vpop.f32.mrf.mxu0  ;;  %v539_v33 = vpop.f32.mrf.mxu1 }
  0xe4   :  { %v516_v34 = vpop.f32.mrf.mxu0  ;;  %v540_v36 = vpop.f32.mrf.mxu1 }
  0xe5   :  { %v517_v37 = vadd.f32 %v516_v34, %v515_v32  ;;  %v541_v38 = vadd.f32 %v540_v36, %v539_v33 }
  0xe6   :  { %v518_v39 = vpop.f32.mrf.mxu0  ;;  %v542_v40 = vpop.f32.mrf.mxu1 }
  0xe7   :  { %v430_v41 = vadd.f32 %v517_v37, %v738_v35  ;;  %v438_v42 = vadd.f32 %v541_v38, %v738_v35 }
  0xe8   :  { %v519_v43 = vpop.f32.mrf.mxu0  ;;  %v543_v44 = vpop.f32.mrf.mxu1 }
  0xe9   :  { %446 = vst [vmem:[%s807_s3] sm:$0xff] %v430_v41  ;;  %454 = vst [vmem:[%s807_s3 + $0x40] sm:$0xff] %v438_v42  ;;  %v520_v45 = vadd.f32 %v519_v43, %v518_v39  ;;  %v544_v46 = vadd.f32 %v543_v44, %v542_v40 }
  0xea   :  { %v521_v47 = vpop.f32.mrf.mxu0  ;;  %v545_v48 = vpop.f32.mrf.mxu1 }
  0xeb   :  { %v431_v49 = vadd.f32 %v520_v45, %v738_v35  ;;  %v439_v50 = vadd.f32 %v544_v46, %v738_v35 }
  0xec   :  { %v522_v51 = vpop.f32.mrf.mxu0  ;;  %v546_v52 = vpop.f32.mrf.mxu1 }
  0xed   :  { %447 = vst [vmem:[%s807_s3 + $0x8] sm:$0xff] %v431_v49  ;;  %455 = vst [vmem:[%s807_s3 + $0x48] sm:$0xff] %v439_v50  ;;  %v523_v53 = vadd.f32 %v522_v51, %v521_v47  ;;  %v547_v54 = vadd.f32 %v546_v52, %v545_v48 }
  0xee   :  { %v524_v55 = vpop.f32.mrf.mxu0  ;;  %v548_v56 = vpop.f32.mrf.mxu1 }
  0xef   :  { %v432_v57 = vadd.f32 %v523_v53, %v738_v35  ;;  %v440_v58 = vadd.f32 %v547_v54, %v738_v35 }
  0xf0   :  { %v525_v59 = vpop.f32.mrf.mxu0  ;;  %v549_v60 = vpop.f32.mrf.mxu1 }
  0xf1   :  { %448 = vst [vmem:[%s807_s3 + $0x10] sm:$0xff] %v432_v57  ;;  %456 = vst [vmem:[%s807_s3 + $0x50] sm:$0xff] %v440_v58  ;;  %v526_v61 = vadd.f32 %v525_v59, %v524_v55  ;;  %v550_v62 = vadd.f32 %v549_v60, %v548_v56 }
  0xf2   :  { %v527_v63 = vpop.f32.mrf.mxu0  ;;  %v551_v0 = vpop.f32.mrf.mxu1 }
  0xf3   :  { %v433_v1 = vadd.f32 %v526_v61, %v738_v35  ;;  %v441_v2 = vadd.f32 %v550_v62, %v738_v35 }
  0xf4   :  { %v528_v3 = vpop.f32.mrf.mxu0  ;;  %v552_v4 = vpop.f32.mrf.mxu1 }
  0xf5   :  { %449 = vst [vmem:[%s807_s3 + $0x18] sm:$0xff] %v433_v1  ;;  %457 = vst [vmem:[%s807_s3 + $0x58] sm:$0xff] %v441_v2  ;;  %v529_v5 = vadd.f32 %v528_v3, %v527_v63  ;;  %v553_v6 = vadd.f32 %v552_v4, %v551_v0 }
  0xf6   :  { %v530_v7 = vpop.f32.mrf.mxu0  ;;  %v554_v8 = vpop.f32.mrf.mxu1 }
  0xf7   :  { %v434_v9 = vadd.f32 %v529_v5, %v738_v35  ;;  %v442_v10 = vadd.f32 %v553_v6, %v738_v35 }
  0xf8   :  { %v531_v11 = vpop.f32.mrf.mxu0  ;;  %v555_v12 = vpop.f32.mrf.mxu1 }
  0xf9   :  { %450 = vst [vmem:[%s807_s3 + $0x20] sm:$0xff] %v434_v9  ;;  %458 = vst [vmem:[%s807_s3 + $0x60] sm:$0xff] %v442_v10  ;;  %v532_v13 = vadd.f32 %v531_v11, %v530_v7  ;;  %v556_v14 = vadd.f32 %v555_v12, %v554_v8 }
  0xfa   :  { %v533_v15 = vpop.f32.mrf.mxu0  ;;  %v557_v16 = vpop.f32.mrf.mxu1 }
  0xfb   :  { %v435_v17 = vadd.f32 %v532_v13, %v738_v35  ;;  %v443_v18 = vadd.f32 %v556_v14, %v738_v35 }
  0xfc   :  { %v534_v19 = vpop.f32.mrf.mxu0  ;;  %v558_v20 = vpop.f32.mrf.mxu1 }
  0xfd   :  { %451 = vst [vmem:[%s807_s3 + $0x28] sm:$0xff] %v435_v17  ;;  %459 = vst [vmem:[%s807_s3 + $0x68] sm:$0xff] %v443_v18  ;;  %v535_v21 = vadd.f32 %v534_v19, %v533_v15  ;;  %v559_v22 = vadd.f32 %v558_v20, %v557_v16 }
  0xfe   :  { %v536_v23 = vpop.f32.mrf.mxu0  ;;  %v560_v24 = vpop.f32.mrf.mxu1 }
  0xff   :  { %v436_v25 = vadd.f32 %v535_v21, %v738_v35  ;;  %v444_v26 = vadd.f32 %v559_v22, %v738_v35 }
 0x100   :  { %v537_v27 = vpop.f32.mrf.mxu0  ;;  %v561_v28 = vpop.f32.mrf.mxu1 }
 0x101   :  { %452 = vst [vmem:[%s807_s3 + $0x30] sm:$0xff] %v436_v25  ;;  %460 = vst [vmem:[%s807_s3 + $0x70] sm:$0xff] %v444_v26  ;;  %v538_v29 = vadd.f32 %v537_v27, %v536_v23  ;;  %v562_v30 = vadd.f32 %v561_v28, %v560_v24 }
 0x103   :  { %v437_v31 = vadd.f32 %v538_v29, %v738_v35  ;;  %v445_v32 = vadd.f32 %v562_v30, %v738_v35 }
 0x105   :  { %453 = vst [vmem:[%s807_s3 + $0x38] sm:$0xff] %v437_v31  ;;  %461 = vst [vmem:[%s807_s3 + $0x78] sm:$0xff] %v445_v32 }

// kernel: generator_forward.30
= control target key start
LH: loop header
LB: loop body
LE: loop exit
PB: predicated region body
PF: predicated region fallthrough
CT: control target
= control target key end

     0   :  { %s391_s9 = smov 0   ;;  %s393_s10 = smov 0   ;;  %s447_s0 = inlined_call_operand.vmem [shape: f32[2,16,32], index: 0, kind: input, shape index: {}]   ;;  %s448_s1 = inlined_call_operand.vmem [shape: f32[2,1,32], index: 1, kind: output, shape index: {0}]   ;;  %s449_s2 = inlined_call_operand.vmem [shape: f32[2,1,32], index: 2, kind: output, shape index: {1}]  }
   0x1   :  { %s395_s11 = smov 0  }
   0x2 LB: > { %s25_s12 = sadd.s32 1, %s369_s10  ;;  %p318_p0 = scmp.ge.s32.totalorder %s373_s11, 1  ;;  %s373_s11 = sphi %s395_s11, %s13_s11   ;;  %s369_s10 = sphi %s393_s10, %s451_s10   ;;  %s365_s9 = sphi %s391_s9, %s450_s9  }
   0x3   : > { %p27_p1 = scmp.ge.s32.totalorder %s25_s12, 2  ;;  %p134_p2 = scmp.lt.s32.totalorder %s373_s11, 3 }
   0x5   : > { %s453_s12 = smov (%p27_p1, %s25_s12), 0  ;;  %p135_p3 = pnand %p318_p0, %p134_p2 }
   0x6   : > { %p162_p4 = scmp.lt.s32.totalorder (!%p135_p3), %s365_s9, 1 }
   0x7   : > { %138 = sbr.rel (%p135_p3) target bundleno = 66 (0x42), region = 24 }
   0xc   : > { %s455_s9 = smov (!%p162_p4, %s365_s9), 1  ;;  %vm181_vm0 = vcmask 253952   ;;  %vm187_vm1 = vcmask 261120   ;;  %v375_v0 = vmov 0.0  }
   0xd   : > { %s323_s13 = sshll.u32 %s455_s9, 4  ;;  %s412_s16 = scalar_lea.vmem %s448_s1, %s455_s9 }
   0xe   : > { %s169_s19 = scalar_lea.vmem %s447_s0, %s323_s13  ;;  %182 = vst.msk [vmem:[%s412_s16] sm:$0x1] %vm181_vm0, %v375_v0  ;;  %s422_s22 = scalar_lea.vmem %s449_s2, %s455_s9 }
   0xf   : > { %v184_v1 = vld [vmem:[%s169_s19] sm:$0xff]  ;;  %v185_v2 = vld [vmem:[%s169_s19 + $0x8] sm:$0xff]  ;;  %183 = vst.msk [vmem:[%s422_s22] sm:$0x1] %vm181_vm0, %v375_v0 }
  0x10   : > { %v201_v3 = vmul.f32 %v184_v1, %v184_v1  ;;  %v202_v4 = vmul.f32 %v185_v2, %v185_v2  ;;  %v188_v5 = vsel %vm187_vm1, %v184_v1, 0.0  ;;  %v189_v6 = vsel %vm187_vm1, %v185_v2, 0.0 }
  0x11   : > { %v190_v7 = vadd.f32 %v189_v6, %v188_v5 }
  0x12   : > { %v203_v8 = vsel %vm187_vm1, %v201_v3, 0.0  ;;  %v204_v9 = vsel %vm187_vm1, %v202_v4, 0.0 }
  0x13   : > { %v191_v10 = vrot.slane %v190_v7, 4  ;;  %v205_v11 = vadd.f32 %v204_v9, %v203_v8 }
  0x15   : > { %v192_v12 = vadd.f32 %v191_v10, %v190_v7  ;;  %v206_v13 = vrot.slane %v205_v11, 4  ;;  %v186_v20 = vld [vmem:[%s412_s16] sm:$0x1] }
  0x16   : > { %v200_v23 = vld [vmem:[%s422_s22] sm:$0x1] }
  0x17   : > { %v193_v14 = vrot.slane %v192_v12, 2  ;;  %v207_v15 = vadd.f32 %v206_v13, %v205_v11 }
  0x19   : > { %v194_v16 = vadd.f32 %v193_v14, %v192_v12  ;;  %v208_v17 = vrot.slane %v207_v15, 2 }
  0x1b   : > { %v195_v18 = vrot.slane %v194_v16, 1  ;;  %v209_v19 = vadd.f32 %v208_v17, %v207_v15 }
  0x1d   : > { %v196_v21 = vadd.f32 %v195_v18, %v194_v16  ;;  %v210_v22 = vrot.slane %v209_v19, 1 }
  0x1f   : > { %v197_v24 = vadd.f32 %v196_v21, %v186_v20  ;;  %v211_v25 = vadd.f32 %v210_v22, %v209_v19 }
  0x21   : > { %199 = vst.msk [vmem:[%s412_s16] sm:$0x1] %vm181_vm0, %v197_v24  ;;  %v212_v26 = vadd.f32 %v211_v25, %v200_v23 }
  0x23   : > { %213 = vst.msk [vmem:[%s422_s22] sm:$0x1] %vm181_vm0, %v212_v26 }
  0x28   : > { %v217_v27 = vld [vmem:[%s412_s16] sm:$0x1] }
  0x29   : > { %v218_v28 = vmul.f32 0.0625, %v217_v27 }
  0x2a   : > { %v219_v29 = vld [vmem:[%s422_s22] sm:$0x1] }
  0x2b   : > { %v221_v30 = vmul.f32 %v218_v28, %v218_v28  ;;  %224 = vst.msk [vmem:[%s412_s16] sm:$0x1] %vm181_vm0, %v218_v28  ;;  %v220_v31 = vmul.f32 0.0625, %v219_v29 }
  0x2d   : > { %v222_v32 = vsub.f32 %v220_v31, %v221_v30 }
  0x2f   : > { %v223_v33 = vmax.f32 %v222_v32, 0.0 }
  0x31   : > { %v225_v34 = vadd.f32 1e-05, %v223_v33 }
  0x33   : > { %349 = vrsqrt.f32 %v225_v34 }
  0x40   : > { %v350_v35 = vpop.eup %349 }
  0x41   : > { %227 = vst.msk [vmem:[%s422_s22] sm:$0x1] %vm181_vm0, %v350_v35 }
  0x42 PF: > { %s13_s11 = sadd.s32 1, %s373_s11   ;;  %s450_s9 = smov %s369_s10 }
  0x43   : > { %p10_p5 = scmp.ge.s32.totalorder %s13_s11, 4   ;;  %s451_s10 = smov %s453_s12 }
  0x45   :  { %12 = sbr.rel (!%p10_p5) target bundleno = 2 (0x2), region = 74 }

// kernel: generator_forward.32
= control target key start
LH: loop header
LB: loop body
LE: loop exit
PB: predicated region body
PF: predicated region fallthrough
CT: control target
= control target key end

     0   :  { %s317_s6 = smov 0   ;;  %s352_s0 = inlined_call_operand.vmem [shape: f32[2,16,32], index: 0, kind: input, shape index: {}]   ;;  %s353_s1 = inlined_call_operand.vmem [shape: f32[2,16,32], index: 1, kind: output, shape index: {}]  }
   0x1 LB: > { %s228_s7 = sadd.s32 4294967295, %s293_s6   ;;  %p232_p0 = scmp.ge.s32.totalorder %s293_s6, 1  ;;  %s293_s6 = sphi %s317_s6, %s11_s6  }
   0x2   : > { %p87_p1 = scmp.lt.s32.totalorder %s293_s6, 3 }
   0x4   : > { %p88_p2 = pnand %p232_p0, %p87_p1 }
   0x5   : > { %p107_p3 = scmp.lt.s32.totalorder (!%p88_p2), %s228_s7, 1  ;;  %s333_s15 = smov (!%p88_p2), 0  }
   0x6   : > { %91 = sbr.rel (%p88_p2) target bundleno = 76 (0x4c), region = 24 }
   0xb   : > { %s355_s7 = smov (!%p107_p3, %s228_s7), 1 }
   0xc   : > { %s239_s8 = sshll.u32 %s355_s7, 4 }
   0xd   : > { %s111_s11 = scalar_lea.vmem %s352_s0, %s239_s8  ;;  %s331_s14 = scalar_lea.vmem %s353_s1, %s239_s8 }
   0xe   : > { %v117_v0 = vld [vmem:[%s111_s11] sm:$0xff]   ;;  %v118_v1 = vld [vmem:[%s111_s11 + $0x8] sm:$0xff]  }
   0xf   : > { %v295_v2 = vmov %v118_v1   ;;  %v299_v3 = vmov %v117_v0  }
  0x10 LB: >> { %vm127_vm0 = vcmask 261120   ;;  %s124_s15 = sadd.s32 1, %s305_s15   ;;  %s305_s15 = sphi %s333_s15, %s124_s15   ;;  %v301_v3 = vphi %v299_v3, %v300_v3   ;;  %v297_v2 = vphi %v295_v2, %v296_v2  }
  0x11   : >> { %v128_v4 = vsel %vm127_vm0, %v301_v3, 0.0  ;;  %v129_v5 = vsel %vm127_vm0, %v297_v2, 0.0  ;;  %p121_p4 = scmp.ge.s32.totalorder %s124_s15, 3  }
  0x12   : >> { %v130_v6 = vadd.f32 %v129_v5, %v128_v4 }
  0x14   : >> { %v131_v7 = vrot.slane %v130_v6, 4 }
  0x16   : >> { %v132_v8 = vadd.f32 %v131_v7, %v130_v6 }
  0x18   : >> { %v133_v9 = vrot.slane %v132_v8, 2 }
  0x1a   : >> { %v134_v10 = vadd.f32 %v133_v9, %v132_v8 }
  0x1c   : >> { %v135_v11 = vrot.slane %v134_v10, 1 }
  0x1e   : >> { %v136_v12 = vadd.f32 %v135_v11, %v134_v10 }
  0x20   : >> { %v138_v13 = vmul.f32 0.0625, %v136_v12 }
  0x22   : >> { %v139_v14 = vsub.f32 %v301_v3, %v138_v13  ;;  %v140_v15 = vsub.f32 %v297_v2, %v138_v13 }
  0x24   : >> { %v141_v16 = vmul.f32 %v139_v14, %v139_v14  ;;  %v142_v17 = vmul.f32 %v140_v15, %v140_v15 }
  0x26   : >> { %v143_v18 = vsel %vm127_vm0, %v141_v16, 0.0  ;;  %v144_v19 = vsel %vm127_vm0, %v142_v17, 0.0 }
  0x27   : >> { %v145_v20 = vadd.f32 %v144_v19, %v143_v18 }
  0x29   : >> { %v146_v21 = vrot.slane %v145_v20, 4 }
  0x2b   : >> { %v147_v22 = vadd.f32 %v146_v21, %v145_v20 }
  0x2d   : >> { %v148_v23 = vrot.slane %v147_v22, 2 }
  0x2f   : >> { %v149_v24 = vadd.f32 %v148_v23, %v147_v22 }
  0x31   : >> { %v150_v25 = vrot.slane %v149_v24, 1 }
  0x33   : >> { %v151_v26 = vadd.f32 %v150_v25, %v149_v24 }
  0x35   : >> { %v152_v27 = vmul.f32 0.0625, %v151_v26 }
  0x37   : >> { %v153_v28 = vadd.f32 1e-05, %v152_v27 }
  0x39   : >> { %273 = vrsqrt.f32 %v153_v28 }
  0x46   : >> { %v274_v29 = vpop.eup %273 }
  0x47   : >> { %v155_v30 = vmul.f32 %v274_v29, %v139_v14  ;;  %v156_v31 = vmul.f32 %v274_v29, %v140_v15  ;;  %123 = sbr.rel (!%p121_p4) target bundleno = 16 (0x10), region = 61 }
  0x49   : >> { %v157_v32 = vadd.f32 %v301_v3, %v155_v30   ;;  %v158_v33 = vadd.f32 %v297_v2, %v156_v31  }
  0x4b   : >> { %v296_v2 = vmov %v158_v33   ;;  %v300_v3 = vmov %v157_v32   ;;  %160 = vst.msk [vmem:[%s331_s14] sm:$0xff] (%p121_p4), %vm127_vm0, %v157_v32  ;;  %161 = vst.msk [vmem:[%s331_s14 + $0x8] sm:$0xff] (%p121_p4), %vm127_vm0, %v158_v33 }
  0x4c PF: > { %s11_s6 = sadd.s32 1, %s293_s6  }
  0x4d   : > { %p8_p5 = scmp.ge.s32.totalorder %s11_s6, 4  }
  0x4f   :  { %10 = sbr.rel (!%p8_p5) target bundleno = 1 (0x1), region = 72 }

// kernel: generator_forward.31
= control target key start
LH: loop header
LB: loop body
LE: loop exit
PB: predicated region body
PF: predicated region fallthrough
CT: control target
= control target key end

     0   :  { %s451_s12 = smov 0   ;;  %s453_s13 = smov 0   ;;  %s487_s0 = inlined_call_operand.vmem [shape: f32[2,16,32], index: 0, kind: input, shape index: {}]   ;;  %s488_s1 = inlined_call_operand.vmem [shape: f32[2,1,32], index: 1, kind: input, shape index: {}]   ;;  %s489_s2 = inlined_call_operand.vmem [shape: f32[2,1,32], index: 2, kind: input, shape index: {}]   ;;  %s490_s3 = inlined_call_operand.vmem [shape: f32[2,16,32], index: 3, kind: output, shape index: {}]  }
   0x1   :  { %s455_s14 = smov 0  }
   0x2 LB: > { %s25_s15 = sadd.s32 1, %s425_s13  ;;  %p372_p0 = scmp.ge.s32.totalorder %s429_s14, 1  ;;  %s429_s14 = sphi %s455_s14, %s13_s14   ;;  %s425_s13 = sphi %s453_s13, %s492_s13   ;;  %s421_s12 = sphi %s451_s12, %s491_s12  }
   0x3   : > { %p27_p1 = scmp.ge.s32.totalorder %s25_s15, 2  ;;  %p174_p2 = scmp.lt.s32.totalorder %s429_s14, 3 }
   0x5   : > { %s494_s15 = smov (%p27_p1, %s25_s15), 0  ;;  %p175_p3 = pnand %p372_p0, %p174_p2 }
   0x6   : > { %p213_p4 = scmp.lt.s32.totalorder (!%p175_p3), %s421_s12, 1 }
   0x7   : > { %178 = sbr.rel (%p175_p3) target bundleno = 23 (0x17), region = 32 }
   0xc   : > { %s496_s12 = smov (!%p213_p4, %s421_s12), 1  ;;  %vm260_vm0 = vcmask 261120  }
   0xd   : > { %s381_s16 = sshll.u32 %s496_s12, 4  ;;  %s224_s19 = scalar_lea.vmem %s488_s1, %s496_s12 }
   0xe   : > { %s220_s22 = scalar_lea.vmem %s487_s0, %s381_s16  ;;  %s227_s25 = scalar_lea.vmem %s489_s2, %s496_s12  ;;  %v377_v0 = vld [vmem:[%s224_s19] ss:$0 sm:$0xff] }
   0xf   : > { %v238_v1 = vld [vmem:[%s220_s22] sm:$0xff]  ;;  %v239_v2 = vld [vmem:[%s220_s22 + $0x8] sm:$0xff]  ;;  %s236_s28 = scalar_lea.vmem %s490_s3, %s381_s16 }
  0x10   : > { %v378_v3 = vld [vmem:[%s227_s25] ss:$0 sm:$0xff]  ;;  %v247_v4 = vsub.f32 %v238_v1, %v377_v0  ;;  %v248_v5 = vsub.f32 %v239_v2, %v377_v0 }
  0x12   : > { %v256_v6 = vmul.f32 %v378_v3, %v247_v4  ;;  %v257_v7 = vmul.f32 %v378_v3, %v248_v5 }
  0x14   : > { %v258_v8 = vmax.f32 %v256_v6, 0.0  ;;  %v259_v9 = vmax.f32 %v257_v7, 0.0 }
  0x16   : > { %261 = vst.msk [vmem:[%s236_s28] sm:$0xff] %vm260_vm0, %v258_v8  ;;  %262 = vst.msk [vmem:[%s236_s28 + $0x8] sm:$0xff] %vm260_vm0, %v259_v9 }
  0x17 PF: > { %s13_s14 = sadd.s32 1, %s429_s14   ;;  %s491_s12 = smov %s425_s13 }
  0x18   : > { %p10_p5 = scmp.ge.s32.totalorder %s13_s14, 4   ;;  %s492_s13 = smov %s494_s15 }
  0x1a   :  { %12 = sbr.rel (!%p10_p5) target bundleno = 2 (0x2), region = 68 }

// kernel: generator_forward.45
= control target key start
LH: loop header
LB: loop body
LE: loop exit
PB: predicated region body
PF: predicated region fallthrough
CT: control target
= control target key end

     0   :  { %s1743_s12 = smov 0   ;;  %s1745_s13 = smov 0   ;;  %s2028_s0 = inlined_call_operand.vmem [shape: bf16[512,512], index: 0, kind: input, shape index: {}]   ;;  %s2029_s1 = inlined_call_operand.vmem [shape: bf16[512,128], index: 1, kind: input, shape index: {}]   ;;  %s2030_s2 = inlined_call_operand.vmem [shape: f32[1,128], index: 2, kind: input, shape index: {}]   ;;  %s2031_s3 = inlined_call_operand.vmem [shape: f32[512,128], index: 3, kind: output, shape index: {}]  }
   0x1   :  { %s1747_s14 = smov 0   ;;  %s1749_s15 = smov 0  }
   0x2   :  { %s1751_s16 = smov 0   ;;  %s1753_s17 = smov 0  }
   0x3   :  { %s1755_s18 = smov 0  }
   0x4 LB: > { %s25_s19 = sadd.s32 1, %s1712_s16  ;;  %s32_s20 = sadd.s32 1, %s1716_s17  ;;  %s1720_s18 = sphi %s1755_s18, %s13_s18   ;;  %s1716_s17 = sphi %s1753_s17, %s2037_s17   ;;  %s1712_s16 = sphi %s1751_s16, %s2036_s16   ;;  %s1708_s15 = sphi %s1749_s15, %s2035_s15   ;;  %s1704_s14 = sphi %s1747_s14, %s2034_s14   ;;  %s1700_s13 = sphi %s1745_s13, %s2033_s13   ;;  %s1696_s12 = sphi %s1743_s12, %s2032_s12  }
   0x5   : > { %p26_p0 = scmp.ge.s32.totalorder %s25_s19, 2  ;;  %p48_p1 = scmp.ne.s32.totalorder %s1700_s13, %s1696_s12 }
   0x6   : > { %p49_p2 = scmp.eq.s32.totalorder %s1720_s18, 0  ;;  %s41_s24 = sadd.s32 1, %s1700_s13 }
   0x7   : > { %s2039_s19 = smov (%p26_p0, %s25_s19), 0  ;;  %s2041_s20 = smov (!%p26_p0, %s32_s20), %s1716_s17 }
   0x8   : > { %p50_p3 = por %p49_p2, %p48_p1  ;;  %p34_p4 = scmp.ge.s32.totalorder %s2041_s20, 2 }
   0x9   : > { %s37_s21 = ssub.s32 %s1712_s16, %s2039_s19  ;;  %p1287_p6 = scmp.ge.s32.totalorder %s1720_s18, 4 }
   0xa   : > { %s2043_s20 = smov (%p34_p4, %s2041_s20), 0 }
   0xb   : > { %s36_s22 = ssub.s32 %s1716_s17, %s2043_s20  ;;  %162 = sbr.rel (%p1287_p6) target bundleno = 39 (0x27), region = 20 }
   0xc   : > { %s38_s23 = sor.u32 %s37_s21, %s36_s22 }
   0xd   : > { %p39_p5 = scmp.eq.s32.totalorder %s38_s23, 0 }
   0xf   : > { %s1794_s25 = scalar_select %p39_p5, %s1700_s13, %s41_s24  }
  0x10   : > { %165 = sbr.rel (!%p50_p3) target bundleno = 39 (0x27), region = 24  ;;  %s167_s26 = sand.u32 (%p50_p3), 1, %s1700_s13  }
  0x11   : > { %s1290_s27 = sshll.u32 (%p50_p3), %s1712_s16, 1  ;;  %s1288_s28 = sshll.u32 (%p50_p3), %s167_s26, 8 }
  0x12   : > { %s1352_s29 = sshll.u32 (%p50_p3), %s1716_s17, 7  ;;  %s1808_s8 = scalar_lea.vmem (%p50_p3), [#allocation3], %s1288_s28 }
  0x13   : > { %s173_s30 = sadd.s32 (%p50_p3), %s1352_s29, %s1290_s27 }
  0x14   : > { %s1292_s4 = sshll.u32 (%p50_p3), %s173_s30, 2 }
  0x15   : > { %s1803_s7 = scalar_lea.vmem %s2028_s0, %s1292_s4 }
  0x16   : > { %v266_v0 = vld [vmem:[%s1803_s7] sm:$0xff]  ;;  %v268_v1 = vld [vmem:[%s1803_s7 + $0x10] sm:$0xff] }
  0x17   : > { %v270_v2 = vld [vmem:[%s1803_s7 + $0x20] sm:$0xff]  ;;  %267 = vst [vmem:[%s1808_s8] sm:$0xff] %v266_v0  ;;  %269 = vst [vmem:[%s1808_s8 + $0x8] sm:$0xff] %v268_v1  ;;  %v272_v3 = vld [vmem:[%s1803_s7 + $0x30] sm:$0xff] }
  0x18   : > { %271 = vst [vmem:[%s1808_s8 + $0x10] sm:$0xff] %v270_v2  ;;  %v274_v4 = vld [vmem:[%s1803_s7 + $0x40] sm:$0xff]  ;;  %v276_v5 = vld [vmem:[%s1803_s7 + $0x50] sm:$0xff]  ;;  %273 = vst [vmem:[%s1808_s8 + $0x18] sm:$0xff] %v272_v3 }
  0x19   : > { %275 = vst [vmem:[%s1808_s8 + $0x20] sm:$0xff] %v274_v4  ;;  %277 = vst [vmem:[%s1808_s8 + $0x28] sm:$0xff] %v276_v5  ;;  %v278_v6 = vld [vmem:[%s1803_s7 + $0x60] sm:$0xff]  ;;  %v280_v7 = vld [vmem:[%s1803_s7 + $0x70] sm:$0xff] }
  0x1a   : > { %v282_v8 = vld [vmem:[%s1803_s7 + $0x80] sm:$0xff]  ;;  %279 = vst [vmem:[%s1808_s8 + $0x30] sm:$0xff] %v278_v6  ;;  %281 = vst [vmem:[%s1808_s8 + $0x38] sm:$0xff] %v280_v7  ;;  %v284_v9 = vld [vmem:[%s1803_s7 + $0x90] sm:$0xff] }
  0x1b   : > { %283 = vst [vmem:[%s1808_s8 + $0x40] sm:$0xff] %v282_v8  ;;  %v286_v10 = vld [vmem:[%s1803_s7 + $0xa0] sm:$0xff]  ;;  %v288_v11 = vld [vmem:[%s1803_s7 + $0xb0] sm:$0xff]  ;;  %285 = vst [vmem:[%s1808_s8 + $0x48] sm:$0xff] %v284_v9 }
  0x1c   : > { %287 = vst [vmem:[%s1808_s8 + $0x50] sm:$0xff] %v286_v10  ;;  %289 = vst [vmem:[%s1808_s8 + $0x58] sm:$0xff] %v288_v11  ;;  %v290_v12 = vld [vmem:[%s1803_s7 + $0xc0] sm:$0xff]  ;;  %v292_v13 = vld [vmem:[%s1803_s7 + $0xd0] sm:$0xff] }
  0x1d   : > { %v294_v14 = vld [vmem:[%s1803_s7 + $0xe0] sm:$0xff]  ;;  %291 = vst [vmem:[%s1808_s8 + $0x60] sm:$0xff] %v290_v12  ;;  %293 = vst [vmem:[%s1808_s8 + $0x68] sm:$0xff] %v292_v13  ;;  %v296_v15 = vld [vmem:[%s1803_s7 + $0xf0] sm:$0xff] }
  0x1e   : > { %295 = vst [vmem:[%s1808_s8 + $0x70] sm:$0xff] %v294_v14  ;;  %v298_v16 = vld [vmem:[%s1803_s7 + $0x100] sm:$0xff]  ;;  %v300_v17 = vld [vmem:[%s1803_s7 + $0x110] sm:$0xff]  ;;  %297 = vst [vmem:[%s1808_s8 + $0x78] sm:$0xff] %v296_v15 }
  0x1f   : > { %299 = vst [vmem:[%s1808_s8 + $0x80] sm:$0xff] %v298_v16  ;;  %301 = vst [vmem:[%s1808_s8 + $0x88] sm:$0xff] %v300_v17  ;;  %v302_v18 = vld [vmem:[%s1803_s7 + $0x120] sm:$0xff]  ;;  %v304_v19 = vld [vmem:[%s1803_s7 + $0x130] sm:$0xff] }
  0x20   : > { %v306_v20 = vld [vmem:[%s1803_s7 + $0x140] sm:$0xff]  ;;  %303 = vst [vmem:[%s1808_s8 + $0x90] sm:$0xff] %v302_v18  ;;  %305 = vst [vmem:[%s1808_s8 + $0x98] sm:$0xff] %v304_v19  ;;  %v308_v21 = vld [vmem:[%s1803_s7 + $0x150] sm:$0xff] }
  0x21   : > { %307 = vst [vmem:[%s1808_s8 + $0xa0] sm:$0xff] %v306_v20  ;;  %v310_v22 = vld [vmem:[%s1803_s7 + $0x160] sm:$0xff]  ;;  %v312_v23 = vld [vmem:[%s1803_s7 + $0x170] sm:$0xff]  ;;  %309 = vst [vmem:[%s1808_s8 + $0xa8] sm:$0xff] %v308_v21 }
  0x22   : > { %311 = vst [vmem:[%s1808_s8 + $0xb0] sm:$0xff] %v310_v22  ;;  %313 = vst [vmem:[%s1808_s8 + $0xb8] sm:$0xff] %v312_v23  ;;  %v314_v24 = vld [vmem:[%s1803_s7 + $0x180] sm:$0xff]  ;;  %v316_v25 = vld [vmem:[%s1803_s7 + $0x190] sm:$0xff] }
  0x23   : > { %v318_v26 = vld [vmem:[%s1803_s7 + $0x1a0] sm:$0xff]  ;;  %315 = vst [vmem:[%s1808_s8 + $0xc0] sm:$0xff] %v314_v24  ;;  %317 = vst [vmem:[%s1808_s8 + $0xc8] sm:$0xff] %v316_v25  ;;  %v320_v27 = vld [vmem:[%s1803_s7 + $0x1b0] sm:$0xff] }
  0x24   : > { %319 = vst [vmem:[%s1808_s8 + $0xd0] sm:$0xff] %v318_v26  ;;  %v322_v28 = vld [vmem:[%s1803_s7 + $0x1c0] sm:$0xff]  ;;  %v324_v29 = vld [vmem:[%s1803_s7 + $0x1d0] sm:$0xff]  ;;  %321 = vst [vmem:[%s1808_s8 + $0xd8] sm:$0xff] %v320_v27 }
  0x25   : > { %323 = vst [vmem:[%s1808_s8 + $0xe0] sm:$0xff] %v322_v28  ;;  %325 = vst [vmem:[%s1808_s8 + $0xe8] sm:$0xff] %v324_v29  ;;  %v326_v30 = vld [vmem:[%s1803_s7 + $0x1e0] sm:$0xff]  ;;  %v328_v31 = vld [vmem:[%s1803_s7 + $0x1f0] sm:$0xff] }
  0x26   : > { %327 = vst [vmem:[%s1808_s8 + $0xf0] sm:$0xff] %v326_v30  ;;  %329 = vst [vmem:[%s1808_s8 + $0xf8] sm:$0xff] %v328_v31 }
  0x27 PF: > { %p1293_p7 = scmp.ge.s32.totalorder %s1720_s18, 1  ;;  %p346_p8 = scmp.lt.s32.totalorder %s1720_s18, 5 }
  0x29   : > { %p347_p9 = pnand %p1293_p7, %p346_p8 }
  0x2a   : > { %s353_s9 = sand.u32 (!%p347_p9), 1, %s1696_s12   ;;  %s1295_s10 = sshll.u32 (!%p347_p9), %s1704_s14, 5 }
  0x2b   : > { %350 = sbr.rel (%p347_p9) target bundleno = 415 (0x19f), region = 66  ;;  %s1294_s11 = sshll.u32 (!%p347_p9), %s353_s9, 8 }
  0x2c   : > { %p393_p10 = scmp.lt.s32.totalorder (!%p347_p9), %s1295_s10, 63  ;;  %s1297_s21 = sshll.u32 (!%p347_p9), %s1708_s15, 5 }
  0x2d   : > { %p405_p11 = scmp.lt.s32.totalorder (!%p347_p9), %s1297_s21, 63  ;;  %s1886_s12 = scalar_lea.vmem (!%p347_p9), [#allocation3], %s1294_s11 }
  0x2e   : > { %p1299_p12 = scmp.ne.s32.totalorder (!%p347_p9), %s1704_s14, 0 }
  0x30   : > { %s2045_s10 = smov (!%p393_p10, %s1295_s10), 63  ;;  %s2047_s21 = smov (!%p405_p11, %s1297_s21), 63 }
  0x31   : > { %s1296_s22 = sshll.u32 %s2045_s10, 2  ;;  %s1298_s27 = sshll.u32 %s2047_s21, 3 }
  0x32   : > { %s1879_s26 = scalar_lea.vmem %s2029_s1, %s1296_s22  ;;  %s1884_s30 = scalar_lea.vmem %s2031_s3, %s1298_s27 }
  0x33   : > { %417 = sbr.rel (%p1299_p12) target bundleno = 73 (0x49), region = 74 }
  0x38   : > { %v1722_v32 = vmov 0.0  }
  0x39   : > { %418 = vst [vmem:[#allocation2 + $0xb0] sm:$0xff] %v1722_v32  ;;  %419 = vst [vmem:[#allocation2] sm:$0xff] %v1722_v32 }
  0x3a   : > { %420 = vst [vmem:[#allocation2 + $0xd8] sm:$0xff] %v1722_v32  ;;  %421 = vst [vmem:[#allocation2 + $0x18] sm:$0xff] %v1722_v32 }
  0x3b   : > { %422 = vst [vmem:[#allocation2 + $0x50] sm:$0xff] %v1722_v32  ;;  %423 = vst [vmem:[#allocation2 + $0x68] sm:$0xff] %v1722_v32 }
  0x3c   : > { %424 = vst [vmem:[#allocation2 + $0x30] sm:$0xff] %v1722_v32  ;;  %425 = vst [vmem:[#allocation2 + $0x48] sm:$0xff] %v1722_v32 }
  0x3d   : > { %426 = vst [vmem:[#allocation2 + $0x80] sm:$0xff] %v1722_v32  ;;  %427 = vst [vmem:[#allocation2 + $0x88] sm:$0xff] %v1722_v32 }
  0x3e   : > { %428 = vst [vmem:[#allocation2 + $0xe8] sm:$0xff] %v1722_v32  ;;  %429 = vst [vmem:[#allocation2 + $0xb8] sm:$0xff] %v1722_v32 }
  0x3f   : > { %430 = vst [vmem:[#allocation2 + $0x60] sm:$0xff] %v1722_v32  ;;  %431 = vst [vmem:[#allocation2 + $0xf0] sm:$0xff] %v1722_v32 }
  0x40   : > { %432 = vst [vmem:[#allocation2 + $0x8] sm:$0xff] %v1722_v32  ;;  %433 = vst [vmem:[#allocation2 + $0x78] sm:$0xff] %v1722_v32 }
  0x41   : > { %434 = vst [vmem:[#allocation2 + $0x38] sm:$0xff] %v1722_v32  ;;  %435 = vst [vmem:[#allocation2 + $0x58] sm:$0xff] %v1722_v32 }
  0x42   : > { %436 = vst [vmem:[#allocation2 + $0x40] sm:$0xff] %v1722_v32  ;;  %437 = vst [vmem:[#allocation2 + $0xc8] sm:$0xff] %v1722_v32 }
  0x43   : > { %438 = vst [vmem:[#allocation2 + $0xe0] sm:$0xff] %v1722_v32  ;;  %439 = vst [vmem:[#allocation2 + $0x90] sm:$0xff] %v1722_v32 }
  0x44   : > { %440 = vst [vmem:[#allocation2 + $0x70] sm:$0xff] %v1722_v32  ;;  %441 = vst [vmem:[#allocation2 + $0xc0] sm:$0xff] %v1722_v32 }
  0x45   : > { %442 = vst [vmem:[#allocation2 + $0xa8] sm:$0xff] %v1722_v32  ;;  %443 = vst [vmem:[#allocation2 + $0xd0] sm:$0xff] %v1722_v32 }
  0x46   : > { %444 = vst [vmem:[#allocation2 + $0x10] sm:$0xff] %v1722_v32  ;;  %445 = vst [vmem:[#allocation2 + $0x28] sm:$0xff] %v1722_v32 }
  0x47   : > { %446 = vst [vmem:[#allocation2 + $0xa0] sm:$0xff] %v1722_v32  ;;  %447 = vst [vmem:[#allocation2 + $0xf8] sm:$0xff] %v1722_v32 }
  0x48   : > { %448 = vst [vmem:[#allocation2 + $0x20] sm:$0xff] %v1722_v32  ;;  %449 = vst [vmem:[#allocation2 + $0x98] sm:$0xff] %v1722_v32 }
  0x49 PF: > { %v1538_v33 = vld [vmem:[%s1879_s26 + $0x78] sm:$0xff]   ;;  %v1540_v35 = vld [vmem:[%s1879_s26 + $0x70] sm:$0xff]   ;;  %v1542_v37 = vld [vmem:[%s1879_s26 + $0x68] sm:$0xff]   ;;  %p1348_p13 = scmp.ne.s32.totalorder %s1704_s14, 1 }
  0x4a   : > { %v1539_v34 = vld [vmem:[%s1879_s26 + $0x38] sm:$0xff]   ;;  %1353 = vmatprep.subr.bf16.mxu0 %v1538_v33  ;;  %1465 = vmatprep.subr.bf16.mxu1 %v1538_v33  ;;  %v1541_v36 = vld [vmem:[%s1879_s26 + $0x30] sm:$0xff]   ;;  %v1543_v38 = vld [vmem:[%s1879_s26 + $0x28] sm:$0xff]  }
  0x4b   : > { %1354 = vmatpush3.bf16.msra.mxu0 %v1539_v34  ;;  %1473 = vmatpush3.bf16.msra.mxu1 %v1539_v34  ;;  %v1544_v39 = vld [vmem:[%s1879_s26 + $0x60] sm:$0xff]   ;;  %v1546_v41 = vld [vmem:[%s1879_s26 + $0x58] sm:$0xff]   ;;  %v1548_v43 = vld [vmem:[%s1879_s26 + $0x50] sm:$0xff]  }
  0x4c   : > { %1355 = vmatprep.subr.bf16.mxu0 %v1540_v35  ;;  %1466 = vmatprep.subr.bf16.mxu1 %v1540_v35  ;;  %v1545_v40 = vld [vmem:[%s1879_s26 + $0x20] sm:$0xff]   ;;  %v1547_v42 = vld [vmem:[%s1879_s26 + $0x18] sm:$0xff]   ;;  %v1549_v46 = vld [vmem:[%s1879_s26 + $0x10] sm:$0xff]  }
  0x4d   : > { %v1556_v44 = vld [vmem:[%s1886_s12 + $0x4] ss:$8 sps:$4 sm:$0xff]   ;;  %v1554_v51 = vld [vmem:[%s1886_s12] ss:$8 sps:$4 sm:$0xff]   ;;  %v1560_v53 = vld [vmem:[%s1886_s12 + $0x14] ss:$8 sps:$4 sm:$0xff]  }
  0x4e   : > { %v1559_v45 = vld [vmem:[%s1886_s12 + $0x84] ss:$8 sps:$4 sm:$0xff]   ;;  %834 = vmatprep.mubr.bf16.mxu0 %v1556_v44  ;;  %v1557_v52 = vld [vmem:[%s1886_s12 + $0x80] ss:$8 sps:$4 sm:$0xff]   ;;  %v1562_v54 = vld [vmem:[%s1886_s12 + $0x94] ss:$8 sps:$4 sm:$0xff]  }
  0x4f   : > { %1356 = vmatpush3.bf16.msra.mxu0 %v1541_v36  ;;  %1474 = vmatpush3.bf16.msra.mxu1 %v1541_v36  ;;  %v1550_v47 = vld [vmem:[%s1879_s26 + $0x48] sm:$0xff]   ;;  %v1552_v49 = vld [vmem:[%s1879_s26 + $0x40] sm:$0xff]   ;;  %v1564_v55 = vld [vmem:[%s1886_s12 + $0x10] ss:$8 sps:$4 sm:$0xff]  }
  0x50   : > { %1357 = vmatprep.subr.bf16.mxu0 %v1542_v37  ;;  %1467 = vmatprep.subr.bf16.mxu1 %v1542_v37  ;;  %v1551_v48 = vld [vmem:[%s1879_s26 + $0x8] sm:$0xff]   ;;  %v1553_v50 = vld [vmem:[%s1879_s26] sm:$0xff]   ;;  %v1565_v56 = vld [vmem:[%s1886_s12 + $0x90] ss:$8 sps:$4 sm:$0xff]  }
  0x51   : > { %898 = vmatprep.mubr.bf16.mxu1 %v1559_v45  ;;  %v1566_v57 = vld [vmem:[%s1886_s12 + $0x24] ss:$8 sps:$4 sm:$0xff]   ;;  %v1570_v59 = vld [vmem:[%s1886_s12 + $0x20] ss:$8 sps:$4 sm:$0xff]   ;;  %v1572_v61 = vld [vmem:[%s1886_s12 + $0x34] ss:$8 sps:$4 sm:$0xff]  }
  0x52   : > { %v1568_v58 = vld [vmem:[%s1886_s12 + $0xa4] ss:$8 sps:$4 sm:$0xff]   ;;  %v1571_v60 = vld [vmem:[%s1886_s12 + $0xa0] ss:$8 sps:$4 sm:$0xff]   ;;  %v1574_v62 = vld [vmem:[%s1886_s12 + $0xb4] ss:$8 sps:$4 sm:$0xff]  }
  0x53   : > { %1358 = vmatpush3.bf16.msra.mxu0 %v1543_v38  ;;  %1475 = vmatpush3.bf16.msra.mxu1 %v1543_v38  ;;  %v1576_v63 = vld [vmem:[%s1886_s12 + $0x30] ss:$8 sps:$4 sm:$0xff]   ;;  %v1578_v1 = vld [vmem:[%s1886_s12 + $0x44] ss:$8 sps:$4 sm:$0xff]   ;;  %v1582_v3 = vld [vmem:[%s1886_s12 + $0x40] ss:$8 sps:$4 sm:$0xff]  }
  0x54   : > { %1359 = vmatprep.subr.bf16.mxu0 %v1544_v39  ;;  %1468 = vmatprep.subr.bf16.mxu1 %v1544_v39  ;;  %v1577_v0 = vld [vmem:[%s1886_s12 + $0xb0] ss:$8 sps:$4 sm:$0xff]   ;;  %v1580_v2 = vld [vmem:[%s1886_s12 + $0xc4] ss:$8 sps:$4 sm:$0xff]   ;;  %v1583_v4 = vld [vmem:[%s1886_s12 + $0xc0] ss:$8 sps:$4 sm:$0xff]  }
  0x55   : > { %v1584_v5 = vld [vmem:[%s1886_s12 + $0x54] ss:$8 sps:$4 sm:$0xff]   ;;  %v1588_v7 = vld [vmem:[%s1886_s12 + $0x50] ss:$8 sps:$4 sm:$0xff]   ;;  %v1590_v9 = vld [vmem:[%s1886_s12 + $0x64] ss:$8 sps:$4 sm:$0xff]  }
  0x56   : > { %v1586_v6 = vld [vmem:[%s1886_s12 + $0xd4] ss:$8 sps:$4 sm:$0xff]   ;;  %v1589_v8 = vld [vmem:[%s1886_s12 + $0xd0] ss:$8 sps:$4 sm:$0xff]   ;;  %v1592_v10 = vld [vmem:[%s1886_s12 + $0xe4] ss:$8 sps:$4 sm:$0xff]  }
  0x57   : > { %1360 = vmatpush3.bf16.msra.mxu0 %v1545_v40  ;;  %1476 = vmatpush3.bf16.msra.mxu1 %v1545_v40  ;;  %v1594_v11 = vld [vmem:[%s1886_s12 + $0x60] ss:$8 sps:$4 sm:$0xff]   ;;  %v1596_v13 = vld [vmem:[%s1886_s12 + $0x74] ss:$8 sps:$4 sm:$0xff]   ;;  %v1600_v15 = vld [vmem:[%s1886_s12 + $0x70] ss:$8 sps:$4 sm:$0xff]  }
  0x58   : > { %1361 = vmatprep.subr.bf16.mxu0 %v1546_v41  ;;  %1469 = vmatprep.subr.bf16.mxu1 %v1546_v41  ;;  %v1595_v12 = vld [vmem:[%s1886_s12 + $0xe0] ss:$8 sps:$4 sm:$0xff]   ;;  %v1598_v14 = vld [vmem:[%s1886_s12 + $0xf4] ss:$8 sps:$4 sm:$0xff]   ;;  %v1601_v16 = vld [vmem:[%s1886_s12 + $0xf0] ss:$8 sps:$4 sm:$0xff]  }
  0x59   : > { %v450_v19 = vld [vmem:[#allocation2 + $0xb0] sm:$0xff]  ;;  %v466_v21 = vld [vmem:[#allocation2 + $0x38] sm:$0xff]  ;;  %v451_v29 = vld [vmem:[#allocation2] sm:$0xff] }
  0x5a   : > { %v467_v31 = vld [vmem:[#allocation2 + $0x58] sm:$0xff]  ;;  %v468_v41 = vld [vmem:[#allocation2 + $0x40] sm:$0xff] }
  0x5b   : > { %1362 = vmatpush3.bf16.msra.mxu0 %v1547_v42  ;;  %1477 = vmatpush3.bf16.msra.mxu1 %v1547_v42  ;;  %v452_v39 = vld [vmem:[#allocation2 + $0xd8] sm:$0xff] }
  0x5c   : > { %1363 = vmatprep.subr.bf16.mxu0 %v1548_v43  ;;  %1470 = vmatprep.subr.bf16.mxu1 %v1548_v43 }
  0x5f   : > { %1364 = vmatpush3.bf16.msra.mxu0 %v1549_v46  ;;  %1478 = vmatpush3.bf16.msra.mxu1 %v1549_v46 }
  0x60   : > { %1365 = vmatprep.subr.bf16.mxu0 %v1550_v47  ;;  %1471 = vmatprep.subr.bf16.mxu1 %v1550_v47 }
  0x63   : > { %1366 = vmatpush3.bf16.msra.mxu0 %v1551_v48  ;;  %1479 = vmatpush3.bf16.msra.mxu1 %v1551_v48 }
  0x64   : > { %1367 = vmatprep.subr.bf16.mxu0 %v1552_v49  ;;  %1472 = vmatprep.subr.bf16.mxu1 %v1552_v49  ;;  %v453_v49 = vld [vmem:[#allocation2 + $0x18] sm:$0xff] }
  0x67   : > { %1368 = vmatpush3.bf16.msra.mxu0 %v1553_v50  ;;  %1480 = vmatpush3.bf16.msra.mxu1 %v1553_v50 }
  0x6a   : > { %835 = vmatmul.mubr.bf16.vlgmr.msra.gmra.mxu0 %v1554_v51  ;;  %899 = vmatmul.mubr.bf16.vlgmr.msra.gmra.mxu1 %v1557_v52  ;;  %v469_v51 = vld [vmem:[#allocation2 + $0xc8] sm:$0xff] }
  0x6b   : > { %842 = vmatprep.mubr.bf16.mxu0 %v1560_v53  ;;  %906 = vmatprep.mubr.bf16.mxu1 %v1562_v54 }
  0x72   : > { %843 = vmatmul.mubr.bf16.gmra.mxu0 %v1564_v55  ;;  %907 = vmatmul.mubr.bf16.gmra.mxu1 %v1565_v56 }
  0x73   : > { %850 = vmatprep.mubr.bf16.mxu0 %v1566_v57  ;;  %914 = vmatprep.mubr.bf16.mxu1 %v1568_v58 }
  0x7a   : > { %851 = vmatmul.mubr.bf16.gmra.mxu0 %v1570_v59  ;;  %915 = vmatmul.mubr.bf16.gmra.mxu1 %v1571_v60  ;;  %v454_v59 = vld [vmem:[#allocation2 + $0x50] sm:$0xff] }
  0x7b   : > { %858 = vmatprep.mubr.bf16.mxu0 %v1572_v61  ;;  %922 = vmatprep.mubr.bf16.mxu1 %v1574_v62  ;;  %v470_v61 = vld [vmem:[#allocation2 + $0xe0] sm:$0xff] }
  0x82   : > { %859 = vmatmul.mubr.bf16.gmra.mxu0 %v1576_v63  ;;  %923 = vmatmul.mubr.bf16.gmra.mxu1 %v1577_v0 }
  0x83   : > { %866 = vmatprep.mubr.bf16.mxu0 %v1578_v1  ;;  %930 = vmatprep.mubr.bf16.mxu1 %v1580_v2 }
  0x8a   : > { %867 = vmatmul.mubr.bf16.gmra.mxu0 %v1582_v3  ;;  %931 = vmatmul.mubr.bf16.gmra.mxu1 %v1583_v4 }
  0x8b   : > { %874 = vmatprep.mubr.bf16.mxu0 %v1584_v5  ;;  %938 = vmatprep.mubr.bf16.mxu1 %v1586_v6  ;;  %v455_v5 = vld [vmem:[#allocation2 + $0x68] sm:$0xff] }
  0x92   : > { %875 = vmatmul.mubr.bf16.gmra.mxu0 %v1588_v7  ;;  %939 = vmatmul.mubr.bf16.gmra.mxu1 %v1589_v8  ;;  %v471_v7 = vld [vmem:[#allocation2 + $0x90] sm:$0xff] }
  0x93   : > { %882 = vmatprep.mubr.bf16.mxu0 %v1590_v9  ;;  %946 = vmatprep.mubr.bf16.mxu1 %v1592_v10 }
  0x9a   : > { %883 = vmatmul.mubr.bf16.gmra.mxu0 %v1594_v11  ;;  %947 = vmatmul.mubr.bf16.gmra.mxu1 %v1595_v12 }
  0x9b   : > { %890 = vmatprep.mubr.bf16.mxu0 %v1596_v13  ;;  %954 = vmatprep.mubr.bf16.mxu1 %v1598_v14 }
  0xa2   : > { %891 = vmatmul.mubr.bf16.gmra.mxu0 %v1600_v15  ;;  %955 = vmatmul.mubr.bf16.gmra.mxu1 %v1601_v16  ;;  %v456_v15 = vld [vmem:[#allocation2 + $0x30] sm:$0xff] }
 0x12a   : > { %v1369_v17 = vpop.f32.mrf.mxu0  ;;  %v1417_v18 = vpop.f32.mrf.mxu1 }
 0x12c   : > { %v1370_v20 = vpop.f32.mrf.mxu0  ;;  %v1418_v22 = vpop.f32.mrf.mxu1 }
 0x12d   : > { %v1371_v23 = vadd.f32 %v1370_v20, %v1369_v17  ;;  %v1419_v24 = vadd.f32 %v1418_v22, %v1417_v18  ;;  %v472_v17 = vld [vmem:[#allocation2 + $0x70] sm:$0xff] }
 0x12e   : > { %v1372_v25 = vpop.f32.mrf.mxu0  ;;  %v1420_v26 = vpop.f32.mrf.mxu1 }
 0x12f   : > { %v963_v27 = vadd.f32 %v1371_v23, %v450_v19  ;;  %v979_v28 = vadd.f32 %v1419_v24, %v466_v21 }
 0x130   : > { %v1373_v30 = vpop.f32.mrf.mxu0  ;;  %v1421_v32 = vpop.f32.mrf.mxu1 }
 0x131   : > { %995 = vst [vmem:[#allocation2 + $0xb0] sm:$0xff] %v963_v27  ;;  %1011 = vst [vmem:[#allocation2 + $0x38] sm:$0xff] %v979_v28  ;;  %v1374_v33 = vadd.f32 %v1373_v30, %v1372_v25  ;;  %v1422_v34 = vadd.f32 %v1421_v32, %v1420_v26  ;;  %v457_v25 = vld [vmem:[#allocation2 + $0x48] sm:$0xff]  ;;  %v473_v27 = vld [vmem:[#allocation2 + $0xc0] sm:$0xff] }
 0x132   : > { %v1375_v35 = vpop.f32.mrf.mxu0  ;;  %v1423_v36 = vpop.f32.mrf.mxu1 }
 0x133   : > { %v964_v37 = vadd.f32 %v1374_v33, %v451_v29  ;;  %v980_v38 = vadd.f32 %v1422_v34, %v467_v31 }
 0x134   : > { %v1376_v40 = vpop.f32.mrf.mxu0  ;;  %v1424_v42 = vpop.f32.mrf.mxu1 }
 0x135   : > { %996 = vst [vmem:[#allocation2] sm:$0xff] %v964_v37  ;;  %1012 = vst [vmem:[#allocation2 + $0x58] sm:$0xff] %v980_v38  ;;  %v1377_v43 = vadd.f32 %v1376_v40, %v1375_v35  ;;  %v1425_v44 = vadd.f32 %v1424_v42, %v1423_v36  ;;  %v458_v35 = vld [vmem:[#allocation2 + $0x80] sm:$0xff]  ;;  %v474_v37 = vld [vmem:[#allocation2 + $0xa8] sm:$0xff] }
 0x136   : > { %v1378_v45 = vpop.f32.mrf.mxu0  ;;  %v1426_v46 = vpop.f32.mrf.mxu1 }
 0x137   : > { %v965_v47 = vadd.f32 %v1377_v43, %v452_v39  ;;  %v981_v48 = vadd.f32 %v1425_v44, %v468_v41 }
 0x138   : > { %v1379_v50 = vpop.f32.mrf.mxu0  ;;  %v1427_v52 = vpop.f32.mrf.mxu1 }
 0x139   : > { %997 = vst [vmem:[#allocation2 + $0xd8] sm:$0xff] %v965_v47  ;;  %1013 = vst [vmem:[#allocation2 + $0x40] sm:$0xff] %v981_v48  ;;  %v1380_v53 = vadd.f32 %v1379_v50, %v1378_v45  ;;  %v1428_v54 = vadd.f32 %v1427_v52, %v1426_v46  ;;  %v459_v45 = vld [vmem:[#allocation2 + $0x88] sm:$0xff]  ;;  %v475_v47 = vld [vmem:[#allocation2 + $0xd0] sm:$0xff] }
 0x13a   : > { %v1381_v55 = vpop.f32.mrf.mxu0  ;;  %v1429_v56 = vpop.f32.mrf.mxu1 }
 0x13b   : > { %v966_v57 = vadd.f32 %v1380_v53, %v453_v49  ;;  %v982_v58 = vadd.f32 %v1428_v54, %v469_v51 }
 0x13c   : > { %v1382_v60 = vpop.f32.mrf.mxu0  ;;  %v1430_v62 = vpop.f32.mrf.mxu1 }
 0x13d   : > { %998 = vst [vmem:[#allocation2 + $0x18] sm:$0xff] %v966_v57  ;;  %1014 = vst [vmem:[#allocation2 + $0xc8] sm:$0xff] %v982_v58  ;;  %v1383_v63 = vadd.f32 %v1382_v60, %v1381_v55  ;;  %v1431_v0 = vadd.f32 %v1430_v62, %v1429_v56  ;;  %v460_v55 = vld [vmem:[#allocation2 + $0xe8] sm:$0xff]  ;;  %v476_v57 = vld [vmem:[#allocation2 + $0x10] sm:$0xff] }
 0x13e   : > { %v1384_v1 = vpop.f32.mrf.mxu0  ;;  %v1432_v2 = vpop.f32.mrf.mxu1 }
 0x13f   : > { %v967_v3 = vadd.f32 %v1383_v63, %v454_v59  ;;  %v983_v4 = vadd.f32 %v1431_v0, %v470_v61 }
 0x140   : > { %v1385_v6 = vpop.f32.mrf.mxu0  ;;  %v1433_v8 = vpop.f32.mrf.mxu1 }
 0x141   : > { %999 = vst [vmem:[#allocation2 + $0x50] sm:$0xff] %v967_v3  ;;  %1015 = vst [vmem:[#allocation2 + $0xe0] sm:$0xff] %v983_v4  ;;  %v1386_v9 = vadd.f32 %v1385_v6, %v1384_v1  ;;  %v1434_v10 = vadd.f32 %v1433_v8, %v1432_v2  ;;  %v461_v1 = vld [vmem:[#allocation2 + $0xb8] sm:$0xff]  ;;  %v477_v3 = vld [vmem:[#allocation2 + $0x28] sm:$0xff] }
 0x142   : > { %v1387_v11 = vpop.f32.mrf.mxu0  ;;  %v1435_v12 = vpop.f32.mrf.mxu1 }
 0x143   : > { %v968_v13 = vadd.f32 %v1386_v9, %v455_v5  ;;  %v984_v14 = vadd.f32 %v1434_v10, %v471_v7 }
 0x144   : > { %v1388_v16 = vpop.f32.mrf.mxu0  ;;  %v1436_v18 = vpop.f32.mrf.mxu1 }
 0x145   : > { %1000 = vst [vmem:[#allocation2 + $0x68] sm:$0xff] %v968_v13  ;;  %1016 = vst [vmem:[#allocation2 + $0x90] sm:$0xff] %v984_v14  ;;  %v1389_v19 = vadd.f32 %v1388_v16, %v1387_v11  ;;  %v1437_v20 = vadd.f32 %v1436_v18, %v1435_v12  ;;  %v462_v11 = vld [vmem:[#allocation2 + $0x60] sm:$0xff] }
 0x146   : > { %v1390_v21 = vpop.f32.mrf.mxu0  ;;  %v1438_v22 = vpop.f32.mrf.mxu1  ;;  %v478_v13 = vld [vmem:[#allocation2 + $0xa0] sm:$0xff] }
 0x147   : > { %v969_v23 = vadd.f32 %v1389_v19, %v456_v15  ;;  %v985_v24 = vadd.f32 %v1437_v20, %v472_v17 }
 0x148   : > { %v1391_v26 = vpop.f32.mrf.mxu0  ;;  %v1439_v28 = vpop.f32.mrf.mxu1 }
 0x149   : > { %1001 = vst [vmem:[#allocation2 + $0x30] sm:$0xff] %v969_v23  ;;  %1017 = vst [vmem:[#allocation2 + $0x70] sm:$0xff] %v985_v24  ;;  %v1392_v29 = vadd.f32 %v1391_v26, %v1390_v21  ;;  %v1440_v30 = vadd.f32 %v1439_v28, %v1438_v22  ;;  %v463_v21 = vld [vmem:[#allocation2 + $0xf0] sm:$0xff]  ;;  %v479_v23 = vld [vmem:[#allocation2 + $0xf8] sm:$0xff] }
 0x14a   : > { %v1393_v31 = vpop.f32.mrf.mxu0  ;;  %v1441_v32 = vpop.f32.mrf.mxu1 }
 0x14b   : > { %v970_v33 = vadd.f32 %v1392_v29, %v457_v25  ;;  %v986_v34 = vadd.f32 %v1440_v30, %v473_v27 }
 0x14c   : > { %v1394_v36 = vpop.f32.mrf.mxu0  ;;  %v1442_v38 = vpop.f32.mrf.mxu1 }
 0x14d   : > { %1002 = vst [vmem:[#allocation2 + $0x48] sm:$0xff] %v970_v33  ;;  %1018 = vst [vmem:[#allocation2 + $0xc0] sm:$0xff] %v986_v34  ;;  %v1395_v39 = vadd.f32 %v1394_v36, %v1393_v31  ;;  %v1443_v40 = vadd.f32 %v1442_v38, %v1441_v32  ;;  %v464_v31 = vld [vmem:[#allocation2 + $0x8] sm:$0xff]  ;;  %v480_v33 = vld [vmem:[#allocation2 + $0x20] sm:$0xff] }
 0x14e   : > { %v1396_v41 = vpop.f32.mrf.mxu0  ;;  %v1444_v42 = vpop.f32.mrf.mxu1 }
 0x14f   : > { %v971_v43 = vadd.f32 %v1395_v39, %v458_v35  ;;  %v987_v44 = vadd.f32 %v1443_v40, %v474_v37 }
 0x150   : > { %v1397_v46 = vpop.f32.mrf.mxu0  ;;  %v1445_v48 = vpop.f32.mrf.mxu1 }
 0x151   : > { %1003 = vst [vmem:[#allocation2 + $0x80] sm:$0xff] %v971_v43  ;;  %1019 = vst [vmem:[#allocation2 + $0xa8] sm:$0xff] %v987_v44  ;;  %v1398_v49 = vadd.f32 %v1397_v46, %v1396_v41  ;;  %v1446_v50 = vadd.f32 %v1445_v48, %v1444_v42  ;;  %v465_v41 = vld [vmem:[#allocation2 + $0x78] sm:$0xff] }
 0x152   : > { %v1399_v51 = vpop.f32.mrf.mxu0  ;;  %v1447_v52 = vpop.f32.mrf.mxu1  ;;  %v481_v43 = vld [vmem:[#allocation2 + $0x98] sm:$0xff] }
 0x153   : > { %v972_v53 = vadd.f32 %v1398_v49, %v459_v45  ;;  %v988_v54 = vadd.f32 %v1446_v50, %v475_v47 }
 0x154   : > { %v1400_v56 = vpop.f32.mrf.mxu0  ;;  %v1448_v58 = vpop.f32.mrf.mxu1 }
 0x155   : > { %1004 = vst [vmem:[#allocation2 + $0x88] sm:$0xff] %v972_v53  ;;  %1020 = vst [vmem:[#allocation2 + $0xd0] sm:$0xff] %v988_v54  ;;  %v1401_v59 = vadd.f32 %v1400_v56, %v1399_v51  ;;  %v1449_v60 = vadd.f32 %v1448_v58, %v1447_v52 }
 0x156   : > { %v1402_v61 = vpop.f32.mrf.mxu0  ;;  %v1450_v62 = vpop.f32.mrf.mxu1 }
 0x157   : > { %v973_v63 = vadd.f32 %v1401_v59, %v460_v55  ;;  %v989_v0 = vadd.f32 %v1449_v60, %v476_v57 }
 0x158   : > { %v1403_v2 = vpop.f32.mrf.mxu0  ;;  %v1451_v4 = vpop.f32.mrf.mxu1 }
 0x159   : > { %1005 = vst [vmem:[#allocation2 + $0xe8] sm:$0xff] %v973_v63  ;;  %1021 = vst [vmem:[#allocation2 + $0x10] sm:$0xff] %v989_v0  ;;  %v1404_v5 = vadd.f32 %v1403_v2, %v1402_v61  ;;  %v1452_v6 = vadd.f32 %v1451_v4, %v1450_v62 }
 0x15a   : > { %v1405_v7 = vpop.f32.mrf.mxu0  ;;  %v1453_v8 = vpop.f32.mrf.mxu1 }
 0x15b   : > { %v974_v9 = vadd.f32 %v1404_v5, %v461_v1  ;;  %v990_v10 = vadd.f32 %v1452_v6, %v477_v3 }
 0x15c   : > { %v1406_v12 = vpop.f32.mrf.mxu0  ;;  %v1454_v14 = vpop.f32.mrf.mxu1 }
 0x15d   : > { %1006 = vst [vmem:[#allocation2 + $0xb8] sm:$0xff] %v974_v9  ;;  %1022 = vst [vmem:[#allocation2 + $0x28] sm:$0xff] %v990_v10  ;;  %v1407_v15 = vadd.f32 %v1406_v12, %v1405_v7  ;;  %v1455_v16 = vadd.f32 %v1454_v14, %v1453_v8 }
 0x15e   : > { %v1408_v17 = vpop.f32.mrf.mxu0  ;;  %v1456_v18 = vpop.f32.mrf.mxu1 }
 0x15f   : > { %v975_v19 = vadd.f32 %v1407_v15, %v462_v11  ;;  %v991_v20 = vadd.f32 %v1455_v16, %v478_v13 }
 0x160   : > { %v1409_v22 = vpop.f32.mrf.mxu0  ;;  %v1457_v24 = vpop.f32.mrf.mxu1 }
 0x161   : > { %1007 = vst [vmem:[#allocation2 + $0x60] sm:$0xff] %v975_v19  ;;  %1023 = vst [vmem:[#allocation2 + $0xa0] sm:$0xff] %v991_v20  ;;  %v1410_v25 = vadd.f32 %v1409_v22, %v1408_v17  ;;  %v1458_v26 = vadd.f32 %v1457_v24, %v1456_v18 }
 0x162   : > { %v1411_v27 = vpop.f32.mrf.mxu0  ;;  %v1459_v28 = vpop.f32.mrf.mxu1 }
 0x163   : > { %v976_v29 = vadd.f32 %v1410_v25, %v463_v21  ;;  %v992_v30 = vadd.f32 %v1458_v26, %v479_v23 }
 0x164   : > { %v1412_v32 = vpop.f32.mrf.mxu0  ;;  %v1460_v34 = vpop.f32.mrf.mxu1 }
 0x165   : > { %1008 = vst [vmem:[#allocation2 + $0xf0] sm:$0xff] %v976_v29  ;;  %1024 = vst [vmem:[#allocation2 + $0xf8] sm:$0xff] %v992_v30  ;;  %v1413_v35 = vadd.f32 %v1412_v32, %v1411_v27  ;;  %v1461_v36 = vadd.f32 %v1460_v34, %v1459_v28 }
 0x166   : > { %v1414_v37 = vpop.f32.mrf.mxu0  ;;  %v1462_v38 = vpop.f32.mrf.mxu1 }
 0x167   : > { %v977_v39 = vadd.f32 %v1413_v35, %v464_v31  ;;  %v993_v40 = vadd.f32 %v1461_v36, %v480_v33 }
 0x168   : > { %v1415_v42 = vpop.f32.mrf.mxu0  ;;  %v1463_v44 = vpop.f32.mrf.mxu1 }
 0x169   : > { %1009 = vst [vmem:[#allocation2 + $0x8] sm:$0xff] %v977_v39  ;;  %1025 = vst [vmem:[#allocation2 + $0x20] sm:$0xff] %v993_v40  ;;  %v1416_v45 = vadd.f32 %v1415_v42, %v1414_v37  ;;  %v1464_v46 = vadd.f32 %v1463_v44, %v1462_v38  ;;  %1030 = sbr.rel (%p1348_p13) target bundleno = 415 (0x19f), region = 78 }
 0x16b   : > { %v978_v47 = vadd.f32 %v1416_v45, %v465_v41  ;;  %v994_v48 = vadd.f32 %v1464_v46, %v481_v43 }
 0x16d   : > { %1010 = vst [vmem:[#allocation2 + $0x78] sm:$0xff] %v978_v47  ;;  %1026 = vst [vmem:[#allocation2 + $0x98] sm:$0xff] %v994_v48 }
 0x16e   : > { %v1031_v49 = vld [vmem:[#allocation2 + $0xb0] sm:$0xff]  ;;  %v1941_v50 = vld [vmem:[%s2030_s2] ss:$0 sm:$0xff]  ;;  %v1033_v54 = vld [vmem:[#allocation2 + $0xd8] sm:$0xff] }
 0x16f   : > { %v1032_v51 = vld [vmem:[#allocation2] sm:$0xff]  ;;  %v1070_v52 = vadd.f32 %v1941_v50, %v1031_v49  ;;  %v1034_v55 = vld [vmem:[#allocation2 + $0x18] sm:$0xff]  ;;  %v1035_v56 = vld [vmem:[#allocation2 + $0x50] sm:$0xff]  ;;  %v1072_v57 = vadd.f32 %v1941_v50, %v1033_v54 }
 0x170   : > { %v1071_v53 = vadd.f32 %v1941_v50, %v1032_v51  ;;  %v1073_v58 = vadd.f32 %v1941_v50, %v1034_v55  ;;  %v1036_v59 = vld [vmem:[#allocation2 + $0x68] sm:$0xff]  ;;  %v1037_v60 = vld [vmem:[#allocation2 + $0x30] sm:$0xff]  ;;  %v1074_v61 = vadd.f32 %v1941_v50, %v1035_v56  ;;  %v1039_v0 = vld [vmem:[#allocation2 + $0x80] sm:$0xff] }
 0x171   : > { %1602 = vtanh.f32 %v1070_v52  ;;  %v1038_v62 = vld [vmem:[#allocation2 + $0x48] sm:$0xff]  ;;  %v1075_v63 = vadd.f32 %v1941_v50, %v1036_v59  ;;  %v1076_v1 = vadd.f32 %v1941_v50, %v1037_v60  ;;  %v1078_v5 = vadd.f32 %v1941_v50, %v1039_v0  ;;  %v1042_v6 = vld [vmem:[#allocation2 + $0xb8] sm:$0xff]  ;;  %v1043_v8 = vld [vmem:[#allocation2 + $0x60] sm:$0xff] }
 0x172   : > { %1604 = vtanh.f32 %v1071_v53  ;;  %v1040_v2 = vld [vmem:[#allocation2 + $0x88] sm:$0xff]  ;;  %v1077_v3 = vadd.f32 %v1941_v50, %v1038_v62  ;;  %v1044_v10 = vld [vmem:[#allocation2 + $0xf0] sm:$0xff]  ;;  %v1081_v11 = vadd.f32 %v1941_v50, %v1042_v6  ;;  %v1082_v13 = vadd.f32 %v1941_v50, %v1043_v8  ;;  %v1047_v16 = vld [vmem:[#allocation2 + $0x38] sm:$0xff] }
 0x173   : > { %1606 = vtanh.f32 %v1072_v57  ;;  %v1041_v4 = vld [vmem:[#allocation2 + $0xe8] sm:$0xff]  ;;  %v1079_v7 = vadd.f32 %v1941_v50, %v1040_v2  ;;  %v1083_v15 = vadd.f32 %v1941_v50, %v1044_v10  ;;  %v1048_v18 = vld [vmem:[#allocation2 + $0x58] sm:$0xff]  ;;  %v1049_v20 = vld [vmem:[#allocation2 + $0x40] sm:$0xff]  ;;  %v1086_v21 = vadd.f32 %v1941_v50, %v1047_v16 }
 0x174   : > { %1608 = vtanh.f32 %v1073_v58  ;;  %v1080_v9 = vadd.f32 %v1941_v50, %v1041_v4  ;;  %v1045_v12 = vld [vmem:[#allocation2 + $0x8] sm:$0xff]  ;;  %v1046_v14 = vld [vmem:[#allocation2 + $0x78] sm:$0xff]  ;;  %v1087_v24 = vadd.f32 %v1941_v50, %v1048_v18  ;;  %v1051_v25 = vld [vmem:[#allocation2 + $0xe0] sm:$0xff]  ;;  %v1088_v27 = vadd.f32 %v1941_v50, %v1049_v20 }
 0x175   : > { %1610 = vtanh.f32 %v1074_v61  ;;  %v1084_v17 = vadd.f32 %v1941_v50, %v1045_v12  ;;  %v1085_v19 = vadd.f32 %v1941_v50, %v1046_v14  ;;  %v1050_v22 = vld [vmem:[#allocation2 + $0xc8] sm:$0xff]  ;;  %v1052_v28 = vld [vmem:[#allocation2 + $0x90] sm:$0xff]  ;;  %v1090_v33 = vadd.f32 %v1941_v50, %v1051_v25  ;;  %v1054_v34 = vld [vmem:[#allocation2 + $0xc0] sm:$0xff] }
 0x176   : > { %1612 = vtanh.f32 %v1075_v63  ;;  %v1089_v30 = vadd.f32 %v1941_v50, %v1050_v22  ;;  %v1053_v31 = vld [vmem:[#allocation2 + $0x70] sm:$0xff]  ;;  %v1091_v36 = vadd.f32 %v1941_v50, %v1052_v28  ;;  %v1055_v37 = vld [vmem:[#allocation2 + $0xa8] sm:$0xff]  ;;  %v1093_v42 = vadd.f32 %v1941_v50, %v1054_v34  ;;  %v1059_v49 = vld [vmem:[#allocation2 + $0xa0] sm:$0xff] }
 0x177   : > { %1614 = vtanh.f32 %v1076_v1  ;;  %v1092_v39 = vadd.f32 %v1941_v50, %v1053_v31  ;;  %v1056_v40 = vld [vmem:[#allocation2 + $0xd0] sm:$0xff]  ;;  %v1094_v45 = vadd.f32 %v1941_v50, %v1055_v37  ;;  %v1058_v46 = vld [vmem:[#allocation2 + $0x28] sm:$0xff]  ;;  %v1060_v53 = vld [vmem:[#allocation2 + $0xf8] sm:$0xff]  ;;  %v1098_v58 = vadd.f32 %v1941_v50, %v1059_v49 }
 0x178   : > { %1616 = vtanh.f32 %v1077_v3  ;;  %v1057_v43 = vld [vmem:[#allocation2 + $0x10] sm:$0xff]  ;;  %v1095_v48 = vadd.f32 %v1941_v50, %v1056_v40  ;;  %v1097_v55 = vadd.f32 %v1941_v50, %v1058_v46  ;;  %v1061_v56 = vld [vmem:[#allocation2 + $0x20] sm:$0xff]  ;;  %v1062_v59 = vld [vmem:[#allocation2 + $0x98] sm:$0xff]  ;;  %v1099_v61 = vadd.f32 %v1941_v50, %v1060_v53 }
 0x179   : > { %1618 = vtanh.f32 %v1078_v5  ;;  %v1096_v52 = vadd.f32 %v1941_v50, %v1057_v43  ;;  %v1100_v63 = vadd.f32 %v1941_v50, %v1061_v56  ;;  %v1101_v1 = vadd.f32 %v1941_v50, %v1062_v59 }
 0x17a   : > { %1620 = vtanh.f32 %v1079_v7 }
 0x17b   : > { %1622 = vtanh.f32 %v1080_v9 }
 0x17c   : > { %1624 = vtanh.f32 %v1081_v11 }
 0x17d   : > { %1626 = vtanh.f32 %v1082_v13 }
 0x17e   : > { %v1603_v23 = vpop.eup %1602  ;;  %1628 = vtanh.f32 %v1083_v15 }
 0x17f   : > { %v1605_v26 = vpop.eup %1604  ;;  %1134 = vst [vmem:[%s1884_s30] sm:$0xff] %v1603_v23  ;;  %1630 = vtanh.f32 %v1084_v17 }
 0x180   : > { %v1607_v29 = vpop.eup %1606  ;;  %1135 = vst [vmem:[%s1884_s30 + $0x8] sm:$0xff] %v1605_v26  ;;  %1632 = vtanh.f32 %v1085_v19 }
 0x181   : > { %v1609_v32 = vpop.eup %1608  ;;  %1136 = vst [vmem:[%s1884_s30 + $0x10] sm:$0xff] %v1607_v29  ;;  %1634 = vtanh.f32 %v1086_v21 }
 0x182   : > { %v1611_v35 = vpop.eup %1610  ;;  %1137 = vst [vmem:[%s1884_s30 + $0x18] sm:$0xff] %v1609_v32  ;;  %1636 = vtanh.f32 %v1087_v24 }
 0x183   : > { %v1613_v38 = vpop.eup %1612  ;;  %1138 = vst [vmem:[%s1884_s30 + $0x20] sm:$0xff] %v1611_v35  ;;  %1638 = vtanh.f32 %v1088_v27 }
 0x184   : > { %v1615_v41 = vpop.eup %1614  ;;  %1139 = vst [vmem:[%s1884_s30 + $0x28] sm:$0xff] %v1613_v38  ;;  %1640 = vtanh.f32 %v1089_v30 }
 0x185   : > { %v1617_v44 = vpop.eup %1616  ;;  %1140 = vst [vmem:[%s1884_s30 + $0x30] sm:$0xff] %v1615_v41  ;;  %1642 = vtanh.f32 %v1090_v33 }
 0x186   : > { %v1619_v47 = vpop.eup %1618  ;;  %1141 = vst [vmem:[%s1884_s30 + $0x38] sm:$0xff] %v1617_v44  ;;  %1644 = vtanh.f32 %v1091_v36 }
 0x187   : > { %v1621_v51 = vpop.eup %1620  ;;  %1142 = vst [vmem:[%s1884_s30 + $0x40] sm:$0xff] %v1619_v47  ;;  %1646 = vtanh.f32 %v1092_v39 }
 0x188   : > { %v1623_v54 = vpop.eup %1622  ;;  %1143 = vst [vmem:[%s1884_s30 + $0x48] sm:$0xff] %v1621_v51  ;;  %1648 = vtanh.f32 %v1093_v42 }
 0x189   : > { %v1625_v57 = vpop.eup %1624  ;;  %1144 = vst [vmem:[%s1884_s30 + $0x50] sm:$0xff] %v1623_v54  ;;  %1650 = vtanh.f32 %v1094_v45 }
 0x18a   : > { %v1627_v60 = vpop.eup %1626  ;;  %1145 = vst [vmem:[%s1884_s30 + $0x58] sm:$0xff] %v1625_v57  ;;  %1652 = vtanh.f32 %v1095_v48 }
 0x18b   : > { %v1629_v62 = vpop.eup %1628  ;;  %1146 = vst [vmem:[%s1884_s30 + $0x60] sm:$0xff] %v1627_v60  ;;  %1654 = vtanh.f32 %v1096_v52 }
 0x18c   : > { %v1631_v0 = vpop.eup %1630  ;;  %1147 = vst [vmem:[%s1884_s30 + $0x68] sm:$0xff] %v1629_v62  ;;  %1656 = vtanh.f32 %v1097_v55 }
 0x18d   : > { %v1633_v2 = vpop.eup %1632  ;;  %1148 = vst [vmem:[%s1884_s30 + $0x70] sm:$0xff] %v1631_v0  ;;  %1658 = vtanh.f32 %v1098_v58 }
 0x18e   : > { %v1635_v3 = vpop.eup %1634  ;;  %1149 = vst [vmem:[%s1884_s30 + $0x78] sm:$0xff] %v1633_v2  ;;  %1660 = vtanh.f32 %v1099_v61 }
 0x18f   : > { %v1637_v4 = vpop.eup %1636  ;;  %1150 = vst [vmem:[%s1884_s30 + $0x80] sm:$0xff] %v1635_v3  ;;  %1662 = vtanh.f32 %v1100_v63 }
 0x190   : > { %v1639_v5 = vpop.eup %1638  ;;  %1151 = vst [vmem:[%s1884_s30 + $0x88] sm:$0xff] %v1637_v4  ;;  %1664 = vtanh.f32 %v1101_v1 }
 0x191   : > { %v1641_v50 = vpop.eup %1640  ;;  %1152 = vst [vmem:[%s1884_s30 + $0x90] sm:$0xff] %v1639_v5 }
 0x192   : > { %v1643_v6 = vpop.eup %1642  ;;  %1153 = vst [vmem:[%s1884_s30 + $0x98] sm:$0xff] %v1641_v50 }
 0x193   : > { %v1645_v7 = vpop.eup %1644  ;;  %1154 = vst [vmem:[%s1884_s30 + $0xa0] sm:$0xff] %v1643_v6 }
 0x194   : > { %v1647_v8 = vpop.eup %1646  ;;  %1155 = vst [vmem:[%s1884_s30 + $0xa8] sm:$0xff] %v1645_v7 }
 0x195   : > { %v1649_v9 = vpop.eup %1648  ;;  %1156 = vst [vmem:[%s1884_s30 + $0xb0] sm:$0xff] %v1647_v8 }
 0x196   : > { %v1651_v10 = vpop.eup %1650  ;;  %1157 = vst [vmem:[%s1884_s30 + $0xb8] sm:$0xff] %v1649_v9 }
 0x197   : > { %v1653_v11 = vpop.eup %1652  ;;  %1158 = vst [vmem:[%s1884_s30 + $0xc0] sm:$0xff] %v1651_v10 }
 0x198   : > { %v1655_v12 = vpop.eup %1654  ;;  %1159 = vst [vmem:[%s1884_s30 + $0xc8] sm:$0xff] %v1653_v11 }
 0x199   : > { %v1657_v13 = vpop.eup %1656  ;;  %1160 = vst [vmem:[%s1884_s30 + $0xd0] sm:$0xff] %v1655_v12 }
 0x19a   : > { %v1659_v14 = vpop.eup %1658  ;;  %1161 = vst [vmem:[%s1884_s30 + $0xd8] sm:$0xff] %v1657_v13 }
 0x19b   : > { %v1661_v15 = vpop.eup %1660  ;;  %1162 = vst [vmem:[%s1884_s30 + $0xe0] sm:$0xff] %v1659_v14 }
 0x19c   : > { %v1663_v16 = vpop.eup %1662  ;;  %1163 = vst [vmem:[%s1884_s30 + $0xe8] sm:$0xff] %v1661_v15 }
 0x19d   : > { %v1665_v17 = vpop.eup %1664  ;;  %1164 = vst [vmem:[%s1884_s30 + $0xf0] sm:$0xff] %v1663_v16 }
 0x19e   : > { %1165 = vst [vmem:[%s1884_s30 + $0xf8] sm:$0xff] %v1665_v17 }
 0x19f PF: > { %s13_s18 = sadd.s32 1, %s1720_s18   ;;  %s2032_s12 = smov %s1700_s13 }
 0x1a0   : > { %p10_p0 = scmp.ge.s32.totalorder %s13_s18, 6   ;;  %s2033_s13 = smov %s1794_s25 }
 0x1a1   : > { %s2034_s14 = smov %s1712_s16  ;;  %s2035_s15 = smov %s1716_s17 }
 0x1a2   : > { %s2036_s16 = smov %s2039_s19  ;;  %s2037_s17 = smov %s2043_s20 }
 0x1a3   :  { %12 = sbr.rel (!%p10_p0) target bundleno = 4 (0x4), region = 119 }

</bundles_post_ra>
